<compile_context>
chip_gen: v7x
topology: tpu7x:2x2x1
jax: 0.10.0
libtpu: 0.0.40
codegen_flags: <defaults>
</compile_context>

<pallas_src>
import math

import jax
import jax.numpy as jnp
from jax.experimental import pallas as pl
from jax.experimental.pallas import tpu as pltpu


def _round_up(x, m):
    return ((x + m - 1) // m) * m


# ----------------------------- fused Pallas kernel -----------------------------
def seq2seq_kernel(seq_ref, enc_inproj_ref, enc_whh_ref,
                   dec_inproj_ref, dec_whh_ref, fc_w_ref, fc_b_ref,
                   out_ref):
    """seq_ref: (S*Bp, 1) int32, time-major token ids (rows s*Bp..s*Bp+Bp-1 = step s).
    enc_inproj: (Vp, 4Hp) = pad(emb @ enc_W_ih + enc_b)   (bias folded into every row)
    enc_whh:    (Hp, 4Hp)
    dec_inproj: (Vp, 4Hp) = pad(emb @ dec_W_ih + dec_b)
    dec_whh:    (Hp, 4Hp)
    fc_w:       (Hp, Vp)
    fc_b:       (Bp, Vp)  pad lanes hold -1e30
    out_ref:    (T, Bp, Vp)"""
    T, Bp, Vp = out_ref.shape
    Hp = enc_whh_ref.shape[0]
    S = seq_ref.shape[0] // Bp
    f32 = jnp.float32

    def apply_gates(gates, c):
        # gate slices are 128-lane-tile aligned (Hp is a multiple of 128)
        i = jax.nn.sigmoid(gates[:, 0 * Hp:1 * Hp])
        f = jax.nn.sigmoid(gates[:, 1 * Hp:2 * Hp])
        g = jnp.tanh(gates[:, 2 * Hp:3 * Hp])
        o = jax.nn.sigmoid(gates[:, 3 * Hp:4 * Hp])
        c_new = f * c + i * g
        return o * jnp.tanh(c_new), c_new

    # ---- one-hot encode all encoder tokens; ONE batched MXU matmul produces the encoder
    # input-gate projections (bias included) for every step, off the serial critical path.
    toks = seq_ref[...]                                               # (S*Bp, 1) int32
    lane_all = jax.lax.broadcasted_iota(jnp.int32, (S * Bp, Vp), 1)
    oh = (lane_all == toks).astype(f32)                               # (S*Bp, Vp) one-hot
    gx = jnp.dot(oh, enc_inproj_ref[...], preferred_element_type=f32)  # (S*Bp, 4Hp)

    # ---- encoder recurrence: only h @ W_hh on the critical path; static unroll (S small),
    # gx consumed with static, sublane-aligned slices -> no scratch round-trips.
    enc_whh = enc_whh_ref[...]
    h = jnp.zeros((Bp, Hp), f32)
    c = jnp.zeros((Bp, Hp), f32)
    for s in range(S):
        gates = gx[s * Bp:(s + 1) * Bp, :] + jnp.dot(h, enc_whh,
                                                     preferred_element_type=f32)
        h, c = apply_gates(gates, c)

    # ---- greedy decoder. Loop invariants hoisted; W_hh / fc matmuls depend only on h_t,
    # so they overlap with the argmax + token-row selection instead of waiting on it.
    dec_whh = dec_whh_ref[...]
    dec_inproj = dec_inproj_ref[...]
    fc_w = fc_w_ref[...]
    fc_b = fc_b_ref[...]                                              # (Bp, Vp), pads -1e30
    lane = jax.lax.broadcasted_iota(jnp.int32, (Bp, Vp), 1)

    g_x = jnp.dot(oh[0:Bp, :], dec_inproj, preferred_element_type=f32)  # token input_seq[:,0]
    g_h = jnp.dot(h, dec_whh, preferred_element_type=f32)
    for t in range(T):                                                # static unroll (T small)
        h, c = apply_gates(g_x + g_h, c)
        # both depend only on h -> issued immediately, off the argmax chain
        g_h = jnp.dot(h, dec_whh, preferred_element_type=f32)
        logits = jnp.dot(h, fc_w, preferred_element_type=f32) + fc_b
        out_ref[t] = logits                                           # full-sublane, lane-dense
        # first-max argmax (torch tie-break); pad lanes hold -1e30 so never selected
        m = jnp.max(logits, axis=-1, keepdims=True)
        idx = jnp.min(jnp.where(logits >= m, lane, Vp), axis=-1, keepdims=True)
        g_x = jnp.dot((lane == idx).astype(f32), dec_inproj,
                      preferred_element_type=f32)


# ----------------------------- wrapper -----------------------------
def seq2seq_forward(params, input_seq, max_len):
    emb = params["embedding"]                         # (V, E), row 0 == 0 (padding_idx)
    V = emb.shape[0]
    H = params["enc_whh"].shape[0]
    B, S = input_seq.shape
    f32 = jnp.float32
    HI = jax.lax.Precision.HIGHEST
    Hp = _round_up(H, 128)
    Vp = _round_up(V, 128)
    Bp = _round_up(B, 8)                              # full sublane tile

    def pad_gates(w):   # (..., 4H) -> (..., 4Hp): gate k placed at the start of its Hp slot
        out = jnp.zeros(w.shape[:-1] + (4 * Hp,), f32)
        for k in range(4):
            out = out.at[..., k * Hp:k * Hp + H].set(w[..., k * H:(k + 1) * H])
        return out

    def pad_rows(w, rp):
        return jnp.zeros((rp,) + w.shape[1:], f32).at[:w.shape[0]].set(w)

    # Pre-fuse embedding into the input projections and fold the biases into every row
    # (valid because one-hot rows sum to 1); zero-pad to lane-aligned shapes.
    enc_inproj = pad_rows(pad_gates(
        jnp.dot(emb, params["enc_wih"], precision=HI) + params["enc_b"]), Vp)   # (Vp, 4Hp)
    dec_inproj = pad_rows(pad_gates(
        jnp.dot(emb, params["dec_wih"], precision=HI) + params["dec_b"]), Vp)   # (Vp, 4Hp)
    enc_whh_p = pad_rows(pad_gates(params["enc_whh"]), Hp)                      # (Hp, 4Hp)
    dec_whh_p = pad_rows(pad_gates(params["dec_whh"]), Hp)                      # (Hp, 4Hp)
    fc_w_p = jnp.zeros((Hp, Vp), f32).at[:H, :V].set(params["fc_w"])            # (Hp, Vp)
    fc_b_p = jnp.broadcast_to(
        jnp.full((1, Vp), -1e30, f32).at[:, :V].set(params["fc_b"]), (Bp, Vp))  # (Bp, Vp)

    # Pad batch to Bp rows (token 0 = padding_idx) and go time-major.
    seq_p = jnp.zeros((Bp, S), jnp.int32).at[:B].set(input_seq.astype(jnp.int32))
    seq_tm = seq_p.T.reshape(S * Bp, 1)

    out_tm = pl.pallas_call(
        seq2seq_kernel,
        out_shape=jax.ShapeDtypeStruct((max_len, Bp, Vp), f32),
        compiler_params=pltpu.CompilerParams(vmem_limit_bytes=16 * 1024 * 1024),
    )(seq_tm, enc_inproj, enc_whh_p, dec_inproj, dec_whh_p, fc_w_p, fc_b_p)

    # (T, Bp, Vp) -> (B, T, V), matches torch.cat(outputs, dim=1)
    return jnp.transpose(out_tm[:, :B, :V], (1, 0, 2))


# ----------------------------- deterministic param init -----------------------------
def init_params(key, vocab_size, embed_size, hidden_size):
    ks = jax.random.split(key, 12)
    s_lstm = 1.0 / math.sqrt(hidden_size)
    s_fc = 1.0 / math.sqrt(hidden_size)

    def u(k, shape, scale):
        return jax.random.uniform(k, shape, jnp.float32, -scale, scale)

    emb = jax.random.normal(ks[0], (vocab_size, embed_size), jnp.float32)
    emb = emb.at[0].set(0.0)  # padding_idx=0

    return {
        "embedding": emb,
        # stored already transposed: W_ih^T (E, 4H), W_hh^T (H, 4H), b = b_ih + b_hh
        "enc_wih": u(ks[1], (embed_size, 4 * hidden_size), s_lstm),
        "enc_whh": u(ks[2], (hidden_size, 4 * hidden_size), s_lstm),
        "enc_b": u(ks[3], (1, 4 * hidden_size), s_lstm) + u(ks[4], (1, 4 * hidden_size), s_lstm),
        "dec_wih": u(ks[5], (embed_size, 4 * hidden_size), s_lstm),
        "dec_whh": u(ks[6], (hidden_size, 4 * hidden_size), s_lstm),
        "dec_b": u(ks[7], (1, 4 * hidden_size), s_lstm) + u(ks[8], (1, 4 * hidden_size), s_lstm),
        "fc_w": u(ks[9], (hidden_size, vocab_size), s_fc),
        "fc_b": u(ks[10], (1, vocab_size), s_fc),
    }


# ----------------------------- pure-JAX reference -----------------------------
def _lstm_cell_ref(x, h, c, wih, whh, b):
    HI = jax.lax.Precision.HIGHEST
    H = h.shape[-1]
    gates = jnp.dot(x, wih, precision=HI) + jnp.dot(h, whh, precision=HI) + b
    i = jax.nn.sigmoid(gates[:, 0 * H:1 * H])
    f = jax.nn.sigmoid(gates[:, 1 * H:2 * H])
    g = jnp.tanh(gates[:, 2 * H:3 * H])
    o = jax.nn.sigmoid(gates[:, 3 * H:4 * H])
    c_new = f * c + i * g
    return o * jnp.tanh(c_new), c_new


def reference_forward(params, input_seq, max_len):
    HI = jax.lax.Precision.HIGHEST
    emb = params["embedding"]
    H = params["enc_whh"].shape[0]
    B, S = input_seq.shape
    h = jnp.zeros((B, H), jnp.float32)
    c = jnp.zeros((B, H), jnp.float32)
    embedded = emb[input_seq]                         # (B, S, E)
    for t in range(S):
        h, c = _lstm_cell_ref(embedded[:, t], h, c,
                              params["enc_wih"], params["enc_whh"], params["enc_b"])
    tok = input_seq[:, 0]
    outs = []
    for _ in range(max_len):
        x = emb[tok]
        h, c = _lstm_cell_ref(x, h, c, params["dec_wih"], params["dec_whh"], params["dec_b"])
        logits = jnp.dot(h, params["fc_w"], precision=HI) + params["fc_b"]
        outs.append(logits)
        tok = jnp.argmax(logits, axis=-1)
    return jnp.stack(outs, axis=1)                    # (B, max_len, V)


if __name__ == "__main__":
    vocab_size, embed_size, hidden_size = 32, 16, 32
    B, S, T = 2, 8, 8   # target_seq length T fixes max_len (greedy / no teacher forcing)

    key = jax.random.PRNGKey(0)
    pkey, ikey = jax.random.split(key, 2)
    params = init_params(pkey, vocab_size, embed_size, hidden_size)
    input_seq = jax.random.randint(ikey, (B, S), 0, vocab_size, dtype=jnp.int32)

    fwd = jax.jit(seq2seq_forward, static_argnames=("max_len",))
    out = jax.block_until_ready(fwd(params, input_seq, max_len=T))
    assert out.shape == (B, T, vocab_size), out.shape

    ref = reference_forward(params, input_seq, T)

    # Greedy argmax feedback means a numerical near-tie can legitimately flip one token and
    # make every later step of that row incomparable; compare logits only on steps whose
    # token-feedback history agrees between kernel and reference (step t depends only on
    # tokens chosen at steps < t).
    tok_k = jnp.argmax(out, axis=-1)                  # (B, T)
    tok_r = jnp.argmax(ref, axis=-1)
    same = (tok_k == tok_r).astype(jnp.int32)
    prefix = jnp.cumprod(same, axis=1)
    valid = jnp.concatenate([jnp.ones((B, 1), jnp.int32), prefix[:, :-1]], axis=1)
    err = float(jnp.max(jnp.abs(out - ref) * valid[:, :, None].astype(out.dtype)))
    assert err < 2e-2, err
    print("KERNEL_OK")
</pallas_src>

<mosaic_0001>
module attributes {stable_mosaic.version = 11 : i64} {
  func.func @seq2seq_kernel(%arg0: memref<64x1xi32, #tpu.memory_space<vmem>>, %arg1: memref<128x512xf32, #tpu.memory_space<vmem>>, %arg2: memref<128x512xf32, #tpu.memory_space<vmem>>, %arg3: memref<128x512xf32, #tpu.memory_space<vmem>>, %arg4: memref<128x512xf32, #tpu.memory_space<vmem>>, %arg5: memref<128x128xf32, #tpu.memory_space<vmem>>, %arg6: memref<8x128xf32, #tpu.memory_space<vmem>>, %arg7: memref<8x8x128xf32, #tpu.memory_space<vmem>>) attributes {dimension_semantics = [], scalar_prefetch = 0 : i64, scratch_operands = 0 : i64, tpu.core_type = #tpu.core_type<tc>} {
    %c0 = arith.constant 0 : index
    %c0_0 = arith.constant 0 : index
    %0 = vector.load %arg0[%c0, %c0_0] : memref<64x1xi32, #tpu.memory_space<vmem>>, vector<64x1xi32>
    %1 = tpu.iota {dimensions = array<i32: 1>} : vector<64x128xi32>
    %2 = vector.broadcast %0 : vector<64x1xi32> to vector<64x128xi32>
    %3 = arith.cmpi eq, %1, %2 : vector<64x128xi32>
    %4 = arith.extui %3 : vector<64x128xi1> to vector<64x128xi32>
    %5 = arith.sitofp %4 : vector<64x128xi32> to vector<64x128xf32>
    %c0_1 = arith.constant 0 : index
    %c0_2 = arith.constant 0 : index
    %6 = vector.load %arg1[%c0_1, %c0_2] : memref<128x512xf32, #tpu.memory_space<vmem>>, vector<128x512xf32>
    %cst = arith.constant dense<0.000000e+00> : vector<64x512xf32>
    %7 = tpu.matmul %5, %6, %cst {dimension_numbers = #tpu.dot_dimension_numbers<[1], [0], [0], [1], [0, 0, 1, 1], [], []>} : vector<64x128xf32>, vector<128x512xf32>, vector<64x512xf32> -> vector<64x512xf32>
    %c0_3 = arith.constant 0 : index
    %c0_4 = arith.constant 0 : index
    %8 = vector.load %arg2[%c0_3, %c0_4] : memref<128x512xf32, #tpu.memory_space<vmem>>, vector<128x512xf32>
    %cst_5 = arith.constant 0.000000e+00 : f32
    %9 = vector.broadcast %cst_5 : f32 to vector<8x128xf32>
    %cst_6 = arith.constant 0.000000e+00 : f32
    %10 = vector.broadcast %cst_6 : f32 to vector<8x128xf32>
    %11 = vector.extract_strided_slice %7 {offsets = [0, 0], sizes = [8, 512], strides = [1, 1]} : vector<64x512xf32> to vector<8x512xf32>
    %cst_7 = arith.constant dense<0.000000e+00> : vector<8x512xf32>
    %12 = tpu.matmul %9, %8, %cst_7 {dimension_numbers = #tpu.dot_dimension_numbers<[1], [0], [0], [1], [0, 0, 1, 1], [], []>} : vector<8x128xf32>, vector<128x512xf32>, vector<8x512xf32> -> vector<8x512xf32>
    %13 = arith.addf %11, %12 : vector<8x512xf32>
    %14 = vector.extract_strided_slice %13 {offsets = [0, 0], sizes = [8, 128], strides = [1, 1]} : vector<8x512xf32> to vector<8x128xf32>
    %15 = arith.negf %14 : vector<8x128xf32>
    %16 = math.exp %15 : vector<8x128xf32>
    %cst_8 = arith.constant 1.000000e+00 : f32
    %17 = vector.broadcast %cst_8 : f32 to vector<8x128xf32>
    %18 = arith.addf %17, %16 : vector<8x128xf32>
    %19 = arith.divf %17, %18 : vector<8x128xf32>
    %20 = vector.extract_strided_slice %13 {offsets = [0, 128], sizes = [8, 128], strides = [1, 1]} : vector<8x512xf32> to vector<8x128xf32>
    %21 = arith.negf %20 : vector<8x128xf32>
    %22 = math.exp %21 : vector<8x128xf32>
    %cst_9 = arith.constant 1.000000e+00 : f32
    %23 = vector.broadcast %cst_9 : f32 to vector<8x128xf32>
    %24 = arith.addf %23, %22 : vector<8x128xf32>
    %25 = arith.divf %23, %24 : vector<8x128xf32>
    %26 = vector.extract_strided_slice %13 {offsets = [0, 256], sizes = [8, 128], strides = [1, 1]} : vector<8x512xf32> to vector<8x128xf32>
    %27 = math.tanh %26 : vector<8x128xf32>
    %28 = vector.extract_strided_slice %13 {offsets = [0, 384], sizes = [8, 128], strides = [1, 1]} : vector<8x512xf32> to vector<8x128xf32>
    %29 = arith.negf %28 : vector<8x128xf32>
    %30 = math.exp %29 : vector<8x128xf32>
    %cst_10 = arith.constant 1.000000e+00 : f32
    %31 = vector.broadcast %cst_10 : f32 to vector<8x128xf32>
    %32 = arith.addf %31, %30 : vector<8x128xf32>
    %33 = arith.divf %31, %32 : vector<8x128xf32>
    %34 = arith.mulf %25, %10 : vector<8x128xf32>
    %35 = arith.mulf %19, %27 : vector<8x128xf32>
    %36 = arith.addf %34, %35 : vector<8x128xf32>
    %37 = math.tanh %36 : vector<8x128xf32>
    %38 = arith.mulf %33, %37 : vector<8x128xf32>
    %39 = vector.extract_strided_slice %7 {offsets = [8, 0], sizes = [8, 512], strides = [1, 1]} : vector<64x512xf32> to vector<8x512xf32>
    %cst_11 = arith.constant dense<0.000000e+00> : vector<8x512xf32>
    %40 = tpu.matmul %38, %8, %cst_11 {dimension_numbers = #tpu.dot_dimension_numbers<[1], [0], [0], [1], [0, 0, 1, 1], [], []>} : vector<8x128xf32>, vector<128x512xf32>, vector<8x512xf32> -> vector<8x512xf32>
    %41 = arith.addf %39, %40 : vector<8x512xf32>
    %42 = vector.extract_strided_slice %41 {offsets = [0, 0], sizes = [8, 128], strides = [1, 1]} : vector<8x512xf32> to vector<8x128xf32>
    %43 = arith.negf %42 : vector<8x128xf32>
    %44 = math.exp %43 : vector<8x128xf32>
    %cst_12 = arith.constant 1.000000e+00 : f32
    %45 = vector.broadcast %cst_12 : f32 to vector<8x128xf32>
    %46 = arith.addf %45, %44 : vector<8x128xf32>
    %47 = arith.divf %45, %46 : vector<8x128xf32>
    %48 = vector.extract_strided_slice %41 {offsets = [0, 128], sizes = [8, 128], strides = [1, 1]} : vector<8x512xf32> to vector<8x128xf32>
    %49 = arith.negf %48 : vector<8x128xf32>
    %50 = math.exp %49 : vector<8x128xf32>
    %cst_13 = arith.constant 1.000000e+00 : f32
    %51 = vector.broadcast %cst_13 : f32 to vector<8x128xf32>
    %52 = arith.addf %51, %50 : vector<8x128xf32>
    %53 = arith.divf %51, %52 : vector<8x128xf32>
    %54 = vector.extract_strided_slice %41 {offsets = [0, 256], sizes = [8, 128], strides = [1, 1]} : vector<8x512xf32> to vector<8x128xf32>
    %55 = math.tanh %54 : vector<8x128xf32>
    %56 = vector.extract_strided_slice %41 {offsets = [0, 384], sizes = [8, 128], strides = [1, 1]} : vector<8x512xf32> to vector<8x128xf32>
    %57 = arith.negf %56 : vector<8x128xf32>
    %58 = math.exp %57 : vector<8x128xf32>
    %cst_14 = arith.constant 1.000000e+00 : f32
    %59 = vector.broadcast %cst_14 : f32 to vector<8x128xf32>
    %60 = arith.addf %59, %58 : vector<8x128xf32>
    %61 = arith.divf %59, %60 : vector<8x128xf32>
    %62 = arith.mulf %53, %36 : vector<8x128xf32>
    %63 = arith.mulf %47, %55 : vector<8x128xf32>
    %64 = arith.addf %62, %63 : vector<8x128xf32>
    %65 = math.tanh %64 : vector<8x128xf32>
    %66 = arith.mulf %61, %65 : vector<8x128xf32>
    %67 = vector.extract_strided_slice %7 {offsets = [16, 0], sizes = [8, 512], strides = [1, 1]} : vector<64x512xf32> to vector<8x512xf32>
    %cst_15 = arith.constant dense<0.000000e+00> : vector<8x512xf32>
    %68 = tpu.matmul %66, %8, %cst_15 {dimension_numbers = #tpu.dot_dimension_numbers<[1], [0], [0], [1], [0, 0, 1, 1], [], []>} : vector<8x128xf32>, vector<128x512xf32>, vector<8x512xf32> -> vector<8x512xf32>
    %69 = arith.addf %67, %68 : vector<8x512xf32>
    %70 = vector.extract_strided_slice %69 {offsets = [0, 0], sizes = [8, 128], strides = [1, 1]} : vector<8x512xf32> to vector<8x128xf32>
    %71 = arith.negf %70 : vector<8x128xf32>
    %72 = math.exp %71 : vector<8x128xf32>
    %cst_16 = arith.constant 1.000000e+00 : f32
    %73 = vector.broadcast %cst_16 : f32 to vector<8x128xf32>
    %74 = arith.addf %73, %72 : vector<8x128xf32>
    %75 = arith.divf %73, %74 : vector<8x128xf32>
    %76 = vector.extract_strided_slice %69 {offsets = [0, 128], sizes = [8, 128], strides = [1, 1]} : vector<8x512xf32> to vector<8x128xf32>
    %77 = arith.negf %76 : vector<8x128xf32>
    %78 = math.exp %77 : vector<8x128xf32>
    %cst_17 = arith.constant 1.000000e+00 : f32
    %79 = vector.broadcast %cst_17 : f32 to vector<8x128xf32>
    %80 = arith.addf %79, %78 : vector<8x128xf32>
    %81 = arith.divf %79, %80 : vector<8x128xf32>
    %82 = vector.extract_strided_slice %69 {offsets = [0, 256], sizes = [8, 128], strides = [1, 1]} : vector<8x512xf32> to vector<8x128xf32>
    %83 = math.tanh %82 : vector<8x128xf32>
    %84 = vector.extract_strided_slice %69 {offsets = [0, 384], sizes = [8, 128], strides = [1, 1]} : vector<8x512xf32> to vector<8x128xf32>
    %85 = arith.negf %84 : vector<8x128xf32>
    %86 = math.exp %85 : vector<8x128xf32>
    %cst_18 = arith.constant 1.000000e+00 : f32
    %87 = vector.broadcast %cst_18 : f32 to vector<8x128xf32>
    %88 = arith.addf %87, %86 : vector<8x128xf32>
    %89 = arith.divf %87, %88 : vector<8x128xf32>
    %90 = arith.mulf %81, %64 : vector<8x128xf32>
    %91 = arith.mulf %75, %83 : vector<8x128xf32>
    %92 = arith.addf %90, %91 : vector<8x128xf32>
    %93 = math.tanh %92 : vector<8x128xf32>
    %94 = arith.mulf %89, %93 : vector<8x128xf32>
    %95 = vector.extract_strided_slice %7 {offsets = [24, 0], sizes = [8, 512], strides = [1, 1]} : vector<64x512xf32> to vector<8x512xf32>
    %cst_19 = arith.constant dense<0.000000e+00> : vector<8x512xf32>
    %96 = tpu.matmul %94, %8, %cst_19 {dimension_numbers = #tpu.dot_dimension_numbers<[1], [0], [0], [1], [0, 0, 1, 1], [], []>} : vector<8x128xf32>, vector<128x512xf32>, vector<8x512xf32> -> vector<8x512xf32>
    %97 = arith.addf %95, %96 : vector<8x512xf32>
    %98 = vector.extract_strided_slice %97 {offsets = [0, 0], sizes = [8, 128], strides = [1, 1]} : vector<8x512xf32> to vector<8x128xf32>
    %99 = arith.negf %98 : vector<8x128xf32>
    %100 = math.exp %99 : vector<8x128xf32>
    %cst_20 = arith.constant 1.000000e+00 : f32
    %101 = vector.broadcast %cst_20 : f32 to vector<8x128xf32>
    %102 = arith.addf %101, %100 : vector<8x128xf32>
    %103 = arith.divf %101, %102 : vector<8x128xf32>
    %104 = vector.extract_strided_slice %97 {offsets = [0, 128], sizes = [8, 128], strides = [1, 1]} : vector<8x512xf32> to vector<8x128xf32>
    %105 = arith.negf %104 : vector<8x128xf32>
    %106 = math.exp %105 : vector<8x128xf32>
    %cst_21 = arith.constant 1.000000e+00 : f32
    %107 = vector.broadcast %cst_21 : f32 to vector<8x128xf32>
    %108 = arith.addf %107, %106 : vector<8x128xf32>
    %109 = arith.divf %107, %108 : vector<8x128xf32>
    %110 = vector.extract_strided_slice %97 {offsets = [0, 256], sizes = [8, 128], strides = [1, 1]} : vector<8x512xf32> to vector<8x128xf32>
    %111 = math.tanh %110 : vector<8x128xf32>
    %112 = vector.extract_strided_slice %97 {offsets = [0, 384], sizes = [8, 128], strides = [1, 1]} : vector<8x512xf32> to vector<8x128xf32>
    %113 = arith.negf %112 : vector<8x128xf32>
    %114 = math.exp %113 : vector<8x128xf32>
    %cst_22 = arith.constant 1.000000e+00 : f32
    %115 = vector.broadcast %cst_22 : f32 to vector<8x128xf32>
    %116 = arith.addf %115, %114 : vector<8x128xf32>
    %117 = arith.divf %115, %116 : vector<8x128xf32>
    %118 = arith.mulf %109, %92 : vector<8x128xf32>
    %119 = arith.mulf %103, %111 : vector<8x128xf32>
    %120 = arith.addf %118, %119 : vector<8x128xf32>
    %121 = math.tanh %120 : vector<8x128xf32>
    %122 = arith.mulf %117, %121 : vector<8x128xf32>
    %123 = vector.extract_strided_slice %7 {offsets = [32, 0], sizes = [8, 512], strides = [1, 1]} : vector<64x512xf32> to vector<8x512xf32>
    %cst_23 = arith.constant dense<0.000000e+00> : vector<8x512xf32>
    %124 = tpu.matmul %122, %8, %cst_23 {dimension_numbers = #tpu.dot_dimension_numbers<[1], [0], [0], [1], [0, 0, 1, 1], [], []>} : vector<8x128xf32>, vector<128x512xf32>, vector<8x512xf32> -> vector<8x512xf32>
    %125 = arith.addf %123, %124 : vector<8x512xf32>
    %126 = vector.extract_strided_slice %125 {offsets = [0, 0], sizes = [8, 128], strides = [1, 1]} : vector<8x512xf32> to vector<8x128xf32>
    %127 = arith.negf %126 : vector<8x128xf32>
    %128 = math.exp %127 : vector<8x128xf32>
    %cst_24 = arith.constant 1.000000e+00 : f32
    %129 = vector.broadcast %cst_24 : f32 to vector<8x128xf32>
    %130 = arith.addf %129, %128 : vector<8x128xf32>
    %131 = arith.divf %129, %130 : vector<8x128xf32>
    %132 = vector.extract_strided_slice %125 {offsets = [0, 128], sizes = [8, 128], strides = [1, 1]} : vector<8x512xf32> to vector<8x128xf32>
    %133 = arith.negf %132 : vector<8x128xf32>
    %134 = math.exp %133 : vector<8x128xf32>
    %cst_25 = arith.constant 1.000000e+00 : f32
    %135 = vector.broadcast %cst_25 : f32 to vector<8x128xf32>
    %136 = arith.addf %135, %134 : vector<8x128xf32>
    %137 = arith.divf %135, %136 : vector<8x128xf32>
    %138 = vector.extract_strided_slice %125 {offsets = [0, 256], sizes = [8, 128], strides = [1, 1]} : vector<8x512xf32> to vector<8x128xf32>
    %139 = math.tanh %138 : vector<8x128xf32>
    %140 = vector.extract_strided_slice %125 {offsets = [0, 384], sizes = [8, 128], strides = [1, 1]} : vector<8x512xf32> to vector<8x128xf32>
    %141 = arith.negf %140 : vector<8x128xf32>
    %142 = math.exp %141 : vector<8x128xf32>
    %cst_26 = arith.constant 1.000000e+00 : f32
    %143 = vector.broadcast %cst_26 : f32 to vector<8x128xf32>
    %144 = arith.addf %143, %142 : vector<8x128xf32>
    %145 = arith.divf %143, %144 : vector<8x128xf32>
    %146 = arith.mulf %137, %120 : vector<8x128xf32>
    %147 = arith.mulf %131, %139 : vector<8x128xf32>
    %148 = arith.addf %146, %147 : vector<8x128xf32>
    %149 = math.tanh %148 : vector<8x128xf32>
    %150 = arith.mulf %145, %149 : vector<8x128xf32>
    %151 = vector.extract_strided_slice %7 {offsets = [40, 0], sizes = [8, 512], strides = [1, 1]} : vector<64x512xf32> to vector<8x512xf32>
    %cst_27 = arith.constant dense<0.000000e+00> : vector<8x512xf32>
    %152 = tpu.matmul %150, %8, %cst_27 {dimension_numbers = #tpu.dot_dimension_numbers<[1], [0], [0], [1], [0, 0, 1, 1], [], []>} : vector<8x128xf32>, vector<128x512xf32>, vector<8x512xf32> -> vector<8x512xf32>
    %153 = arith.addf %151, %152 : vector<8x512xf32>
    %154 = vector.extract_strided_slice %153 {offsets = [0, 0], sizes = [8, 128], strides = [1, 1]} : vector<8x512xf32> to vector<8x128xf32>
    %155 = arith.negf %154 : vector<8x128xf32>
    %156 = math.exp %155 : vector<8x128xf32>
    %cst_28 = arith.constant 1.000000e+00 : f32
    %157 = vector.broadcast %cst_28 : f32 to vector<8x128xf32>
    %158 = arith.addf %157, %156 : vector<8x128xf32>
    %159 = arith.divf %157, %158 : vector<8x128xf32>
    %160 = vector.extract_strided_slice %153 {offsets = [0, 128], sizes = [8, 128], strides = [1, 1]} : vector<8x512xf32> to vector<8x128xf32>
    %161 = arith.negf %160 : vector<8x128xf32>
    %162 = math.exp %161 : vector<8x128xf32>
    %cst_29 = arith.constant 1.000000e+00 : f32
    %163 = vector.broadcast %cst_29 : f32 to vector<8x128xf32>
    %164 = arith.addf %163, %162 : vector<8x128xf32>
    %165 = arith.divf %163, %164 : vector<8x128xf32>
    %166 = vector.extract_strided_slice %153 {offsets = [0, 256], sizes = [8, 128], strides = [1, 1]} : vector<8x512xf32> to vector<8x128xf32>
    %167 = math.tanh %166 : vector<8x128xf32>
    %168 = vector.extract_strided_slice %153 {offsets = [0, 384], sizes = [8, 128], strides = [1, 1]} : vector<8x512xf32> to vector<8x128xf32>
    %169 = arith.negf %168 : vector<8x128xf32>
    %170 = math.exp %169 : vector<8x128xf32>
    %cst_30 = arith.constant 1.000000e+00 : f32
    %171 = vector.broadcast %cst_30 : f32 to vector<8x128xf32>
    %172 = arith.addf %171, %170 : vector<8x128xf32>
    %173 = arith.divf %171, %172 : vector<8x128xf32>
    %174 = arith.mulf %165, %148 : vector<8x128xf32>
    %175 = arith.mulf %159, %167 : vector<8x128xf32>
    %176 = arith.addf %174, %175 : vector<8x128xf32>
    %177 = math.tanh %176 : vector<8x128xf32>
    %178 = arith.mulf %173, %177 : vector<8x128xf32>
    %179 = vector.extract_strided_slice %7 {offsets = [48, 0], sizes = [8, 512], strides = [1, 1]} : vector<64x512xf32> to vector<8x512xf32>
    %cst_31 = arith.constant dense<0.000000e+00> : vector<8x512xf32>
    %180 = tpu.matmul %178, %8, %cst_31 {dimension_numbers = #tpu.dot_dimension_numbers<[1], [0], [0], [1], [0, 0, 1, 1], [], []>} : vector<8x128xf32>, vector<128x512xf32>, vector<8x512xf32> -> vector<8x512xf32>
    %181 = arith.addf %179, %180 : vector<8x512xf32>
    %182 = vector.extract_strided_slice %181 {offsets = [0, 0], sizes = [8, 128], strides = [1, 1]} : vector<8x512xf32> to vector<8x128xf32>
    %183 = arith.negf %182 : vector<8x128xf32>
    %184 = math.exp %183 : vector<8x128xf32>
    %cst_32 = arith.constant 1.000000e+00 : f32
    %185 = vector.broadcast %cst_32 : f32 to vector<8x128xf32>
    %186 = arith.addf %185, %184 : vector<8x128xf32>
    %187 = arith.divf %185, %186 : vector<8x128xf32>
    %188 = vector.extract_strided_slice %181 {offsets = [0, 128], sizes = [8, 128], strides = [1, 1]} : vector<8x512xf32> to vector<8x128xf32>
    %189 = arith.negf %188 : vector<8x128xf32>
    %190 = math.exp %189 : vector<8x128xf32>
    %cst_33 = arith.constant 1.000000e+00 : f32
    %191 = vector.broadcast %cst_33 : f32 to vector<8x128xf32>
    %192 = arith.addf %191, %190 : vector<8x128xf32>
    %193 = arith.divf %191, %192 : vector<8x128xf32>
    %194 = vector.extract_strided_slice %181 {offsets = [0, 256], sizes = [8, 128], strides = [1, 1]} : vector<8x512xf32> to vector<8x128xf32>
    %195 = math.tanh %194 : vector<8x128xf32>
    %196 = vector.extract_strided_slice %181 {offsets = [0, 384], sizes = [8, 128], strides = [1, 1]} : vector<8x512xf32> to vector<8x128xf32>
    %197 = arith.negf %196 : vector<8x128xf32>
    %198 = math.exp %197 : vector<8x128xf32>
    %cst_34 = arith.constant 1.000000e+00 : f32
    %199 = vector.broadcast %cst_34 : f32 to vector<8x128xf32>
    %200 = arith.addf %199, %198 : vector<8x128xf32>
    %201 = arith.divf %199, %200 : vector<8x128xf32>
    %202 = arith.mulf %193, %176 : vector<8x128xf32>
    %203 = arith.mulf %187, %195 : vector<8x128xf32>
    %204 = arith.addf %202, %203 : vector<8x128xf32>
    %205 = math.tanh %204 : vector<8x128xf32>
    %206 = arith.mulf %201, %205 : vector<8x128xf32>
    %207 = vector.extract_strided_slice %7 {offsets = [56, 0], sizes = [8, 512], strides = [1, 1]} : vector<64x512xf32> to vector<8x512xf32>
    %cst_35 = arith.constant dense<0.000000e+00> : vector<8x512xf32>
    %208 = tpu.matmul %206, %8, %cst_35 {dimension_numbers = #tpu.dot_dimension_numbers<[1], [0], [0], [1], [0, 0, 1, 1], [], []>} : vector<8x128xf32>, vector<128x512xf32>, vector<8x512xf32> -> vector<8x512xf32>
    %209 = arith.addf %207, %208 : vector<8x512xf32>
    %210 = vector.extract_strided_slice %209 {offsets = [0, 0], sizes = [8, 128], strides = [1, 1]} : vector<8x512xf32> to vector<8x128xf32>
    %211 = arith.negf %210 : vector<8x128xf32>
    %212 = math.exp %211 : vector<8x128xf32>
    %cst_36 = arith.constant 1.000000e+00 : f32
    %213 = vector.broadcast %cst_36 : f32 to vector<8x128xf32>
    %214 = arith.addf %213, %212 : vector<8x128xf32>
    %215 = arith.divf %213, %214 : vector<8x128xf32>
    %216 = vector.extract_strided_slice %209 {offsets = [0, 128], sizes = [8, 128], strides = [1, 1]} : vector<8x512xf32> to vector<8x128xf32>
    %217 = arith.negf %216 : vector<8x128xf32>
    %218 = math.exp %217 : vector<8x128xf32>
    %cst_37 = arith.constant 1.000000e+00 : f32
    %219 = vector.broadcast %cst_37 : f32 to vector<8x128xf32>
    %220 = arith.addf %219, %218 : vector<8x128xf32>
    %221 = arith.divf %219, %220 : vector<8x128xf32>
    %222 = vector.extract_strided_slice %209 {offsets = [0, 256], sizes = [8, 128], strides = [1, 1]} : vector<8x512xf32> to vector<8x128xf32>
    %223 = math.tanh %222 : vector<8x128xf32>
    %224 = vector.extract_strided_slice %209 {offsets = [0, 384], sizes = [8, 128], strides = [1, 1]} : vector<8x512xf32> to vector<8x128xf32>
    %225 = arith.negf %224 : vector<8x128xf32>
    %226 = math.exp %225 : vector<8x128xf32>
    %cst_38 = arith.constant 1.000000e+00 : f32
    %227 = vector.broadcast %cst_38 : f32 to vector<8x128xf32>
    %228 = arith.addf %227, %226 : vector<8x128xf32>
    %229 = arith.divf %227, %228 : vector<8x128xf32>
    %230 = arith.mulf %221, %204 : vector<8x128xf32>
    %231 = arith.mulf %215, %223 : vector<8x128xf32>
    %232 = arith.addf %230, %231 : vector<8x128xf32>
    %233 = math.tanh %232 : vector<8x128xf32>
    %234 = arith.mulf %229, %233 : vector<8x128xf32>
    %c0_39 = arith.constant 0 : index
    %c0_40 = arith.constant 0 : index
    %235 = vector.load %arg4[%c0_39, %c0_40] : memref<128x512xf32, #tpu.memory_space<vmem>>, vector<128x512xf32>
    %c0_41 = arith.constant 0 : index
    %c0_42 = arith.constant 0 : index
    %236 = vector.load %arg3[%c0_41, %c0_42] : memref<128x512xf32, #tpu.memory_space<vmem>>, vector<128x512xf32>
    %c0_43 = arith.constant 0 : index
    %c0_44 = arith.constant 0 : index
    %237 = vector.load %arg5[%c0_43, %c0_44] : memref<128x128xf32, #tpu.memory_space<vmem>>, vector<128x128xf32>
    %c0_45 = arith.constant 0 : index
    %c0_46 = arith.constant 0 : index
    %238 = vector.load %arg6[%c0_45, %c0_46] : memref<8x128xf32, #tpu.memory_space<vmem>>, vector<8x128xf32>
    %239 = tpu.iota {dimensions = array<i32: 1>} : vector<8x128xi32>
    %240 = vector.extract_strided_slice %5 {offsets = [0, 0], sizes = [8, 128], strides = [1, 1]} : vector<64x128xf32> to vector<8x128xf32>
    %cst_47 = arith.constant dense<0.000000e+00> : vector<8x512xf32>
    %241 = tpu.matmul %240, %236, %cst_47 {dimension_numbers = #tpu.dot_dimension_numbers<[1], [0], [0], [1], [0, 0, 1, 1], [], []>} : vector<8x128xf32>, vector<128x512xf32>, vector<8x512xf32> -> vector<8x512xf32>
    %cst_48 = arith.constant dense<0.000000e+00> : vector<8x512xf32>
    %242 = tpu.matmul %234, %235, %cst_48 {dimension_numbers = #tpu.dot_dimension_numbers<[1], [0], [0], [1], [0, 0, 1, 1], [], []>} : vector<8x128xf32>, vector<128x512xf32>, vector<8x512xf32> -> vector<8x512xf32>
    %243 = arith.addf %241, %242 : vector<8x512xf32>
    %244 = vector.extract_strided_slice %243 {offsets = [0, 0], sizes = [8, 128], strides = [1, 1]} : vector<8x512xf32> to vector<8x128xf32>
    %245 = arith.negf %244 : vector<8x128xf32>
    %246 = math.exp %245 : vector<8x128xf32>
    %cst_49 = arith.constant 1.000000e+00 : f32
    %247 = vector.broadcast %cst_49 : f32 to vector<8x128xf32>
    %248 = arith.addf %247, %246 : vector<8x128xf32>
    %249 = arith.divf %247, %248 : vector<8x128xf32>
    %250 = vector.extract_strided_slice %243 {offsets = [0, 128], sizes = [8, 128], strides = [1, 1]} : vector<8x512xf32> to vector<8x128xf32>
    %251 = arith.negf %250 : vector<8x128xf32>
    %252 = math.exp %251 : vector<8x128xf32>
    %cst_50 = arith.constant 1.000000e+00 : f32
    %253 = vector.broadcast %cst_50 : f32 to vector<8x128xf32>
    %254 = arith.addf %253, %252 : vector<8x128xf32>
    %255 = arith.divf %253, %254 : vector<8x128xf32>
    %256 = vector.extract_strided_slice %243 {offsets = [0, 256], sizes = [8, 128], strides = [1, 1]} : vector<8x512xf32> to vector<8x128xf32>
    %257 = math.tanh %256 : vector<8x128xf32>
    %258 = vector.extract_strided_slice %243 {offsets = [0, 384], sizes = [8, 128], strides = [1, 1]} : vector<8x512xf32> to vector<8x128xf32>
    %259 = arith.negf %258 : vector<8x128xf32>
    %260 = math.exp %259 : vector<8x128xf32>
    %cst_51 = arith.constant 1.000000e+00 : f32
    %261 = vector.broadcast %cst_51 : f32 to vector<8x128xf32>
    %262 = arith.addf %261, %260 : vector<8x128xf32>
    %263 = arith.divf %261, %262 : vector<8x128xf32>
    %264 = arith.mulf %255, %232 : vector<8x128xf32>
    %265 = arith.mulf %249, %257 : vector<8x128xf32>
    %266 = arith.addf %264, %265 : vector<8x128xf32>
    %267 = math.tanh %266 : vector<8x128xf32>
    %268 = arith.mulf %263, %267 : vector<8x128xf32>
    %cst_52 = arith.constant dense<0.000000e+00> : vector<8x512xf32>
    %269 = tpu.matmul %268, %235, %cst_52 {dimension_numbers = #tpu.dot_dimension_numbers<[1], [0], [0], [1], [0, 0, 1, 1], [], []>} : vector<8x128xf32>, vector<128x512xf32>, vector<8x512xf32> -> vector<8x512xf32>
    %cst_53 = arith.constant dense<0.000000e+00> : vector<8x128xf32>
    %270 = tpu.matmul %268, %237, %cst_53 {dimension_numbers = #tpu.dot_dimension_numbers<[1], [0], [0], [1], [0, 0, 1, 1], [], []>} : vector<8x128xf32>, vector<128x128xf32>, vector<8x128xf32> -> vector<8x128xf32>
    %271 = arith.addf %270, %238 : vector<8x128xf32>
    %c0_54 = arith.constant 0 : index
    %c0_55 = arith.constant 0 : index
    %c0_56 = arith.constant 0 : index
    %272 = vector.load %arg7[%c0_54, %c0_55, %c0_56] : memref<8x8x128xf32, #tpu.memory_space<vmem>>, vector<1x8x128xf32>
    %273 = vector.shape_cast %272 : vector<1x8x128xf32> to vector<8x128xf32>
    %274 = vector.shape_cast %271 : vector<8x128xf32> to vector<1x8x128xf32>
    tpu.vector_store %arg7[%c0_54, %c0_55, %c0_56], %274 {strides = array<i32>} : memref<8x8x128xf32, #tpu.memory_space<vmem>>, vector<1x8x128xf32>,
    %cst_57 = arith.constant dense<0xFF800000> : vector<8xf32>
    %275 = vector.multi_reduction <maximumf>, %271, %cst_57 [1] : vector<8x128xf32> to vector<8xf32>
    %276 = vector.shape_cast %275 : vector<8xf32> to vector<8x1xf32>
    %277 = vector.broadcast %276 : vector<8x1xf32> to vector<8x128xf32>
    %278 = arith.cmpf oge, %271, %277 : vector<8x128xf32>
    %c128_i32 = arith.constant 128 : i32
    %279 = vector.broadcast %c128_i32 : i32 to vector<8x128xi32>
    %280 = arith.select %278, %239, %279 : vector<8x128xi1>, vector<8x128xi32>
    %cst_58 = arith.constant dense<2147483647> : vector<8xi32>
    %281 = vector.multi_reduction <minsi>, %280, %cst_58 [1] : vector<8x128xi32> to vector<8xi32>
    %282 = vector.shape_cast %281 : vector<8xi32> to vector<8x1xi32>
    %283 = vector.broadcast %282 : vector<8x1xi32> to vector<8x128xi32>
    %284 = arith.cmpi eq, %239, %283 : vector<8x128xi32>
    %285 = arith.extui %284 : vector<8x128xi1> to vector<8x128xi32>
    %286 = arith.sitofp %285 : vector<8x128xi32> to vector<8x128xf32>
    %cst_59 = arith.constant dense<0.000000e+00> : vector<8x512xf32>
    %287 = tpu.matmul %286, %236, %cst_59 {dimension_numbers = #tpu.dot_dimension_numbers<[1], [0], [0], [1], [0, 0, 1, 1], [], []>} : vector<8x128xf32>, vector<128x512xf32>, vector<8x512xf32> -> vector<8x512xf32>
    %288 = arith.addf %287, %269 : vector<8x512xf32>
    %289 = vector.extract_strided_slice %288 {offsets = [0, 0], sizes = [8, 128], strides = [1, 1]} : vector<8x512xf32> to vector<8x128xf32>
    %290 = arith.negf %289 : vector<8x128xf32>
    %291 = math.exp %290 : vector<8x128xf32>
    %cst_60 = arith.constant 1.000000e+00 : f32
    %292 = vector.broadcast %cst_60 : f32 to vector<8x128xf32>
    %293 = arith.addf %292, %291 : vector<8x128xf32>
    %294 = arith.divf %292, %293 : vector<8x128xf32>
    %295 = vector.extract_strided_slice %288 {offsets = [0, 128], sizes = [8, 128], strides = [1, 1]} : vector<8x512xf32> to vector<8x128xf32>
    %296 = arith.negf %295 : vector<8x128xf32>
    %297 = math.exp %296 : vector<8x128xf32>
    %cst_61 = arith.constant 1.000000e+00 : f32
    %298 = vector.broadcast %cst_61 : f32 to vector<8x128xf32>
    %299 = arith.addf %298, %297 : vector<8x128xf32>
    %300 = arith.divf %298, %299 : vector<8x128xf32>
    %301 = vector.extract_strided_slice %288 {offsets = [0, 256], sizes = [8, 128], strides = [1, 1]} : vector<8x512xf32> to vector<8x128xf32>
    %302 = math.tanh %301 : vector<8x128xf32>
    %303 = vector.extract_strided_slice %288 {offsets = [0, 384], sizes = [8, 128], strides = [1, 1]} : vector<8x512xf32> to vector<8x128xf32>
    %304 = arith.negf %303 : vector<8x128xf32>
    %305 = math.exp %304 : vector<8x128xf32>
    %cst_62 = arith.constant 1.000000e+00 : f32
    %306 = vector.broadcast %cst_62 : f32 to vector<8x128xf32>
    %307 = arith.addf %306, %305 : vector<8x128xf32>
    %308 = arith.divf %306, %307 : vector<8x128xf32>
    %309 = arith.mulf %300, %266 : vector<8x128xf32>
    %310 = arith.mulf %294, %302 : vector<8x128xf32>
    %311 = arith.addf %309, %310 : vector<8x128xf32>
    %312 = math.tanh %311 : vector<8x128xf32>
    %313 = arith.mulf %308, %312 : vector<8x128xf32>
    %cst_63 = arith.constant dense<0.000000e+00> : vector<8x512xf32>
    %314 = tpu.matmul %313, %235, %cst_63 {dimension_numbers = #tpu.dot_dimension_numbers<[1], [0], [0], [1], [0, 0, 1, 1], [], []>} : vector<8x128xf32>, vector<128x512xf32>, vector<8x512xf32> -> vector<8x512xf32>
    %cst_64 = arith.constant dense<0.000000e+00> : vector<8x128xf32>
    %315 = tpu.matmul %313, %237, %cst_64 {dimension_numbers = #tpu.dot_dimension_numbers<[1], [0], [0], [1], [0, 0, 1, 1], [], []>} : vector<8x128xf32>, vector<128x128xf32>, vector<8x128xf32> -> vector<8x128xf32>
    %316 = arith.addf %315, %238 : vector<8x128xf32>
    %c1 = arith.constant 1 : index
    %c0_65 = arith.constant 0 : index
    %c0_66 = arith.constant 0 : index
    %317 = vector.load %arg7[%c1, %c0_65, %c0_66] : memref<8x8x128xf32, #tpu.memory_space<vmem>>, vector<1x8x128xf32>
    %318 = vector.shape_cast %317 : vector<1x8x128xf32> to vector<8x128xf32>
    %319 = vector.shape_cast %316 : vector<8x128xf32> to vector<1x8x128xf32>
    tpu.vector_store %arg7[%c1, %c0_65, %c0_66], %319 {strides = array<i32>} : memref<8x8x128xf32, #tpu.memory_space<vmem>>, vector<1x8x128xf32>,
    %cst_67 = arith.constant dense<0xFF800000> : vector<8xf32>
    %320 = vector.multi_reduction <maximumf>, %316, %cst_67 [1] : vector<8x128xf32> to vector<8xf32>
    %321 = vector.shape_cast %320 : vector<8xf32> to vector<8x1xf32>
    %322 = vector.broadcast %321 : vector<8x1xf32> to vector<8x128xf32>
    %323 = arith.cmpf oge, %316, %322 : vector<8x128xf32>
    %c128_i32_68 = arith.constant 128 : i32
    %324 = vector.broadcast %c128_i32_68 : i32 to vector<8x128xi32>
    %325 = arith.select %323, %239, %324 : vector<8x128xi1>, vector<8x128xi32>
    %cst_69 = arith.constant dense<2147483647> : vector<8xi32>
    %326 = vector.multi_reduction <minsi>, %325, %cst_69 [1] : vector<8x128xi32> to vector<8xi32>
    %327 = vector.shape_cast %326 : vector<8xi32> to vector<8x1xi32>
    %328 = vector.broadcast %327 : vector<8x1xi32> to vector<8x128xi32>
    %329 = arith.cmpi eq, %239, %328 : vector<8x128xi32>
    %330 = arith.extui %329 : vector<8x128xi1> to vector<8x128xi32>
    %331 = arith.sitofp %330 : vector<8x128xi32> to vector<8x128xf32>
    %cst_70 = arith.constant dense<0.000000e+00> : vector<8x512xf32>
    %332 = tpu.matmul %331, %236, %cst_70 {dimension_numbers = #tpu.dot_dimension_numbers<[1], [0], [0], [1], [0, 0, 1, 1], [], []>} : vector<8x128xf32>, vector<128x512xf32>, vector<8x512xf32> -> vector<8x512xf32>
    %333 = arith.addf %332, %314 : vector<8x512xf32>
    %334 = vector.extract_strided_slice %333 {offsets = [0, 0], sizes = [8, 128], strides = [1, 1]} : vector<8x512xf32> to vector<8x128xf32>
    %335 = arith.negf %334 : vector<8x128xf32>
    %336 = math.exp %335 : vector<8x128xf32>
    %cst_71 = arith.constant 1.000000e+00 : f32
    %337 = vector.broadcast %cst_71 : f32 to vector<8x128xf32>
    %338 = arith.addf %337, %336 : vector<8x128xf32>
    %339 = arith.divf %337, %338 : vector<8x128xf32>
    %340 = vector.extract_strided_slice %333 {offsets = [0, 128], sizes = [8, 128], strides = [1, 1]} : vector<8x512xf32> to vector<8x128xf32>
    %341 = arith.negf %340 : vector<8x128xf32>
    %342 = math.exp %341 : vector<8x128xf32>
    %cst_72 = arith.constant 1.000000e+00 : f32
    %343 = vector.broadcast %cst_72 : f32 to vector<8x128xf32>
    %344 = arith.addf %343, %342 : vector<8x128xf32>
    %345 = arith.divf %343, %344 : vector<8x128xf32>
    %346 = vector.extract_strided_slice %333 {offsets = [0, 256], sizes = [8, 128], strides = [1, 1]} : vector<8x512xf32> to vector<8x128xf32>
    %347 = math.tanh %346 : vector<8x128xf32>
    %348 = vector.extract_strided_slice %333 {offsets = [0, 384], sizes = [8, 128], strides = [1, 1]} : vector<8x512xf32> to vector<8x128xf32>
    %349 = arith.negf %348 : vector<8x128xf32>
    %350 = math.exp %349 : vector<8x128xf32>
    %cst_73 = arith.constant 1.000000e+00 : f32
    %351 = vector.broadcast %cst_73 : f32 to vector<8x128xf32>
    %352 = arith.addf %351, %350 : vector<8x128xf32>
    %353 = arith.divf %351, %352 : vector<8x128xf32>
    %354 = arith.mulf %345, %311 : vector<8x128xf32>
    %355 = arith.mulf %339, %347 : vector<8x128xf32>
    %356 = arith.addf %354, %355 : vector<8x128xf32>
    %357 = math.tanh %356 : vector<8x128xf32>
    %358 = arith.mulf %353, %357 : vector<8x128xf32>
    %cst_74 = arith.constant dense<0.000000e+00> : vector<8x512xf32>
    %359 = tpu.matmul %358, %235, %cst_74 {dimension_numbers = #tpu.dot_dimension_numbers<[1], [0], [0], [1], [0, 0, 1, 1], [], []>} : vector<8x128xf32>, vector<128x512xf32>, vector<8x512xf32> -> vector<8x512xf32>
    %cst_75 = arith.constant dense<0.000000e+00> : vector<8x128xf32>
    %360 = tpu.matmul %358, %237, %cst_75 {dimension_numbers = #tpu.dot_dimension_numbers<[1], [0], [0], [1], [0, 0, 1, 1], [], []>} : vector<8x128xf32>, vector<128x128xf32>, vector<8x128xf32> -> vector<8x128xf32>
    %361 = arith.addf %360, %238 : vector<8x128xf32>
    %c2 = arith.constant 2 : index
    %c0_76 = arith.constant 0 : index
    %c0_77 = arith.constant 0 : index
    %362 = vector.load %arg7[%c2, %c0_76, %c0_77] : memref<8x8x128xf32, #tpu.memory_space<vmem>>, vector<1x8x128xf32>
    %363 = vector.shape_cast %362 : vector<1x8x128xf32> to vector<8x128xf32>
    %364 = vector.shape_cast %361 : vector<8x128xf32> to vector<1x8x128xf32>
    tpu.vector_store %arg7[%c2, %c0_76, %c0_77], %364 {strides = array<i32>} : memref<8x8x128xf32, #tpu.memory_space<vmem>>, vector<1x8x128xf32>,
    %cst_78 = arith.constant dense<0xFF800000> : vector<8xf32>
    %365 = vector.multi_reduction <maximumf>, %361, %cst_78 [1] : vector<8x128xf32> to vector<8xf32>
    %366 = vector.shape_cast %365 : vector<8xf32> to vector<8x1xf32>
    %367 = vector.broadcast %366 : vector<8x1xf32> to vector<8x128xf32>
    %368 = arith.cmpf oge, %361, %367 : vector<8x128xf32>
    %c128_i32_79 = arith.constant 128 : i32
    %369 = vector.broadcast %c128_i32_79 : i32 to vector<8x128xi32>
    %370 = arith.select %368, %239, %369 : vector<8x128xi1>, vector<8x128xi32>
    %cst_80 = arith.constant dense<2147483647> : vector<8xi32>
    %371 = vector.multi_reduction <minsi>, %370, %cst_80 [1] : vector<8x128xi32> to vector<8xi32>
    %372 = vector.shape_cast %371 : vector<8xi32> to vector<8x1xi32>
    %373 = vector.broadcast %372 : vector<8x1xi32> to vector<8x128xi32>
    %374 = arith.cmpi eq, %239, %373 : vector<8x128xi32>
    %375 = arith.extui %374 : vector<8x128xi1> to vector<8x128xi32>
    %376 = arith.sitofp %375 : vector<8x128xi32> to vector<8x128xf32>
    %cst_81 = arith.constant dense<0.000000e+00> : vector<8x512xf32>
    %377 = tpu.matmul %376, %236, %cst_81 {dimension_numbers = #tpu.dot_dimension_numbers<[1], [0], [0], [1], [0, 0, 1, 1], [], []>} : vector<8x128xf32>, vector<128x512xf32>, vector<8x512xf32> -> vector<8x512xf32>
    %378 = arith.addf %377, %359 : vector<8x512xf32>
    %379 = vector.extract_strided_slice %378 {offsets = [0, 0], sizes = [8, 128], strides = [1, 1]} : vector<8x512xf32> to vector<8x128xf32>
    %380 = arith.negf %379 : vector<8x128xf32>
    %381 = math.exp %380 : vector<8x128xf32>
    %cst_82 = arith.constant 1.000000e+00 : f32
    %382 = vector.broadcast %cst_82 : f32 to vector<8x128xf32>
    %383 = arith.addf %382, %381 : vector<8x128xf32>
    %384 = arith.divf %382, %383 : vector<8x128xf32>
    %385 = vector.extract_strided_slice %378 {offsets = [0, 128], sizes = [8, 128], strides = [1, 1]} : vector<8x512xf32> to vector<8x128xf32>
    %386 = arith.negf %385 : vector<8x128xf32>
    %387 = math.exp %386 : vector<8x128xf32>
    %cst_83 = arith.constant 1.000000e+00 : f32
    %388 = vector.broadcast %cst_83 : f32 to vector<8x128xf32>
    %389 = arith.addf %388, %387 : vector<8x128xf32>
    %390 = arith.divf %388, %389 : vector<8x128xf32>
    %391 = vector.extract_strided_slice %378 {offsets = [0, 256], sizes = [8, 128], strides = [1, 1]} : vector<8x512xf32> to vector<8x128xf32>
    %392 = math.tanh %391 : vector<8x128xf32>
    %393 = vector.extract_strided_slice %378 {offsets = [0, 384], sizes = [8, 128], strides = [1, 1]} : vector<8x512xf32> to vector<8x128xf32>
    %394 = arith.negf %393 : vector<8x128xf32>
    %395 = math.exp %394 : vector<8x128xf32>
    %cst_84 = arith.constant 1.000000e+00 : f32
    %396 = vector.broadcast %cst_84 : f32 to vector<8x128xf32>
    %397 = arith.addf %396, %395 : vector<8x128xf32>
    %398 = arith.divf %396, %397 : vector<8x128xf32>
    %399 = arith.mulf %390, %356 : vector<8x128xf32>
    %400 = arith.mulf %384, %392 : vector<8x128xf32>
    %401 = arith.addf %399, %400 : vector<8x128xf32>
    %402 = math.tanh %401 : vector<8x128xf32>
    %403 = arith.mulf %398, %402 : vector<8x128xf32>
    %cst_85 = arith.constant dense<0.000000e+00> : vector<8x512xf32>
    %404 = tpu.matmul %403, %235, %cst_85 {dimension_numbers = #tpu.dot_dimension_numbers<[1], [0], [0], [1], [0, 0, 1, 1], [], []>} : vector<8x128xf32>, vector<128x512xf32>, vector<8x512xf32> -> vector<8x512xf32>
    %cst_86 = arith.constant dense<0.000000e+00> : vector<8x128xf32>
    %405 = tpu.matmul %403, %237, %cst_86 {dimension_numbers = #tpu.dot_dimension_numbers<[1], [0], [0], [1], [0, 0, 1, 1], [], []>} : vector<8x128xf32>, vector<128x128xf32>, vector<8x128xf32> -> vector<8x128xf32>
    %406 = arith.addf %405, %238 : vector<8x128xf32>
    %c3 = arith.constant 3 : index
    %c0_87 = arith.constant 0 : index
    %c0_88 = arith.constant 0 : index
    %407 = vector.load %arg7[%c3, %c0_87, %c0_88] : memref<8x8x128xf32, #tpu.memory_space<vmem>>, vector<1x8x128xf32>
    %408 = vector.shape_cast %407 : vector<1x8x128xf32> to vector<8x128xf32>
    %409 = vector.shape_cast %406 : vector<8x128xf32> to vector<1x8x128xf32>
    tpu.vector_store %arg7[%c3, %c0_87, %c0_88], %409 {strides = array<i32>} : memref<8x8x128xf32, #tpu.memory_space<vmem>>, vector<1x8x128xf32>,
    %cst_89 = arith.constant dense<0xFF800000> : vector<8xf32>
    %410 = vector.multi_reduction <maximumf>, %406, %cst_89 [1] : vector<8x128xf32> to vector<8xf32>
    %411 = vector.shape_cast %410 : vector<8xf32> to vector<8x1xf32>
    %412 = vector.broadcast %411 : vector<8x1xf32> to vector<8x128xf32>
    %413 = arith.cmpf oge, %406, %412 : vector<8x128xf32>
    %c128_i32_90 = arith.constant 128 : i32
    %414 = vector.broadcast %c128_i32_90 : i32 to vector<8x128xi32>
    %415 = arith.select %413, %239, %414 : vector<8x128xi1>, vector<8x128xi32>
    %cst_91 = arith.constant dense<2147483647> : vector<8xi32>
    %416 = vector.multi_reduction <minsi>, %415, %cst_91 [1] : vector<8x128xi32> to vector<8xi32>
    %417 = vector.shape_cast %416 : vector<8xi32> to vector<8x1xi32>
    %418 = vector.broadcast %417 : vector<8x1xi32> to vector<8x128xi32>
    %419 = arith.cmpi eq, %239, %418 : vector<8x128xi32>
    %420 = arith.extui %419 : vector<8x128xi1> to vector<8x128xi32>
    %421 = arith.sitofp %420 : vector<8x128xi32> to vector<8x128xf32>
    %cst_92 = arith.constant dense<0.000000e+00> : vector<8x512xf32>
    %422 = tpu.matmul %421, %236, %cst_92 {dimension_numbers = #tpu.dot_dimension_numbers<[1], [0], [0], [1], [0, 0, 1, 1], [], []>} : vector<8x128xf32>, vector<128x512xf32>, vector<8x512xf32> -> vector<8x512xf32>
    %423 = arith.addf %422, %404 : vector<8x512xf32>
    %424 = vector.extract_strided_slice %423 {offsets = [0, 0], sizes = [8, 128], strides = [1, 1]} : vector<8x512xf32> to vector<8x128xf32>
    %425 = arith.negf %424 : vector<8x128xf32>
    %426 = math.exp %425 : vector<8x128xf32>
    %cst_93 = arith.constant 1.000000e+00 : f32
    %427 = vector.broadcast %cst_93 : f32 to vector<8x128xf32>
    %428 = arith.addf %427, %426 : vector<8x128xf32>
    %429 = arith.divf %427, %428 : vector<8x128xf32>
    %430 = vector.extract_strided_slice %423 {offsets = [0, 128], sizes = [8, 128], strides = [1, 1]} : vector<8x512xf32> to vector<8x128xf32>
    %431 = arith.negf %430 : vector<8x128xf32>
    %432 = math.exp %431 : vector<8x128xf32>
    %cst_94 = arith.constant 1.000000e+00 : f32
    %433 = vector.broadcast %cst_94 : f32 to vector<8x128xf32>
    %434 = arith.addf %433, %432 : vector<8x128xf32>
    %435 = arith.divf %433, %434 : vector<8x128xf32>
    %436 = vector.extract_strided_slice %423 {offsets = [0, 256], sizes = [8, 128], strides = [1, 1]} : vector<8x512xf32> to vector<8x128xf32>
    %437 = math.tanh %436 : vector<8x128xf32>
    %438 = vector.extract_strided_slice %423 {offsets = [0, 384], sizes = [8, 128], strides = [1, 1]} : vector<8x512xf32> to vector<8x128xf32>
    %439 = arith.negf %438 : vector<8x128xf32>
    %440 = math.exp %439 : vector<8x128xf32>
    %cst_95 = arith.constant 1.000000e+00 : f32
    %441 = vector.broadcast %cst_95 : f32 to vector<8x128xf32>
    %442 = arith.addf %441, %440 : vector<8x128xf32>
    %443 = arith.divf %441, %442 : vector<8x128xf32>
    %444 = arith.mulf %435, %401 : vector<8x128xf32>
    %445 = arith.mulf %429, %437 : vector<8x128xf32>
    %446 = arith.addf %444, %445 : vector<8x128xf32>
    %447 = math.tanh %446 : vector<8x128xf32>
    %448 = arith.mulf %443, %447 : vector<8x128xf32>
    %cst_96 = arith.constant dense<0.000000e+00> : vector<8x512xf32>
    %449 = tpu.matmul %448, %235, %cst_96 {dimension_numbers = #tpu.dot_dimension_numbers<[1], [0], [0], [1], [0, 0, 1, 1], [], []>} : vector<8x128xf32>, vector<128x512xf32>, vector<8x512xf32> -> vector<8x512xf32>
    %cst_97 = arith.constant dense<0.000000e+00> : vector<8x128xf32>
    %450 = tpu.matmul %448, %237, %cst_97 {dimension_numbers = #tpu.dot_dimension_numbers<[1], [0], [0], [1], [0, 0, 1, 1], [], []>} : vector<8x128xf32>, vector<128x128xf32>, vector<8x128xf32> -> vector<8x128xf32>
    %451 = arith.addf %450, %238 : vector<8x128xf32>
    %c4 = arith.constant 4 : index
    %c0_98 = arith.constant 0 : index
    %c0_99 = arith.constant 0 : index
    %452 = vector.load %arg7[%c4, %c0_98, %c0_99] : memref<8x8x128xf32, #tpu.memory_space<vmem>>, vector<1x8x128xf32>
    %453 = vector.shape_cast %452 : vector<1x8x128xf32> to vector<8x128xf32>
    %454 = vector.shape_cast %451 : vector<8x128xf32> to vector<1x8x128xf32>
    tpu.vector_store %arg7[%c4, %c0_98, %c0_99], %454 {strides = array<i32>} : memref<8x8x128xf32, #tpu.memory_space<vmem>>, vector<1x8x128xf32>,
    %cst_100 = arith.constant dense<0xFF800000> : vector<8xf32>
    %455 = vector.multi_reduction <maximumf>, %451, %cst_100 [1] : vector<8x128xf32> to vector<8xf32>
    %456 = vector.shape_cast %455 : vector<8xf32> to vector<8x1xf32>
    %457 = vector.broadcast %456 : vector<8x1xf32> to vector<8x128xf32>
    %458 = arith.cmpf oge, %451, %457 : vector<8x128xf32>
    %c128_i32_101 = arith.constant 128 : i32
    %459 = vector.broadcast %c128_i32_101 : i32 to vector<8x128xi32>
    %460 = arith.select %458, %239, %459 : vector<8x128xi1>, vector<8x128xi32>
    %cst_102 = arith.constant dense<2147483647> : vector<8xi32>
    %461 = vector.multi_reduction <minsi>, %460, %cst_102 [1] : vector<8x128xi32> to vector<8xi32>
    %462 = vector.shape_cast %461 : vector<8xi32> to vector<8x1xi32>
    %463 = vector.broadcast %462 : vector<8x1xi32> to vector<8x128xi32>
    %464 = arith.cmpi eq, %239, %463 : vector<8x128xi32>
    %465 = arith.extui %464 : vector<8x128xi1> to vector<8x128xi32>
    %466 = arith.sitofp %465 : vector<8x128xi32> to vector<8x128xf32>
    %cst_103 = arith.constant dense<0.000000e+00> : vector<8x512xf32>
    %467 = tpu.matmul %466, %236, %cst_103 {dimension_numbers = #tpu.dot_dimension_numbers<[1], [0], [0], [1], [0, 0, 1, 1], [], []>} : vector<8x128xf32>, vector<128x512xf32>, vector<8x512xf32> -> vector<8x512xf32>
    %468 = arith.addf %467, %449 : vector<8x512xf32>
    %469 = vector.extract_strided_slice %468 {offsets = [0, 0], sizes = [8, 128], strides = [1, 1]} : vector<8x512xf32> to vector<8x128xf32>
    %470 = arith.negf %469 : vector<8x128xf32>
    %471 = math.exp %470 : vector<8x128xf32>
    %cst_104 = arith.constant 1.000000e+00 : f32
    %472 = vector.broadcast %cst_104 : f32 to vector<8x128xf32>
    %473 = arith.addf %472, %471 : vector<8x128xf32>
    %474 = arith.divf %472, %473 : vector<8x128xf32>
    %475 = vector.extract_strided_slice %468 {offsets = [0, 128], sizes = [8, 128], strides = [1, 1]} : vector<8x512xf32> to vector<8x128xf32>
    %476 = arith.negf %475 : vector<8x128xf32>
    %477 = math.exp %476 : vector<8x128xf32>
    %cst_105 = arith.constant 1.000000e+00 : f32
    %478 = vector.broadcast %cst_105 : f32 to vector<8x128xf32>
    %479 = arith.addf %478, %477 : vector<8x128xf32>
    %480 = arith.divf %478, %479 : vector<8x128xf32>
    %481 = vector.extract_strided_slice %468 {offsets = [0, 256], sizes = [8, 128], strides = [1, 1]} : vector<8x512xf32> to vector<8x128xf32>
    %482 = math.tanh %481 : vector<8x128xf32>
    %483 = vector.extract_strided_slice %468 {offsets = [0, 384], sizes = [8, 128], strides = [1, 1]} : vector<8x512xf32> to vector<8x128xf32>
    %484 = arith.negf %483 : vector<8x128xf32>
    %485 = math.exp %484 : vector<8x128xf32>
    %cst_106 = arith.constant 1.000000e+00 : f32
    %486 = vector.broadcast %cst_106 : f32 to vector<8x128xf32>
    %487 = arith.addf %486, %485 : vector<8x128xf32>
    %488 = arith.divf %486, %487 : vector<8x128xf32>
    %489 = arith.mulf %480, %446 : vector<8x128xf32>
    %490 = arith.mulf %474, %482 : vector<8x128xf32>
    %491 = arith.addf %489, %490 : vector<8x128xf32>
    %492 = math.tanh %491 : vector<8x128xf32>
    %493 = arith.mulf %488, %492 : vector<8x128xf32>
    %cst_107 = arith.constant dense<0.000000e+00> : vector<8x512xf32>
    %494 = tpu.matmul %493, %235, %cst_107 {dimension_numbers = #tpu.dot_dimension_numbers<[1], [0], [0], [1], [0, 0, 1, 1], [], []>} : vector<8x128xf32>, vector<128x512xf32>, vector<8x512xf32> -> vector<8x512xf32>
    %cst_108 = arith.constant dense<0.000000e+00> : vector<8x128xf32>
    %495 = tpu.matmul %493, %237, %cst_108 {dimension_numbers = #tpu.dot_dimension_numbers<[1], [0], [0], [1], [0, 0, 1, 1], [], []>} : vector<8x128xf32>, vector<128x128xf32>, vector<8x128xf32> -> vector<8x128xf32>
    %496 = arith.addf %495, %238 : vector<8x128xf32>
    %c5 = arith.constant 5 : index
    %c0_109 = arith.constant 0 : index
    %c0_110 = arith.constant 0 : index
    %497 = vector.load %arg7[%c5, %c0_109, %c0_110] : memref<8x8x128xf32, #tpu.memory_space<vmem>>, vector<1x8x128xf32>
    %498 = vector.shape_cast %497 : vector<1x8x128xf32> to vector<8x128xf32>
    %499 = vector.shape_cast %496 : vector<8x128xf32> to vector<1x8x128xf32>
    tpu.vector_store %arg7[%c5, %c0_109, %c0_110], %499 {strides = array<i32>} : memref<8x8x128xf32, #tpu.memory_space<vmem>>, vector<1x8x128xf32>,
    %cst_111 = arith.constant dense<0xFF800000> : vector<8xf32>
    %500 = vector.multi_reduction <maximumf>, %496, %cst_111 [1] : vector<8x128xf32> to vector<8xf32>
    %501 = vector.shape_cast %500 : vector<8xf32> to vector<8x1xf32>
    %502 = vector.broadcast %501 : vector<8x1xf32> to vector<8x128xf32>
    %503 = arith.cmpf oge, %496, %502 : vector<8x128xf32>
    %c128_i32_112 = arith.constant 128 : i32
    %504 = vector.broadcast %c128_i32_112 : i32 to vector<8x128xi32>
    %505 = arith.select %503, %239, %504 : vector<8x128xi1>, vector<8x128xi32>
    %cst_113 = arith.constant dense<2147483647> : vector<8xi32>
    %506 = vector.multi_reduction <minsi>, %505, %cst_113 [1] : vector<8x128xi32> to vector<8xi32>
    %507 = vector.shape_cast %506 : vector<8xi32> to vector<8x1xi32>
    %508 = vector.broadcast %507 : vector<8x1xi32> to vector<8x128xi32>
    %509 = arith.cmpi eq, %239, %508 : vector<8x128xi32>
    %510 = arith.extui %509 : vector<8x128xi1> to vector<8x128xi32>
    %511 = arith.sitofp %510 : vector<8x128xi32> to vector<8x128xf32>
    %cst_114 = arith.constant dense<0.000000e+00> : vector<8x512xf32>
    %512 = tpu.matmul %511, %236, %cst_114 {dimension_numbers = #tpu.dot_dimension_numbers<[1], [0], [0], [1], [0, 0, 1, 1], [], []>} : vector<8x128xf32>, vector<128x512xf32>, vector<8x512xf32> -> vector<8x512xf32>
    %513 = arith.addf %512, %494 : vector<8x512xf32>
    %514 = vector.extract_strided_slice %513 {offsets = [0, 0], sizes = [8, 128], strides = [1, 1]} : vector<8x512xf32> to vector<8x128xf32>
    %515 = arith.negf %514 : vector<8x128xf32>
    %516 = math.exp %515 : vector<8x128xf32>
    %cst_115 = arith.constant 1.000000e+00 : f32
    %517 = vector.broadcast %cst_115 : f32 to vector<8x128xf32>
    %518 = arith.addf %517, %516 : vector<8x128xf32>
    %519 = arith.divf %517, %518 : vector<8x128xf32>
    %520 = vector.extract_strided_slice %513 {offsets = [0, 128], sizes = [8, 128], strides = [1, 1]} : vector<8x512xf32> to vector<8x128xf32>
    %521 = arith.negf %520 : vector<8x128xf32>
    %522 = math.exp %521 : vector<8x128xf32>
    %cst_116 = arith.constant 1.000000e+00 : f32
    %523 = vector.broadcast %cst_116 : f32 to vector<8x128xf32>
    %524 = arith.addf %523, %522 : vector<8x128xf32>
    %525 = arith.divf %523, %524 : vector<8x128xf32>
    %526 = vector.extract_strided_slice %513 {offsets = [0, 256], sizes = [8, 128], strides = [1, 1]} : vector<8x512xf32> to vector<8x128xf32>
    %527 = math.tanh %526 : vector<8x128xf32>
    %528 = vector.extract_strided_slice %513 {offsets = [0, 384], sizes = [8, 128], strides = [1, 1]} : vector<8x512xf32> to vector<8x128xf32>
    %529 = arith.negf %528 : vector<8x128xf32>
    %530 = math.exp %529 : vector<8x128xf32>
    %cst_117 = arith.constant 1.000000e+00 : f32
    %531 = vector.broadcast %cst_117 : f32 to vector<8x128xf32>
    %532 = arith.addf %531, %530 : vector<8x128xf32>
    %533 = arith.divf %531, %532 : vector<8x128xf32>
    %534 = arith.mulf %525, %491 : vector<8x128xf32>
    %535 = arith.mulf %519, %527 : vector<8x128xf32>
    %536 = arith.addf %534, %535 : vector<8x128xf32>
    %537 = math.tanh %536 : vector<8x128xf32>
    %538 = arith.mulf %533, %537 : vector<8x128xf32>
    %cst_118 = arith.constant dense<0.000000e+00> : vector<8x512xf32>
    %539 = tpu.matmul %538, %235, %cst_118 {dimension_numbers = #tpu.dot_dimension_numbers<[1], [0], [0], [1], [0, 0, 1, 1], [], []>} : vector<8x128xf32>, vector<128x512xf32>, vector<8x512xf32> -> vector<8x512xf32>
    %cst_119 = arith.constant dense<0.000000e+00> : vector<8x128xf32>
    %540 = tpu.matmul %538, %237, %cst_119 {dimension_numbers = #tpu.dot_dimension_numbers<[1], [0], [0], [1], [0, 0, 1, 1], [], []>} : vector<8x128xf32>, vector<128x128xf32>, vector<8x128xf32> -> vector<8x128xf32>
    %541 = arith.addf %540, %238 : vector<8x128xf32>
    %c6 = arith.constant 6 : index
    %c0_120 = arith.constant 0 : index
    %c0_121 = arith.constant 0 : index
    %542 = vector.load %arg7[%c6, %c0_120, %c0_121] : memref<8x8x128xf32, #tpu.memory_space<vmem>>, vector<1x8x128xf32>
    %543 = vector.shape_cast %542 : vector<1x8x128xf32> to vector<8x128xf32>
    %544 = vector.shape_cast %541 : vector<8x128xf32> to vector<1x8x128xf32>
    tpu.vector_store %arg7[%c6, %c0_120, %c0_121], %544 {strides = array<i32>} : memref<8x8x128xf32, #tpu.memory_space<vmem>>, vector<1x8x128xf32>,
    %cst_122 = arith.constant dense<0xFF800000> : vector<8xf32>
    %545 = vector.multi_reduction <maximumf>, %541, %cst_122 [1] : vector<8x128xf32> to vector<8xf32>
    %546 = vector.shape_cast %545 : vector<8xf32> to vector<8x1xf32>
    %547 = vector.broadcast %546 : vector<8x1xf32> to vector<8x128xf32>
    %548 = arith.cmpf oge, %541, %547 : vector<8x128xf32>
    %c128_i32_123 = arith.constant 128 : i32
    %549 = vector.broadcast %c128_i32_123 : i32 to vector<8x128xi32>
    %550 = arith.select %548, %239, %549 : vector<8x128xi1>, vector<8x128xi32>
    %cst_124 = arith.constant dense<2147483647> : vector<8xi32>
    %551 = vector.multi_reduction <minsi>, %550, %cst_124 [1] : vector<8x128xi32> to vector<8xi32>
    %552 = vector.shape_cast %551 : vector<8xi32> to vector<8x1xi32>
    %553 = vector.broadcast %552 : vector<8x1xi32> to vector<8x128xi32>
    %554 = arith.cmpi eq, %239, %553 : vector<8x128xi32>
    %555 = arith.extui %554 : vector<8x128xi1> to vector<8x128xi32>
    %556 = arith.sitofp %555 : vector<8x128xi32> to vector<8x128xf32>
    %cst_125 = arith.constant dense<0.000000e+00> : vector<8x512xf32>
    %557 = tpu.matmul %556, %236, %cst_125 {dimension_numbers = #tpu.dot_dimension_numbers<[1], [0], [0], [1], [0, 0, 1, 1], [], []>} : vector<8x128xf32>, vector<128x512xf32>, vector<8x512xf32> -> vector<8x512xf32>
    %558 = arith.addf %557, %539 : vector<8x512xf32>
    %559 = vector.extract_strided_slice %558 {offsets = [0, 0], sizes = [8, 128], strides = [1, 1]} : vector<8x512xf32> to vector<8x128xf32>
    %560 = arith.negf %559 : vector<8x128xf32>
    %561 = math.exp %560 : vector<8x128xf32>
    %cst_126 = arith.constant 1.000000e+00 : f32
    %562 = vector.broadcast %cst_126 : f32 to vector<8x128xf32>
    %563 = arith.addf %562, %561 : vector<8x128xf32>
    %564 = arith.divf %562, %563 : vector<8x128xf32>
    %565 = vector.extract_strided_slice %558 {offsets = [0, 128], sizes = [8, 128], strides = [1, 1]} : vector<8x512xf32> to vector<8x128xf32>
    %566 = arith.negf %565 : vector<8x128xf32>
    %567 = math.exp %566 : vector<8x128xf32>
    %cst_127 = arith.constant 1.000000e+00 : f32
    %568 = vector.broadcast %cst_127 : f32 to vector<8x128xf32>
    %569 = arith.addf %568, %567 : vector<8x128xf32>
    %570 = arith.divf %568, %569 : vector<8x128xf32>
    %571 = vector.extract_strided_slice %558 {offsets = [0, 256], sizes = [8, 128], strides = [1, 1]} : vector<8x512xf32> to vector<8x128xf32>
    %572 = math.tanh %571 : vector<8x128xf32>
    %573 = vector.extract_strided_slice %558 {offsets = [0, 384], sizes = [8, 128], strides = [1, 1]} : vector<8x512xf32> to vector<8x128xf32>
    %574 = arith.negf %573 : vector<8x128xf32>
    %575 = math.exp %574 : vector<8x128xf32>
    %cst_128 = arith.constant 1.000000e+00 : f32
    %576 = vector.broadcast %cst_128 : f32 to vector<8x128xf32>
    %577 = arith.addf %576, %575 : vector<8x128xf32>
    %578 = arith.divf %576, %577 : vector<8x128xf32>
    %579 = arith.mulf %570, %536 : vector<8x128xf32>
    %580 = arith.mulf %564, %572 : vector<8x128xf32>
    %581 = arith.addf %579, %580 : vector<8x128xf32>
    %582 = math.tanh %581 : vector<8x128xf32>
    %583 = arith.mulf %578, %582 : vector<8x128xf32>
    %cst_129 = arith.constant dense<0.000000e+00> : vector<8x128xf32>
    %584 = tpu.matmul %583, %237, %cst_129 {dimension_numbers = #tpu.dot_dimension_numbers<[1], [0], [0], [1], [0, 0, 1, 1], [], []>} : vector<8x128xf32>, vector<128x128xf32>, vector<8x128xf32> -> vector<8x128xf32>
    %585 = arith.addf %584, %238 : vector<8x128xf32>
    %c7 = arith.constant 7 : index
    %c0_130 = arith.constant 0 : index
    %c0_131 = arith.constant 0 : index
    %586 = vector.load %arg7[%c7, %c0_130, %c0_131] : memref<8x8x128xf32, #tpu.memory_space<vmem>>, vector<1x8x128xf32>
    %587 = vector.shape_cast %586 : vector<1x8x128xf32> to vector<8x128xf32>
    %588 = vector.shape_cast %585 : vector<8x128xf32> to vector<1x8x128xf32>
    tpu.vector_store %arg7[%c7, %c0_130, %c0_131], %588 {strides = array<i32>} : memref<8x8x128xf32, #tpu.memory_space<vmem>>, vector<1x8x128xf32>,
    return
  }
}

</mosaic_0001>

<bundles_post_ra>
// kernel: seq2seq_forward.1
= control target key start
LH: loop header
LB: loop body
LE: loop exit
PB: predicated region body
PF: predicated region fallthrough
CT: control target
= control target key end

     0   :  { %v7771_v0 = vmov 0   ;;  %v10027_v6 = vmov 0.0   ;;  %vm7775_vm8 = vmmov 0   ;;  %s10019_s0 = inlined_call_operand.vmem [shape: s32[64,1], index: 0, kind: input, shape index: {}]   ;;  %s10020_s1 = inlined_call_operand.vmem [shape: f32[128,512], index: 1, kind: input, shape index: {}]   ;;  %s10021_s2 = inlined_call_operand.vmem [shape: f32[128,512], index: 2, kind: input, shape index: {}]   ;;  %s10022_s4 = inlined_call_operand.vmem [shape: f32[128,512], index: 4, kind: input, shape index: {}]   ;;  %s10023_s3 = inlined_call_operand.vmem [shape: f32[128,512], index: 3, kind: input, shape index: {}]   ;;  %s10024_s5 = inlined_call_operand.vmem [shape: f32[128,128], index: 5, kind: input, shape index: {}]   ;;  %s10025_s6 = inlined_call_operand.vmem [shape: f32[8,128], index: 6, kind: input, shape index: {}]   ;;  %s10026_s7 = inlined_call_operand.vmem [shape: f32[8,8,128], index: 7, kind: output, shape index: {}]  }
   0x1   :  { %7513 = vset.pattern.permute.xlu1 %v7771_v0  ;;  %7512 = vset.pattern.permute.xlu0 %v7771_v0  ;;  %v28_v1 = vld [vmem:[%s10019_s0 + $0x10] sm:$0xff]  ;;  %v26_v2 = vld [vmem:[%s10019_s0] sm:$0xff]  ;;  %v29_v3 = vld [vmem:[%s10019_s0 + $0x18] sm:$0xff] }
   0x2   :  { %43 = vperm.xlu1 %7513, %v28_v1   ;;  %37 = vperm.xlu0 %7512, %v26_v2   ;;  %v27_v4 = vld [vmem:[%s10019_s0 + $0x8] sm:$0xff]  ;;  %v84_v8 = vld [vmem:[%s10020_s1] sm:$0xff]  ;;  %v87_v14 = vld [vmem:[%s10020_s1 + $0x18] sm:$0xff] }
   0x3   :  { %v85_v5 = vld [vmem:[%s10020_s1 + $0x8] sm:$0xff]  ;;  %212 = vmatprep.mubr.f32.mxu0 %v10027_v6  ;;  %325 = vmatprep.mubr.f32.mxu1 %v10027_v6  ;;  %v88_v9 = vld [vmem:[%s10020_s1 + $0x20] sm:$0xff]  ;;  %v91_v15 = vld [vmem:[%s10020_s1 + $0x38] sm:$0xff] }
   0x4   :  { %v89_v7 = vld [vmem:[%s10020_s1 + $0x28] sm:$0xff]  ;;  %v30_v11 = vld [vmem:[%s10019_s0 + $0x20] sm:$0xff]  ;;  %v5653_v13 = vpack.c.bf16 %v88_v9, %v84_v8  ;;  %v86_v16 = vld [vmem:[%s10020_s1 + $0x10] sm:$0xff]  ;;  %v5683_v17 = vpack.c.bf16 %v91_v15, %v87_v14 }
   0x5   :  { %v31_v10 = vld [vmem:[%s10019_s0 + $0x28] sm:$0xff]  ;;  %v5651_v12 = vpack.c.bf16 %v89_v7, %v85_v5  ;;  %v90_v18 = vld [vmem:[%s10020_s1 + $0x30] sm:$0xff]  ;;  %v92_v23 = vld [vmem:[%s10020_s1 + $0x40] sm:$0xff] }
   0x6   :  { %46 = vperm.xlu1 %7513, %v29_v3   ;;  %40 = vperm.xlu0 %7512, %v27_v4   ;;  %v93_v19 = vld [vmem:[%s10020_s1 + $0x48] sm:$0xff]  ;;  %v5685_v21 = vpack.c.bf16 %v90_v18, %v86_v16  ;;  %v96_v24 = vld [vmem:[%s10020_s1 + $0x60] sm:$0xff]  ;;  %v95_v25 = vld [vmem:[%s10020_s1 + $0x58] sm:$0xff] }
   0x7   :  { %v97_v20 = vld [vmem:[%s10020_s1 + $0x68] sm:$0xff]  ;;  %5652 = vmatprep.subr.bf16.mxu0 %v5651_v12  ;;  %5684 = vmatprep.subr.bf16.mxu1 %v5683_v17  ;;  %v5657_v26 = vpack.c.bf16 %v96_v24, %v92_v23  ;;  %v99_v27 = vld [vmem:[%s10020_s1 + $0x78] sm:$0xff]  ;;  %v94_v28 = vld [vmem:[%s10020_s1 + $0x50] sm:$0xff] }
   0x8   :  { %v5655_v22 = vpack.c.bf16 %v97_v20, %v93_v19  ;;  %5654 = vmatpush1.bf16.msra.mxu0 %v5653_v13  ;;  %v98_v29 = vld [vmem:[%s10020_s1 + $0x70] sm:$0xff]  ;;  %v33_v30 = vld [vmem:[%s10019_s0 + $0x38] sm:$0xff]  ;;  %5686 = vmatpush1.bf16.msra.mxu1 %v5685_v21  ;;  %v5687_v32 = vpack.c.bf16 %v99_v27, %v95_v25  ;;  %v101_v34 = vld [vmem:[%s10020_s1 + $0x88] sm:$0xff] }
   0x9   :  { %v32_v31 = vld [vmem:[%s10019_s0 + $0x30] sm:$0xff]  ;;  %v5689_v33 = vpack.c.bf16 %v98_v29, %v94_v28  ;;  %v105_v35 = vld [vmem:[%s10020_s1 + $0xa8] sm:$0xff]  ;;  %v100_v36 = vld [vmem:[%s10020_s1 + $0x80] sm:$0xff] }
   0xa   :  { %5656 = vmatprep.subr.bf16.mxu0 %v5655_v22  ;;  %52 = vperm.xlu1 %7513, %v31_v10   ;;  %v5659_v37 = vpack.c.bf16 %v105_v35, %v101_v34  ;;  %v104_v38 = vld [vmem:[%s10020_s1 + $0xa0] sm:$0xff]  ;;  %v103_v39 = vld [vmem:[%s10020_s1 + $0x98] sm:$0xff]  ;;  %v102_v42 = vld [vmem:[%s10020_s1 + $0x90] sm:$0xff] }
   0xb   :  { %49 = vperm.xlu0 %7512, %v30_v11   ;;  %v107_v40 = vld [vmem:[%s10020_s1 + $0xb8] sm:$0xff]  ;;  %5688 = vmatprep.subr.bf16.mxu1 %v5687_v32  ;;  %v106_v43 = vld [vmem:[%s10020_s1 + $0xb0] sm:$0xff]  ;;  %v109_v44 = vld [vmem:[%s10020_s1 + $0xc8] sm:$0xff]  ;;  %v5661_v45 = vpack.c.bf16 %v104_v38, %v100_v36 }
   0xc   :  { %v5691_v41 = vpack.c.bf16 %v107_v40, %v103_v39  ;;  %5658 = vmatpush1.bf16.msra.mxu0 %v5657_v26  ;;  %v113_v46 = vld [vmem:[%s10020_s1 + $0xe8] sm:$0xff]  ;;  %v108_v47 = vld [vmem:[%s10020_s1 + $0xc0] sm:$0xff]  ;;  %5690 = vmatpush1.bf16.msra.mxu1 %v5689_v33  ;;  %v5693_v49 = vpack.c.bf16 %v106_v43, %v102_v42  ;;  %v111_v51 = vld [vmem:[%s10020_s1 + $0xd8] sm:$0xff] }
   0xd   :  { %v112_v48 = vld [vmem:[%s10020_s1 + $0xe0] sm:$0xff]  ;;  %5660 = vmatprep.subr.bf16.mxu0 %v5659_v37  ;;  %v5663_v50 = vpack.c.bf16 %v113_v46, %v109_v44  ;;  %v115_v52 = vld [vmem:[%s10020_s1 + $0xf8] sm:$0xff]  ;;  %v110_v53 = vld [vmem:[%s10020_s1 + $0xd0] sm:$0xff] }
   0xe   :  { %58 = vperm.xlu1 %7513, %v33_v30   ;;  %v5695_v54 = vpack.c.bf16 %v115_v52, %v111_v51  ;;  %v114_v55 = vld [vmem:[%s10020_s1 + $0xf0] sm:$0xff]  ;;  %v117_v56 = vld [vmem:[%s10020_s1 + $0x108] sm:$0xff]  ;;  %5692 = vmatprep.subr.bf16.mxu1 %v5691_v41  ;;  %v119_v58 = vld [vmem:[%s10020_s1 + $0x118] sm:$0xff]  ;;  %v5665_v59 = vpack.c.bf16 %v112_v48, %v108_v47 }
   0xf   :  { %55 = vperm.xlu0 %7512, %v32_v31   ;;  %v121_v57 = vld [vmem:[%s10020_s1 + $0x128] sm:$0xff]  ;;  %v123_v60 = vld [vmem:[%s10020_s1 + $0x138] sm:$0xff]  ;;  %v5697_v61 = vpack.c.bf16 %v114_v55, %v110_v53  ;;  %v116_v63 = vld [vmem:[%s10020_s1 + $0x100] sm:$0xff] }
  0x10   :  { %5662 = vmatpush1.bf16.msra.mxu0 %v5661_v45  ;;  %5694 = vmatpush1.bf16.msra.mxu1 %v5693_v49  ;;  %v5667_v62 = vpack.c.bf16 %v121_v57, %v117_v56  ;;  %v120_v0 = vld [vmem:[%s10020_s1 + $0x120] sm:$0xff]  ;;  %v118_v1 = vld [vmem:[%s10020_s1 + $0x110] sm:$0xff]  ;;  %v5699_v2 = vpack.c.bf16 %v123_v60, %v119_v58  ;;  %v125_v4 = vld [vmem:[%s10020_s1 + $0x148] sm:$0xff]  ;;  %v34_v49 = vlaneseq }
  0x11   :  { %5664 = vmatprep.subr.bf16.mxu0 %v5663_v50  ;;  %5696 = vmatprep.subr.bf16.mxu1 %v5695_v54  ;;  %v122_v3 = vld [vmem:[%s10020_s1 + $0x130] sm:$0xff]  ;;  %v129_v5 = vld [vmem:[%s10020_s1 + $0x168] sm:$0xff]  ;;  %v127_v7 = vld [vmem:[%s10020_s1 + $0x158] sm:$0xff]  ;;  %v5669_v9 = vpack.c.bf16 %v120_v0, %v116_v63 }
  0x12   :  { %v131_v8 = vld [vmem:[%s10020_s1 + $0x178] sm:$0xff]  ;;  %v5701_v10 = vpack.c.bf16 %v122_v3, %v118_v1  ;;  %v5671_v11 = vpack.c.bf16 %v129_v5, %v125_v4  ;;  %v124_v12 = vld [vmem:[%s10020_s1 + $0x140] sm:$0xff]  ;;  %v126_v14 = vld [vmem:[%s10020_s1 + $0x150] sm:$0xff]  ;;  %v8064_v54 = vand.u32 127, %v34_v49  ;;  %v10029_v5 = vmov 1.0  }
  0x13   :  { %v128_v13 = vld [vmem:[%s10020_s1 + $0x160] sm:$0xff]  ;;  %v5703_v15 = vpack.c.bf16 %v131_v8, %v127_v7  ;;  %v130_v16 = vld [vmem:[%s10020_s1 + $0x170] sm:$0xff]  ;;  %v133_v17 = vld [vmem:[%s10020_s1 + $0x188] sm:$0xff] }
  0x14   :  { %5666 = vmatpush1.bf16.msra.mxu0 %v5665_v59  ;;  %5698 = vmatpush1.bf16.msra.mxu1 %v5697_v61  ;;  %v137_v18 = vld [vmem:[%s10020_s1 + $0x1a8] sm:$0xff]  ;;  %v135_v19 = vld [vmem:[%s10020_s1 + $0x198] sm:$0xff]  ;;  %v5673_v21 = vpack.c.bf16 %v128_v13, %v124_v12  ;;  %v5705_v22 = vpack.c.bf16 %v130_v16, %v126_v14  ;;  %v132_v24 = vld [vmem:[%s10020_s1 + $0x180] sm:$0xff] }
  0x15   :  { %5668 = vmatprep.subr.bf16.mxu0 %v5667_v62  ;;  %5700 = vmatprep.subr.bf16.mxu1 %v5699_v2  ;;  %v139_v20 = vld [vmem:[%s10020_s1 + $0x1b8] sm:$0xff]  ;;  %v5675_v23 = vpack.c.bf16 %v137_v18, %v133_v17  ;;  %v136_v25 = vld [vmem:[%s10020_s1 + $0x1a0] sm:$0xff]  ;;  %v134_v26 = vld [vmem:[%s10020_s1 + $0x190] sm:$0xff] }
  0x16   :  { %v5707_v27 = vpack.c.bf16 %v139_v20, %v135_v19  ;;  %v138_v28 = vld [vmem:[%s10020_s1 + $0x1b0] sm:$0xff]  ;;  %v141_v29 = vld [vmem:[%s10020_s1 + $0x1c8] sm:$0xff]  ;;  %v143_v31 = vld [vmem:[%s10020_s1 + $0x1d8] sm:$0xff]  ;;  %v5677_v33 = vpack.c.bf16 %v136_v25, %v132_v24 }
  0x17   :  { %v145_v30 = vld [vmem:[%s10020_s1 + $0x1e8] sm:$0xff]  ;;  %v147_v32 = vld [vmem:[%s10020_s1 + $0x1f8] sm:$0xff]  ;;  %v5709_v34 = vpack.c.bf16 %v138_v28, %v134_v26  ;;  %v140_v36 = vld [vmem:[%s10020_s1 + $0x1c0] sm:$0xff] }
  0x18   :  { %5670 = vmatpush1.bf16.msra.mxu0 %v5669_v9  ;;  %5702 = vmatpush1.bf16.msra.mxu1 %v5701_v10  ;;  %v5679_v35 = vpack.c.bf16 %v145_v30, %v141_v29  ;;  %v144_v37 = vld [vmem:[%s10020_s1 + $0x1e0] sm:$0xff]  ;;  %v142_v38 = vld [vmem:[%s10020_s1 + $0x1d0] sm:$0xff]  ;;  %v5711_v39 = vpack.c.bf16 %v147_v32, %v143_v31  ;;  %v375_v41 = vld [vmem:[%s10021_s2 + $0x8] sm:$0xff] }
  0x19   :  { %5672 = vmatprep.subr.bf16.mxu0 %v5671_v11  ;;  %5704 = vmatprep.subr.bf16.mxu1 %v5703_v15  ;;  %v146_v40 = vld [vmem:[%s10020_s1 + $0x1f0] sm:$0xff]  ;;  %v379_v42 = vld [vmem:[%s10021_s2 + $0x28] sm:$0xff]  ;;  %v377_v43 = vld [vmem:[%s10021_s2 + $0x18] sm:$0xff]  ;;  %v5681_v45 = vpack.c.bf16 %v144_v37, %v140_v36 }
  0x1a   :  { %v381_v44 = vld [vmem:[%s10021_s2 + $0x38] sm:$0xff]  ;;  %v5713_v46 = vpack.c.bf16 %v146_v40, %v142_v38  ;;  %v8046_v47 = vpack.c.bf16 %v379_v42, %v375_v41  ;;  %v374_v50 = vld [vmem:[%s10021_s2] sm:$0xff]  ;;  %v376_v52 = vld [vmem:[%s10021_s2 + $0x10] sm:$0xff] }
  0x1b   :  { %v8048_v48 = vpack.c.bf16 %v381_v44, %v377_v43  ;;  %v378_v51 = vld [vmem:[%s10021_s2 + $0x20] sm:$0xff]  ;;  %v380_v53 = vld [vmem:[%s10021_s2 + $0x30] sm:$0xff]  ;;  %v383_v55 = vld [vmem:[%s10021_s2 + $0x48] sm:$0xff] }
  0x1c   :  { %5674 = vmatpush1.bf16.msra.mxu0 %v5673_v21  ;;  %5706 = vmatpush1.bf16.msra.mxu1 %v5705_v22  ;;  %v387_v56 = vld [vmem:[%s10021_s2 + $0x68] sm:$0xff]  ;;  %v385_v57 = vld [vmem:[%s10021_s2 + $0x58] sm:$0xff]  ;;  %v8078_v59 = vpack.c.bf16 %v378_v51, %v374_v50  ;;  %v8080_v60 = vpack.c.bf16 %v380_v53, %v376_v52  ;;  %v382_v61 = vld [vmem:[%s10021_s2 + $0x40] sm:$0xff] }
  0x1d   :  { %5676 = vmatprep.subr.bf16.mxu0 %v5675_v23  ;;  %5708 = vmatprep.subr.bf16.mxu1 %v5707_v27  ;;  %v389_v58 = vld [vmem:[%s10021_s2 + $0x78] sm:$0xff]  ;;  %v386_v63 = vld [vmem:[%s10021_s2 + $0x60] sm:$0xff]  ;;  %v384_v0 = vld [vmem:[%s10021_s2 + $0x50] sm:$0xff]  ;;  %v8098_v2 = vpack.c.bf16 %v387_v56, %v383_v55 }
  0x1e   :  { %v388_v1 = vld [vmem:[%s10021_s2 + $0x70] sm:$0xff]  ;;  %v8100_v3 = vpack.c.bf16 %v389_v58, %v385_v57  ;;  %v391_v4 = vld [vmem:[%s10021_s2 + $0x88] sm:$0xff]  ;;  %v393_v8 = vld [vmem:[%s10021_s2 + $0x98] sm:$0xff]  ;;  %v8124_v10 = vpack.c.bf16 %v386_v63, %v382_v61 }
  0x1f   :  { %v395_v7 = vld [vmem:[%s10021_s2 + $0xa8] sm:$0xff]  ;;  %v397_v9 = vld [vmem:[%s10021_s2 + $0xb8] sm:$0xff]  ;;  %v8126_v11 = vpack.c.bf16 %v388_v1, %v384_v0  ;;  %v390_v12 = vld [vmem:[%s10021_s2 + $0x80] sm:$0xff] }
  0x20   :  { %5678 = vmatpush1.bf16.msra.mxu0 %v5677_v33  ;;  %5710 = vmatpush1.bf16.msra.mxu1 %v5709_v34  ;;  %v394_v14 = vld [vmem:[%s10021_s2 + $0xa0] sm:$0xff]  ;;  %v392_v15 = vld [vmem:[%s10021_s2 + $0x90] sm:$0xff]  ;;  %v8145_v17 = vpack.c.bf16 %v395_v7, %v391_v4  ;;  %v8147_v18 = vpack.c.bf16 %v397_v9, %v393_v8  ;;  %v399_v19 = vld [vmem:[%s10021_s2 + $0xc8] sm:$0xff] }
  0x21   :  { %5680 = vmatprep.subr.bf16.mxu0 %v5679_v35  ;;  %5712 = vmatprep.subr.bf16.mxu1 %v5711_v39  ;;  %v396_v16 = vld [vmem:[%s10021_s2 + $0xb0] sm:$0xff]  ;;  %v403_v21 = vld [vmem:[%s10021_s2 + $0xe8] sm:$0xff]  ;;  %v401_v22 = vld [vmem:[%s10021_s2 + $0xd8] sm:$0xff]  ;;  %v8166_v24 = vpack.c.bf16 %v394_v14, %v390_v12 }
  0x22   :  { %v405_v23 = vld [vmem:[%s10021_s2 + $0xf8] sm:$0xff]  ;;  %v8168_v25 = vpack.c.bf16 %v396_v16, %v392_v15  ;;  %v398_v26 = vld [vmem:[%s10021_s2 + $0xc0] sm:$0xff]  ;;  %v400_v28 = vld [vmem:[%s10021_s2 + $0xd0] sm:$0xff]  ;;  %v8186_v30 = vpack.c.bf16 %v403_v21, %v399_v19 }
  0x23   :  { %v402_v27 = vld [vmem:[%s10021_s2 + $0xe0] sm:$0xff]  ;;  %v404_v29 = vld [vmem:[%s10021_s2 + $0xf0] sm:$0xff]  ;;  %v8188_v31 = vpack.c.bf16 %v405_v23, %v401_v22  ;;  %v407_v32 = vld [vmem:[%s10021_s2 + $0x108] sm:$0xff] }
  0x24   :  { %5682 = vmatpush1.bf16.msra.mxu0 %v5681_v45  ;;  %5714 = vmatpush1.bf16.msra.mxu1 %v5713_v46  ;;  %v411_v33 = vld [vmem:[%s10021_s2 + $0x128] sm:$0xff]  ;;  %v409_v34 = vld [vmem:[%s10021_s2 + $0x118] sm:$0xff]  ;;  %v8210_v36 = vpack.c.bf16 %v402_v27, %v398_v26  ;;  %v8212_v37 = vpack.c.bf16 %v404_v29, %v400_v28  ;;  %v406_v38 = vld [vmem:[%s10021_s2 + $0x100] sm:$0xff] }
  0x25   :  { %5716 = vmatprep.subr.bf16.mxu0 %v8046_v47  ;;  %5748 = vmatprep.subr.bf16.mxu1 %v8048_v48  ;;  %v413_v35 = vld [vmem:[%s10021_s2 + $0x138] sm:$0xff]  ;;  %v410_v40 = vld [vmem:[%s10021_s2 + $0x120] sm:$0xff]  ;;  %v408_v41 = vld [vmem:[%s10021_s2 + $0x110] sm:$0xff]  ;;  %v8231_v43 = vpack.c.bf16 %v411_v33, %v407_v32 }
  0x26   :  { %v412_v42 = vld [vmem:[%s10021_s2 + $0x130] sm:$0xff]  ;;  %v8233_v44 = vpack.c.bf16 %v413_v35, %v409_v34  ;;  %v415_v45 = vld [vmem:[%s10021_s2 + $0x148] sm:$0xff]  ;;  %v417_v50 = vld [vmem:[%s10021_s2 + $0x158] sm:$0xff]  ;;  %v8251_v52 = vpack.c.bf16 %v410_v40, %v406_v38 }
  0x27   :  { %v419_v49 = vld [vmem:[%s10021_s2 + $0x168] sm:$0xff]  ;;  %v421_v51 = vld [vmem:[%s10021_s2 + $0x178] sm:$0xff]  ;;  %v8253_v53 = vpack.c.bf16 %v412_v42, %v408_v41  ;;  %v414_v55 = vld [vmem:[%s10021_s2 + $0x140] sm:$0xff] }
  0x28   :  { %v418_v56 = vld [vmem:[%s10021_s2 + $0x160] sm:$0xff]  ;;  %v416_v57 = vld [vmem:[%s10021_s2 + $0x150] sm:$0xff]  ;;  %v8272_v61 = vpack.c.bf16 %v419_v49, %v415_v45  ;;  %v8274_v63 = vpack.c.bf16 %v421_v51, %v417_v50  ;;  %v423_v0 = vld [vmem:[%s10021_s2 + $0x188] sm:$0xff] }
  0x29   :  { %v420_v58 = vld [vmem:[%s10021_s2 + $0x170] sm:$0xff]  ;;  %v427_v4 = vld [vmem:[%s10021_s2 + $0x1a8] sm:$0xff]  ;;  %v425_v7 = vld [vmem:[%s10021_s2 + $0x198] sm:$0xff]  ;;  %v8292_v9 = vpack.c.bf16 %v418_v56, %v414_v55 }
  0x2a   :  { %v429_v8 = vld [vmem:[%s10021_s2 + $0x1b8] sm:$0xff]  ;;  %v8294_v12 = vpack.c.bf16 %v420_v58, %v416_v57  ;;  %v426_v14 = vld [vmem:[%s10021_s2 + $0x1a0] sm:$0xff]  ;;  %v424_v15 = vld [vmem:[%s10021_s2 + $0x190] sm:$0xff]  ;;  %v8313_v19 = vpack.c.bf16 %v427_v4, %v423_v0 }
  0x2b   :  { %v428_v16 = vld [vmem:[%s10021_s2 + $0x1b0] sm:$0xff]  ;;  %v431_v21 = vld [vmem:[%s10021_s2 + $0x1c8] sm:$0xff]  ;;  %v433_v26 = vld [vmem:[%s10021_s2 + $0x1d8] sm:$0xff] }
  0x2c   :  { %v435_v23 = vld [vmem:[%s10021_s2 + $0x1e8] sm:$0xff]  ;;  %v437_v27 = vld [vmem:[%s10021_s2 + $0x1f8] sm:$0xff]  ;;  %v8335_v29 = vpack.c.bf16 %v428_v16, %v424_v15  ;;  %v430_v32 = vld [vmem:[%s10021_s2 + $0x1c0] sm:$0xff] }
  0x2d   :  { %v434_v33 = vld [vmem:[%s10021_s2 + $0x1e0] sm:$0xff]  ;;  %v432_v34 = vld [vmem:[%s10021_s2 + $0x1d0] sm:$0xff]  ;;  %v8354_v38 = vpack.c.bf16 %v435_v23, %v431_v21 }
  0x2e   :  { %v436_v35 = vld [vmem:[%s10021_s2 + $0x1f0] sm:$0xff]  ;;  %v8362_v41 = vpack.c.bf16 %v434_v33, %v430_v32 }
  0x2f   :  { %v8364_v42 = vpack.c.bf16 %v436_v35, %v432_v34 }
  0x81   :  { %v8085_v62 = vpop.permute.xlu0 %37  ;;  %v44_v20 = vpop.permute.xlu1 %43 }
  0x82   :  { %vm60_vm0 = vcmp.eq.s32.totalorder %v8064_v54, %v8085_v62  ;;  %vm62_vm2 = vcmp.eq.s32.totalorder %v8064_v54, %v44_v20  ;;  %v8315_v20 = vpack.c.bf16 %v429_v8, %v425_v7  ;;  %v10067_v62 = vmov 0.0|0.0  }
  0x83   :  { %5141 = vmatmul.mubr.msk.f32.vlgmr.msra.gmra.mrb[0].mxu0 %vm60_vm0, %v10029_v5  ;;  %5149 = vmatmul.mubr.msk.f32.vlgmr.msra.gmra.mrb[0].mxu1 %vm60_vm0, %v10029_v5 }
  0x84   :  { %5718 = vmatpush1.bf16.msra.mxu0 %v8078_v59  ;;  %5750 = vmatpush1.bf16.msra.mxu1 %v8080_v60 }
  0x85   :  { %v41_v13 = vpop.permute.xlu0 %40  ;;  %218 = vmatprep.mubr.f32.mxu0 %v10027_v6  ;;  %331 = vmatprep.mubr.f32.mxu1 %v10027_v6  ;;  %v47_v39 = vpop.permute.xlu1 %46 }
  0x86   :  { %vm61_vm1 = vcmp.eq.s32.totalorder %v8064_v54, %v41_v13  ;;  %5720 = vmatprep.subr.bf16.mxu0 %v8098_v2  ;;  %5752 = vmatprep.subr.bf16.mxu1 %v8100_v3  ;;  %vm63_vm3 = vcmp.eq.s32.totalorder %v8064_v54, %v47_v39  ;;  %v422_v13 = vld [vmem:[%s10021_s2 + $0x180] sm:$0xff]  ;;  %v8356_v39 = vpack.c.bf16 %v437_v27, %v433_v26 }
  0x87   :  { %5142 = vmatmul.mubr.msk.f32.gmra.mrb[2].mxu0 %vm61_vm1, %v10029_v5  ;;  %5150 = vmatmul.mubr.msk.f32.gmra.mrb[2].mxu1 %vm61_vm1, %v10029_v5  ;;  %v8333_v28 = vpack.c.bf16 %v426_v14, %v422_v13 }
  0x88   :  { %5722 = vmatpush1.bf16.msra.mxu0 %v8124_v10  ;;  %5754 = vmatpush1.bf16.msra.mxu1 %v8126_v11 }
  0x89   :  { %224 = vmatprep.mubr.f32.mxu0 %v10027_v6  ;;  %337 = vmatprep.mubr.f32.mxu1 %v10027_v6  ;;  %v53_v1 = vpop.permute.xlu1 %52 }
  0x8a   :  { %5724 = vmatprep.subr.bf16.mxu0 %v8145_v17  ;;  %5756 = vmatprep.subr.bf16.mxu1 %v8147_v18  ;;  %v50_v46 = vpop.permute.xlu0 %49  ;;  %vm65_vm5 = vcmp.eq.s32.totalorder %v8064_v54, %v53_v1 }
  0x8b   :  { %5143 = vmatmul.mubr.msk.f32.gmra.mrb[4].mxu0 %vm62_vm2, %v10029_v5  ;;  %5151 = vmatmul.mubr.msk.f32.gmra.mrb[4].mxu1 %vm62_vm2, %v10029_v5  ;;  %vm64_vm4 = vcmp.eq.s32.totalorder %v8064_v54, %v50_v46 }
  0x8c   :  { %5726 = vmatpush1.bf16.msra.mxu0 %v8166_v24  ;;  %5758 = vmatpush1.bf16.msra.mxu1 %v8168_v25 }
  0x8d   :  { %230 = vmatprep.mubr.f32.mxu0 %v10027_v6  ;;  %343 = vmatprep.mubr.f32.mxu1 %v10027_v6  ;;  %v59_v40 = vpop.permute.xlu1 %58 }
  0x8e   :  { %5728 = vmatprep.subr.bf16.mxu0 %v8186_v30  ;;  %5760 = vmatprep.subr.bf16.mxu1 %v8188_v31  ;;  %v56_v22 = vpop.permute.xlu0 %55  ;;  %vm67_vm7 = vcmp.eq.s32.totalorder %v8064_v54, %v59_v40 }
  0x8f   :  { %5144 = vmatmul.mubr.msk.f32.gmra.mrb[6].mxu0 %vm63_vm3, %v10029_v5  ;;  %5152 = vmatmul.mubr.msk.f32.gmra.mrb[6].mxu1 %vm63_vm3, %v10029_v5  ;;  %vm66_vm6 = vcmp.eq.s32.totalorder %v8064_v54, %v56_v22 }
  0x90   :  { %5730 = vmatpush1.bf16.msra.mxu0 %v8210_v36  ;;  %5762 = vmatpush1.bf16.msra.mxu1 %v8212_v37 }
  0x91   :  { %236 = vmatprep.mubr.f32.mxu0 %v10027_v6  ;;  %349 = vmatprep.mubr.f32.mxu1 %v10027_v6 }
  0x92   :  { %5732 = vmatprep.subr.bf16.mxu0 %v8231_v43  ;;  %5764 = vmatprep.subr.bf16.mxu1 %v8233_v44 }
  0x93   :  { %5145 = vmatmul.mubr.msk.f32.gmra.mrb[8].mxu0 %vm64_vm4, %v10029_v5  ;;  %5153 = vmatmul.mubr.msk.f32.gmra.mrb[8].mxu1 %vm64_vm4, %v10029_v5 }
  0x94   :  { %5734 = vmatpush1.bf16.msra.mxu0 %v8251_v52  ;;  %5766 = vmatpush1.bf16.msra.mxu1 %v8253_v53 }
  0x95   :  { %242 = vmatprep.mubr.f32.mxu0 %v10027_v6  ;;  %355 = vmatprep.mubr.f32.mxu1 %v10027_v6 }
  0x96   :  { %5736 = vmatprep.subr.bf16.mxu0 %v8272_v61  ;;  %5768 = vmatprep.subr.bf16.mxu1 %v8274_v63 }
  0x97   :  { %5146 = vmatmul.mubr.msk.f32.gmra.mrb[10].mxu0 %vm65_vm5, %v10029_v5  ;;  %5154 = vmatmul.mubr.msk.f32.gmra.mrb[10].mxu1 %vm65_vm5, %v10029_v5 }
  0x98   :  { %5738 = vmatpush1.bf16.msra.mxu0 %v8292_v9  ;;  %5770 = vmatpush1.bf16.msra.mxu1 %v8294_v12 }
  0x99   :  { %248 = vmatprep.mubr.f32.mxu0 %v10027_v6  ;;  %361 = vmatprep.mubr.f32.mxu1 %v10027_v6 }
  0x9a   :  { %5740 = vmatprep.subr.bf16.mxu0 %v8313_v19  ;;  %5772 = vmatprep.subr.bf16.mxu1 %v8315_v20 }
  0x9b   :  { %5147 = vmatmul.mubr.msk.f32.gmra.mrb[12].mxu0 %vm66_vm6, %v10029_v5  ;;  %5155 = vmatmul.mubr.msk.f32.gmra.mrb[12].mxu1 %vm66_vm6, %v10029_v5 }
  0x9c   :  { %5742 = vmatpush1.bf16.msra.mxu0 %v8333_v28  ;;  %5774 = vmatpush1.bf16.msra.mxu1 %v8335_v29 }
  0x9d   :  { %254 = vmatprep.mubr.f32.mxu0 %v10027_v6  ;;  %367 = vmatprep.mubr.f32.mxu1 %v10027_v6 }
  0x9e   :  { %5744 = vmatprep.subr.bf16.mxu0 %v8354_v38  ;;  %5776 = vmatprep.subr.bf16.mxu1 %v8356_v39 }
  0x9f   :  { %5148 = vmatmul.mubr.msk.f32.gmra.mrb[14].mxu0 %vm67_vm7, %v10029_v5  ;;  %5156 = vmatmul.mubr.msk.f32.gmra.mrb[14].mxu1 %vm67_vm7, %v10029_v5  ;;  %v1902_v5 = vld [vmem:[%s10023_s3 + $0x140] sm:$0xff] }
  0xa0   :  { %5746 = vmatpush1.bf16.msra.mxu0 %v8362_v41  ;;  %5778 = vmatpush1.bf16.msra.mxu1 %v8364_v42 }
  0xa1   :  { %502 = vmatprep.mubr.f32.mxu0 %v10027_v6  ;;  %573 = vmatprep.mubr.f32.mxu1 %v10027_v6 }
  0xa2   :  { %5780 = vmatprep.subr.bf16.mxu0 %v8046_v47  ;;  %5812 = vmatprep.subr.bf16.mxu1 %v8048_v48 }
  0xa3   :  { %503 = vmatmul.mubr.f32.vlgmr.msra.gmra.mrb[0].mxu0 %v10027_v6  ;;  %574 = vmatmul.mubr.f32.vlgmr.msra.gmra.mrb[0].mxu1 %v10027_v6 }
  0xa4   :  { %5782 = vmatpush1.bf16.msra.mxu0 %v8078_v59  ;;  %5814 = vmatpush1.bf16.msra.mxu1 %v8080_v60 }
  0xa5   :  { %5784 = vmatprep.subr.bf16.mxu0 %v8098_v2  ;;  %5816 = vmatprep.subr.bf16.mxu1 %v8100_v3 }
  0xa6   :  { %672 = vmatprep.mubr.f32.mxu0 %v10027_v6  ;;  %743 = vmatprep.mubr.f32.mxu1 %v10027_v6 }
  0xa8   :  { %5786 = vmatpush1.bf16.msra.mxu0 %v8124_v10  ;;  %5818 = vmatpush1.bf16.msra.mxu1 %v8126_v11 }
  0xa9   :  { %5788 = vmatprep.subr.bf16.mxu0 %v8145_v17  ;;  %5820 = vmatprep.subr.bf16.mxu1 %v8147_v18 }
  0xac   :  { %5790 = vmatpush1.bf16.msra.mxu0 %v8166_v24  ;;  %5822 = vmatpush1.bf16.msra.mxu1 %v8168_v25 }
  0xad   :  { %5792 = vmatprep.subr.bf16.mxu0 %v8186_v30  ;;  %5824 = vmatprep.subr.bf16.mxu1 %v8188_v31 }
  0xb0   :  { %5794 = vmatpush1.bf16.msra.mxu0 %v8210_v36  ;;  %5826 = vmatpush1.bf16.msra.mxu1 %v8212_v37 }
  0xb1   :  { %5796 = vmatprep.subr.bf16.mxu0 %v8231_v43  ;;  %5828 = vmatprep.subr.bf16.mxu1 %v8233_v44 }
  0xb4   :  { %5798 = vmatpush1.bf16.msra.mxu0 %v8251_v52  ;;  %5830 = vmatpush1.bf16.msra.mxu1 %v8253_v53 }
  0xb5   :  { %5800 = vmatprep.subr.bf16.mxu0 %v8272_v61  ;;  %5832 = vmatprep.subr.bf16.mxu1 %v8274_v63 }
  0xb8   :  { %5802 = vmatpush1.bf16.msra.mxu0 %v8292_v9  ;;  %5834 = vmatpush1.bf16.msra.mxu1 %v8294_v12 }
  0xb9   :  { %5804 = vmatprep.subr.bf16.mxu0 %v8313_v19  ;;  %5836 = vmatprep.subr.bf16.mxu1 %v8315_v20 }
  0xbc   :  { %5806 = vmatpush1.bf16.msra.mxu0 %v8333_v28  ;;  %5838 = vmatpush1.bf16.msra.mxu1 %v8335_v29 }
  0xbd   :  { %5808 = vmatprep.subr.bf16.mxu0 %v8354_v38  ;;  %5840 = vmatprep.subr.bf16.mxu1 %v8356_v39 }
  0xc0   :  { %5810 = vmatpush1.bf16.msra.mxu0 %v8362_v41  ;;  %5842 = vmatpush1.bf16.msra.mxu1 %v8364_v42 }
  0xc1   :  { %5844 = vmatprep.subr.bf16.mxu0 %v8046_v47  ;;  %5876 = vmatprep.subr.bf16.mxu1 %v8048_v48 }
 0x176   :  { %v504_v45 = vpop.f32.mrb[0].mxu0  ;;  %v575_v46 = vpop.f32.mrb[0].mxu1 }
 0x177   :  { %v5157_v49 = vmul.f32 -1.442695, %v504_v45  ;;  %v506_v50 = vpop.f32.mrb[1].mxu0  ;;  %v577_v51 = vpop.f32.mrb[1].mxu1 }
 0x178   :  { %v5158_v55 = vmul.f32 -1.442695, %v506_v50  ;;  %v5159_v56 = vmul.f32 -1.442695, %v577_v51 }
 0x179   :  { %7514 = vpow2.f32 %v5157_v49 }
 0x17a   :  { %7516 = vpow2.f32 %v5158_v55 }
 0x17b   :  { %7518 = vpow2.f32 %v5159_v56 }
 0x17c   :  { %7520 = vtanh.f32 %v575_v46 }
 0x183   :  { %v7515_v57 = vpop.eup %7514 }
 0x184   :  { %v7517_v58 = vpop.eup %7516  ;;  %v587_v0 = vadd.f32 1.0, %v7515_v57 }
 0x185   :  { %v593_v1 = vadd.f32 1.0, %v7517_v58  ;;  %v7519_v4 = vpop.eup %7518 }
 0x186   :  { %7522 = vrcp.f32 %v587_v0  ;;  %v7521_v7 = vpop.eup %7520  ;;  %v600_v15 = vadd.f32 1.0, %v7519_v4 }
 0x187   :  { %7524 = vrcp.f32 %v593_v1 }
 0x188   :  { %7526 = vrcp.f32 %v600_v15 }
 0x190   :  { %v7523_v8 = vpop.eup %7522 }
 0x191   :  { %v7525_v13 = vpop.eup %7524  ;;  %v604_v14 = vmul.f32 %v7523_v8, %v7521_v7 }
 0x192   :  { %v603_v16 = vmul.f32 0.0, %v7525_v13  ;;  %v7527_v22 = vpop.eup %7526 }
 0x194   :  { %v8415_v21 = vadd.f32 %v604_v14, %v603_v16 }
 0x196   :  { %7528 = vtanh.f32 %v8415_v21 }
 0x1a0   :  { %v7529_v23 = vpop.eup %7528 }
 0x1a1   :  { %v607_v26 = vmul.f32 %v7529_v23, %v7527_v22 }
 0x1a3   :  { %673 = vmatmul.mubr.f32.vlgmr.msra.gmra.mrb[2].mxu0 %v607_v26  ;;  %744 = vmatmul.mubr.f32.vlgmr.msra.gmra.mrb[2].mxu1 %v607_v26 }
 0x1a4   :  { %5846 = vmatpush1.bf16.msra.mxu0 %v8078_v59  ;;  %5878 = vmatpush1.bf16.msra.mxu1 %v8080_v60 }
 0x1a5   :  { %5848 = vmatprep.subr.bf16.mxu0 %v8098_v2  ;;  %5880 = vmatprep.subr.bf16.mxu1 %v8100_v3 }
 0x1a6   :  { %842 = vmatprep.mubr.f32.mxu0 %v10027_v6  ;;  %913 = vmatprep.mubr.f32.mxu1 %v10027_v6 }
 0x1a8   :  { %5850 = vmatpush1.bf16.msra.mxu0 %v8124_v10  ;;  %5882 = vmatpush1.bf16.msra.mxu1 %v8126_v11 }
 0x1a9   :  { %5852 = vmatprep.subr.bf16.mxu0 %v8145_v17  ;;  %5884 = vmatprep.subr.bf16.mxu1 %v8147_v18 }
 0x1ac   :  { %5854 = vmatpush1.bf16.msra.mxu0 %v8166_v24  ;;  %5886 = vmatpush1.bf16.msra.mxu1 %v8168_v25 }
 0x1ad   :  { %5856 = vmatprep.subr.bf16.mxu0 %v8186_v30  ;;  %5888 = vmatprep.subr.bf16.mxu1 %v8188_v31 }
 0x1b0   :  { %5858 = vmatpush1.bf16.msra.mxu0 %v8210_v36  ;;  %5890 = vmatpush1.bf16.msra.mxu1 %v8212_v37 }
 0x1b1   :  { %5860 = vmatprep.subr.bf16.mxu0 %v8231_v43  ;;  %5892 = vmatprep.subr.bf16.mxu1 %v8233_v44 }
 0x1b4   :  { %5862 = vmatpush1.bf16.msra.mxu0 %v8251_v52  ;;  %5894 = vmatpush1.bf16.msra.mxu1 %v8253_v53 }
 0x1b5   :  { %5864 = vmatprep.subr.bf16.mxu0 %v8272_v61  ;;  %5896 = vmatprep.subr.bf16.mxu1 %v8274_v63 }
 0x1b8   :  { %5866 = vmatpush1.bf16.msra.mxu0 %v8292_v9  ;;  %5898 = vmatpush1.bf16.msra.mxu1 %v8294_v12 }
 0x1b9   :  { %5868 = vmatprep.subr.bf16.mxu0 %v8313_v19  ;;  %5900 = vmatprep.subr.bf16.mxu1 %v8315_v20 }
 0x1bc   :  { %5870 = vmatpush1.bf16.msra.mxu0 %v8333_v28  ;;  %5902 = vmatpush1.bf16.msra.mxu1 %v8335_v29 }
 0x1bd   :  { %5872 = vmatprep.subr.bf16.mxu0 %v8354_v38  ;;  %5904 = vmatprep.subr.bf16.mxu1 %v8356_v39 }
 0x1c0   :  { %5874 = vmatpush1.bf16.msra.mxu0 %v8362_v41  ;;  %5906 = vmatpush1.bf16.msra.mxu1 %v8364_v42 }
 0x1c1   :  { %5908 = vmatprep.subr.bf16.mxu0 %v8046_v47  ;;  %5940 = vmatprep.subr.bf16.mxu1 %v8048_v48 }
 0x276   :  { %v674_v27 = vpop.f32.mrb[2].mxu0  ;;  %v745_v32 = vpop.f32.mrb[2].mxu1 }
 0x277   :  { %v5160_v33 = vmul.f32 -1.442695, %v674_v27  ;;  %v676_v34 = vpop.f32.mrb[3].mxu0  ;;  %v747_v35 = vpop.f32.mrb[3].mxu1 }
 0x278   :  { %v5161_v40 = vmul.f32 -1.442695, %v676_v34  ;;  %v5162_v45 = vmul.f32 -1.442695, %v747_v35 }
 0x279   :  { %7530 = vpow2.f32 %v5160_v33 }
 0x27a   :  { %7532 = vpow2.f32 %v5161_v40 }
 0x27b   :  { %7534 = vpow2.f32 %v5162_v45 }
 0x27c   :  { %7536 = vtanh.f32 %v745_v32 }
 0x283   :  { %v7531_v46 = vpop.eup %7530 }
 0x284   :  { %v7533_v49 = vpop.eup %7532  ;;  %v757_v50 = vadd.f32 1.0, %v7531_v46 }
 0x285   :  { %v763_v51 = vadd.f32 1.0, %v7533_v49  ;;  %v7535_v55 = vpop.eup %7534 }
 0x286   :  { %7538 = vrcp.f32 %v757_v50  ;;  %v7537_v56 = vpop.eup %7536  ;;  %v770_v1 = vadd.f32 1.0, %v7535_v55 }
 0x287   :  { %7540 = vrcp.f32 %v763_v51 }
 0x288   :  { %7542 = vrcp.f32 %v770_v1 }
 0x290   :  { %v7539_v57 = vpop.eup %7538 }
 0x291   :  { %v7541_v58 = vpop.eup %7540  ;;  %v774_v0 = vmul.f32 %v7539_v57, %v7537_v56 }
 0x292   :  { %v773_v4 = vmul.f32 %v7541_v58, %v8415_v21  ;;  %v7543_v8 = vpop.eup %7542 }
 0x294   :  { %v8453_v7 = vadd.f32 %v774_v0, %v773_v4 }
 0x296   :  { %7544 = vtanh.f32 %v8453_v7 }
 0x2a0   :  { %v7545_v13 = vpop.eup %7544 }
 0x2a1   :  { %v777_v14 = vmul.f32 %v7545_v13, %v7543_v8 }
 0x2a3   :  { %843 = vmatmul.mubr.f32.vlgmr.msra.gmra.mrb[4].mxu0 %v777_v14  ;;  %914 = vmatmul.mubr.f32.vlgmr.msra.gmra.mrb[4].mxu1 %v777_v14 }
 0x2a4   :  { %5910 = vmatpush1.bf16.msra.mxu0 %v8078_v59  ;;  %5942 = vmatpush1.bf16.msra.mxu1 %v8080_v60 }
 0x2a5   :  { %5912 = vmatprep.subr.bf16.mxu0 %v8098_v2  ;;  %5944 = vmatprep.subr.bf16.mxu1 %v8100_v3 }
 0x2a6   :  { %1012 = vmatprep.mubr.f32.mxu0 %v10027_v6  ;;  %1083 = vmatprep.mubr.f32.mxu1 %v10027_v6 }
 0x2a8   :  { %5914 = vmatpush1.bf16.msra.mxu0 %v8124_v10  ;;  %5946 = vmatpush1.bf16.msra.mxu1 %v8126_v11 }
 0x2a9   :  { %5916 = vmatprep.subr.bf16.mxu0 %v8145_v17  ;;  %5948 = vmatprep.subr.bf16.mxu1 %v8147_v18 }
 0x2ac   :  { %5918 = vmatpush1.bf16.msra.mxu0 %v8166_v24  ;;  %5950 = vmatpush1.bf16.msra.mxu1 %v8168_v25 }
 0x2ad   :  { %5920 = vmatprep.subr.bf16.mxu0 %v8186_v30  ;;  %5952 = vmatprep.subr.bf16.mxu1 %v8188_v31 }
 0x2b0   :  { %5922 = vmatpush1.bf16.msra.mxu0 %v8210_v36  ;;  %5954 = vmatpush1.bf16.msra.mxu1 %v8212_v37 }
 0x2b1   :  { %5924 = vmatprep.subr.bf16.mxu0 %v8231_v43  ;;  %5956 = vmatprep.subr.bf16.mxu1 %v8233_v44 }
 0x2b4   :  { %5926 = vmatpush1.bf16.msra.mxu0 %v8251_v52  ;;  %5958 = vmatpush1.bf16.msra.mxu1 %v8253_v53 }
 0x2b5   :  { %5928 = vmatprep.subr.bf16.mxu0 %v8272_v61  ;;  %5960 = vmatprep.subr.bf16.mxu1 %v8274_v63 }
 0x2b8   :  { %5930 = vmatpush1.bf16.msra.mxu0 %v8292_v9  ;;  %5962 = vmatpush1.bf16.msra.mxu1 %v8294_v12 }
 0x2b9   :  { %5932 = vmatprep.subr.bf16.mxu0 %v8313_v19  ;;  %5964 = vmatprep.subr.bf16.mxu1 %v8315_v20 }
 0x2bc   :  { %5934 = vmatpush1.bf16.msra.mxu0 %v8333_v28  ;;  %5966 = vmatpush1.bf16.msra.mxu1 %v8335_v29 }
 0x2bd   :  { %5936 = vmatprep.subr.bf16.mxu0 %v8354_v38  ;;  %5968 = vmatprep.subr.bf16.mxu1 %v8356_v39 }
 0x2c0   :  { %5938 = vmatpush1.bf16.msra.mxu0 %v8362_v41  ;;  %5970 = vmatpush1.bf16.msra.mxu1 %v8364_v42 }
 0x2c1   :  { %5972 = vmatprep.subr.bf16.mxu0 %v8046_v47  ;;  %6004 = vmatprep.subr.bf16.mxu1 %v8048_v48 }
 0x376   :  { %v844_v15 = vpop.f32.mrb[4].mxu0  ;;  %v915_v16 = vpop.f32.mrb[4].mxu1 }
 0x377   :  { %v5163_v21 = vmul.f32 -1.442695, %v844_v15  ;;  %v846_v22 = vpop.f32.mrb[5].mxu0  ;;  %v917_v23 = vpop.f32.mrb[5].mxu1 }
 0x378   :  { %v5164_v26 = vmul.f32 -1.442695, %v846_v22  ;;  %v5165_v27 = vmul.f32 -1.442695, %v917_v23 }
 0x379   :  { %7546 = vpow2.f32 %v5163_v21 }
 0x37a   :  { %7548 = vpow2.f32 %v5164_v26 }
 0x37b   :  { %7550 = vpow2.f32 %v5165_v27 }
 0x37c   :  { %7552 = vtanh.f32 %v915_v16 }
 0x383   :  { %v7547_v32 = vpop.eup %7546 }
 0x384   :  { %v7549_v33 = vpop.eup %7548  ;;  %v927_v34 = vadd.f32 1.0, %v7547_v32 }
 0x385   :  { %v933_v35 = vadd.f32 1.0, %v7549_v33  ;;  %v7551_v40 = vpop.eup %7550 }
 0x386   :  { %7554 = vrcp.f32 %v927_v34  ;;  %v7553_v45 = vpop.eup %7552  ;;  %v940_v51 = vadd.f32 1.0, %v7551_v40 }
 0x387   :  { %7556 = vrcp.f32 %v933_v35 }
 0x388   :  { %7558 = vrcp.f32 %v940_v51 }
 0x390   :  { %v7555_v46 = vpop.eup %7554 }
 0x391   :  { %v7557_v49 = vpop.eup %7556  ;;  %v944_v50 = vmul.f32 %v7555_v46, %v7553_v45 }
 0x392   :  { %v943_v55 = vmul.f32 %v7557_v49, %v8453_v7  ;;  %v7559_v57 = vpop.eup %7558 }
 0x394   :  { %v8491_v56 = vadd.f32 %v944_v50, %v943_v55 }
 0x396   :  { %7560 = vtanh.f32 %v8491_v56 }
 0x3a0   :  { %v7561_v58 = vpop.eup %7560 }
 0x3a1   :  { %v947_v0 = vmul.f32 %v7561_v58, %v7559_v57 }
 0x3a3   :  { %1013 = vmatmul.mubr.f32.vlgmr.msra.gmra.mrb[6].mxu0 %v947_v0  ;;  %1084 = vmatmul.mubr.f32.vlgmr.msra.gmra.mrb[6].mxu1 %v947_v0 }
 0x3a4   :  { %5974 = vmatpush1.bf16.msra.mxu0 %v8078_v59  ;;  %6006 = vmatpush1.bf16.msra.mxu1 %v8080_v60 }
 0x3a5   :  { %5976 = vmatprep.subr.bf16.mxu0 %v8098_v2  ;;  %6008 = vmatprep.subr.bf16.mxu1 %v8100_v3 }
 0x3a6   :  { %1182 = vmatprep.mubr.f32.mxu0 %v10027_v6  ;;  %1253 = vmatprep.mubr.f32.mxu1 %v10027_v6 }
 0x3a8   :  { %5978 = vmatpush1.bf16.msra.mxu0 %v8124_v10  ;;  %6010 = vmatpush1.bf16.msra.mxu1 %v8126_v11 }
 0x3a9   :  { %5980 = vmatprep.subr.bf16.mxu0 %v8145_v17  ;;  %6012 = vmatprep.subr.bf16.mxu1 %v8147_v18 }
 0x3ac   :  { %5982 = vmatpush1.bf16.msra.mxu0 %v8166_v24  ;;  %6014 = vmatpush1.bf16.msra.mxu1 %v8168_v25 }
 0x3ad   :  { %5984 = vmatprep.subr.bf16.mxu0 %v8186_v30  ;;  %6016 = vmatprep.subr.bf16.mxu1 %v8188_v31 }
 0x3b0   :  { %5986 = vmatpush1.bf16.msra.mxu0 %v8210_v36  ;;  %6018 = vmatpush1.bf16.msra.mxu1 %v8212_v37 }
 0x3b1   :  { %5988 = vmatprep.subr.bf16.mxu0 %v8231_v43  ;;  %6020 = vmatprep.subr.bf16.mxu1 %v8233_v44 }
 0x3b4   :  { %5990 = vmatpush1.bf16.msra.mxu0 %v8251_v52  ;;  %6022 = vmatpush1.bf16.msra.mxu1 %v8253_v53 }
 0x3b5   :  { %5992 = vmatprep.subr.bf16.mxu0 %v8272_v61  ;;  %6024 = vmatprep.subr.bf16.mxu1 %v8274_v63 }
 0x3b8   :  { %5994 = vmatpush1.bf16.msra.mxu0 %v8292_v9  ;;  %6026 = vmatpush1.bf16.msra.mxu1 %v8294_v12 }
 0x3b9   :  { %5996 = vmatprep.subr.bf16.mxu0 %v8313_v19  ;;  %6028 = vmatprep.subr.bf16.mxu1 %v8315_v20 }
 0x3bc   :  { %5998 = vmatpush1.bf16.msra.mxu0 %v8333_v28  ;;  %6030 = vmatpush1.bf16.msra.mxu1 %v8335_v29 }
 0x3bd   :  { %6000 = vmatprep.subr.bf16.mxu0 %v8354_v38  ;;  %6032 = vmatprep.subr.bf16.mxu1 %v8356_v39 }
 0x3c0   :  { %6002 = vmatpush1.bf16.msra.mxu0 %v8362_v41  ;;  %6034 = vmatpush1.bf16.msra.mxu1 %v8364_v42 }
 0x3c1   :  { %6036 = vmatprep.subr.bf16.mxu0 %v8046_v47  ;;  %6068 = vmatprep.subr.bf16.mxu1 %v8048_v48 }
 0x476   :  { %v1014_v1 = vpop.f32.mrb[6].mxu0  ;;  %v1085_v4 = vpop.f32.mrb[6].mxu1 }
 0x477   :  { %v5166_v7 = vmul.f32 -1.442695, %v1014_v1  ;;  %v1016_v8 = vpop.f32.mrb[7].mxu0  ;;  %v1087_v13 = vpop.f32.mrb[7].mxu1 }
 0x478   :  { %v5167_v14 = vmul.f32 -1.442695, %v1016_v8  ;;  %v5168_v15 = vmul.f32 -1.442695, %v1087_v13 }
 0x479   :  { %7562 = vpow2.f32 %v5166_v7 }
 0x47a   :  { %7564 = vpow2.f32 %v5167_v14 }
 0x47b   :  { %7566 = vpow2.f32 %v5168_v15 }
 0x47c   :  { %7568 = vtanh.f32 %v1085_v4 }
 0x483   :  { %v7563_v16 = vpop.eup %7562 }
 0x484   :  { %v7565_v21 = vpop.eup %7564  ;;  %v1097_v22 = vadd.f32 1.0, %v7563_v16 }
 0x485   :  { %v1103_v23 = vadd.f32 1.0, %v7565_v21  ;;  %v7567_v26 = vpop.eup %7566 }
 0x486   :  { %7570 = vrcp.f32 %v1097_v22  ;;  %v7569_v27 = vpop.eup %7568  ;;  %v1110_v35 = vadd.f32 1.0, %v7567_v26 }
 0x487   :  { %7572 = vrcp.f32 %v1103_v23 }
 0x488   :  { %7574 = vrcp.f32 %v1110_v35 }
 0x490   :  { %v7571_v32 = vpop.eup %7570 }
 0x491   :  { %v7573_v33 = vpop.eup %7572  ;;  %v1114_v34 = vmul.f32 %v7571_v32, %v7569_v27 }
 0x492   :  { %v1113_v40 = vmul.f32 %v7573_v33, %v8491_v56  ;;  %v7575_v46 = vpop.eup %7574 }
 0x494   :  { %v8529_v45 = vadd.f32 %v1114_v34, %v1113_v40 }
 0x496   :  { %7576 = vtanh.f32 %v8529_v45 }
 0x4a0   :  { %v7577_v49 = vpop.eup %7576 }
 0x4a1   :  { %v1117_v50 = vmul.f32 %v7577_v49, %v7575_v46 }
 0x4a3   :  { %1183 = vmatmul.mubr.f32.vlgmr.msra.gmra.mrb[8].mxu0 %v1117_v50  ;;  %1254 = vmatmul.mubr.f32.vlgmr.msra.gmra.mrb[8].mxu1 %v1117_v50 }
 0x4a4   :  { %6038 = vmatpush1.bf16.msra.mxu0 %v8078_v59  ;;  %6070 = vmatpush1.bf16.msra.mxu1 %v8080_v60 }
 0x4a5   :  { %6040 = vmatprep.subr.bf16.mxu0 %v8098_v2  ;;  %6072 = vmatprep.subr.bf16.mxu1 %v8100_v3 }
 0x4a6   :  { %1352 = vmatprep.mubr.f32.mxu0 %v10027_v6  ;;  %1423 = vmatprep.mubr.f32.mxu1 %v10027_v6 }
 0x4a8   :  { %6042 = vmatpush1.bf16.msra.mxu0 %v8124_v10  ;;  %6074 = vmatpush1.bf16.msra.mxu1 %v8126_v11 }
 0x4a9   :  { %6044 = vmatprep.subr.bf16.mxu0 %v8145_v17  ;;  %6076 = vmatprep.subr.bf16.mxu1 %v8147_v18 }
 0x4ac   :  { %6046 = vmatpush1.bf16.msra.mxu0 %v8166_v24  ;;  %6078 = vmatpush1.bf16.msra.mxu1 %v8168_v25 }
 0x4ad   :  { %6048 = vmatprep.subr.bf16.mxu0 %v8186_v30  ;;  %6080 = vmatprep.subr.bf16.mxu1 %v8188_v31 }
 0x4b0   :  { %6050 = vmatpush1.bf16.msra.mxu0 %v8210_v36  ;;  %6082 = vmatpush1.bf16.msra.mxu1 %v8212_v37 }
 0x4b1   :  { %6052 = vmatprep.subr.bf16.mxu0 %v8231_v43  ;;  %6084 = vmatprep.subr.bf16.mxu1 %v8233_v44 }
 0x4b4   :  { %6054 = vmatpush1.bf16.msra.mxu0 %v8251_v52  ;;  %6086 = vmatpush1.bf16.msra.mxu1 %v8253_v53 }
 0x4b5   :  { %6056 = vmatprep.subr.bf16.mxu0 %v8272_v61  ;;  %6088 = vmatprep.subr.bf16.mxu1 %v8274_v63 }
 0x4b8   :  { %6058 = vmatpush1.bf16.msra.mxu0 %v8292_v9  ;;  %6090 = vmatpush1.bf16.msra.mxu1 %v8294_v12 }
 0x4b9   :  { %6060 = vmatprep.subr.bf16.mxu0 %v8313_v19  ;;  %6092 = vmatprep.subr.bf16.mxu1 %v8315_v20 }
 0x4bc   :  { %6062 = vmatpush1.bf16.msra.mxu0 %v8333_v28  ;;  %6094 = vmatpush1.bf16.msra.mxu1 %v8335_v29 }
 0x4bd   :  { %6064 = vmatprep.subr.bf16.mxu0 %v8354_v38  ;;  %6096 = vmatprep.subr.bf16.mxu1 %v8356_v39 }
 0x4c0   :  { %6066 = vmatpush1.bf16.msra.mxu0 %v8362_v41  ;;  %6098 = vmatpush1.bf16.msra.mxu1 %v8364_v42 }
 0x4c1   :  { %6100 = vmatprep.subr.bf16.mxu0 %v8046_v47  ;;  %6132 = vmatprep.subr.bf16.mxu1 %v8048_v48 }
 0x576   :  { %v1184_v51 = vpop.f32.mrb[8].mxu0  ;;  %v1255_v55 = vpop.f32.mrb[8].mxu1 }
 0x577   :  { %v5169_v56 = vmul.f32 -1.442695, %v1184_v51  ;;  %v1186_v57 = vpop.f32.mrb[9].mxu0  ;;  %v1257_v58 = vpop.f32.mrb[9].mxu1 }
 0x578   :  { %v5170_v0 = vmul.f32 -1.442695, %v1186_v57  ;;  %v5171_v1 = vmul.f32 -1.442695, %v1257_v58 }
 0x579   :  { %7578 = vpow2.f32 %v5169_v56 }
 0x57a   :  { %7580 = vpow2.f32 %v5170_v0 }
 0x57b   :  { %7582 = vpow2.f32 %v5171_v1 }
 0x57c   :  { %7584 = vtanh.f32 %v1255_v55 }
 0x583   :  { %v7579_v4 = vpop.eup %7578 }
 0x584   :  { %v7581_v7 = vpop.eup %7580  ;;  %v1267_v8 = vadd.f32 1.0, %v7579_v4 }
 0x585   :  { %v1273_v13 = vadd.f32 1.0, %v7581_v7  ;;  %v7583_v14 = vpop.eup %7582 }
 0x586   :  { %7586 = vrcp.f32 %v1267_v8  ;;  %v7585_v15 = vpop.eup %7584  ;;  %v1280_v23 = vadd.f32 1.0, %v7583_v14 }
 0x587   :  { %7588 = vrcp.f32 %v1273_v13 }
 0x588   :  { %7590 = vrcp.f32 %v1280_v23  ;;  %v1804_v23 = vld [vmem:[%s10022_s4 + $0x30] sm:$0xff] }
 0x590   :  { %v7587_v16 = vpop.eup %7586 }
 0x591   :  { %v7589_v21 = vpop.eup %7588  ;;  %v1284_v22 = vmul.f32 %v7587_v16, %v7585_v15 }
 0x592   :  { %v1283_v26 = vmul.f32 %v7589_v21, %v8529_v45  ;;  %v7591_v32 = vpop.eup %7590 }
 0x594   :  { %v8567_v27 = vadd.f32 %v1284_v22, %v1283_v26  ;;  %v1800_v22 = vld [vmem:[%s10022_s4 + $0x10] sm:$0xff] }
 0x595   :  { %v8677_v26 = vpack.c.bf16 %v1804_v23, %v1800_v22  ;;  %v1838_v22 = vld [vmem:[%s10022_s4 + $0x140] sm:$0xff] }
 0x596   :  { %7592 = vtanh.f32 %v8567_v27  ;;  %v1842_v23 = vld [vmem:[%s10022_s4 + $0x160] sm:$0xff] }
 0x5a0   :  { %v7593_v33 = vpop.eup %7592 }
 0x5a1   :  { %v1287_v34 = vmul.f32 %v7593_v33, %v7591_v32  ;;  %v1811_v32 = vld [vmem:[%s10022_s4 + $0x68] sm:$0xff]  ;;  %v1809_v33 = vld [vmem:[%s10022_s4 + $0x58] sm:$0xff] }
 0x5a3   :  { %1353 = vmatmul.mubr.f32.vlgmr.msra.gmra.mrb[10].mxu0 %v1287_v34  ;;  %1424 = vmatmul.mubr.f32.vlgmr.msra.gmra.mrb[10].mxu1 %v1287_v34 }
 0x5a4   :  { %6102 = vmatpush1.bf16.msra.mxu0 %v8078_v59  ;;  %6134 = vmatpush1.bf16.msra.mxu1 %v8080_v60 }
 0x5a5   :  { %6104 = vmatprep.subr.bf16.mxu0 %v8098_v2  ;;  %6136 = vmatprep.subr.bf16.mxu1 %v8100_v3 }
 0x5a6   :  { %1522 = vmatprep.mubr.f32.mxu0 %v10027_v6  ;;  %1593 = vmatprep.mubr.f32.mxu1 %v10027_v6 }
 0x5a8   :  { %6106 = vmatpush1.bf16.msra.mxu0 %v8124_v10  ;;  %6138 = vmatpush1.bf16.msra.mxu1 %v8126_v11 }
 0x5a9   :  { %6108 = vmatprep.subr.bf16.mxu0 %v8145_v17  ;;  %6140 = vmatprep.subr.bf16.mxu1 %v8147_v18 }
 0x5ac   :  { %6110 = vmatpush1.bf16.msra.mxu0 %v8166_v24  ;;  %6142 = vmatpush1.bf16.msra.mxu1 %v8168_v25 }
 0x5ad   :  { %6112 = vmatprep.subr.bf16.mxu0 %v8186_v30  ;;  %6144 = vmatprep.subr.bf16.mxu1 %v8188_v31 }
 0x5b0   :  { %6114 = vmatpush1.bf16.msra.mxu0 %v8210_v36  ;;  %6146 = vmatpush1.bf16.msra.mxu1 %v8212_v37 }
 0x5b1   :  { %6116 = vmatprep.subr.bf16.mxu0 %v8231_v43  ;;  %6148 = vmatprep.subr.bf16.mxu1 %v8233_v44 }
 0x5b4   :  { %6118 = vmatpush1.bf16.msra.mxu0 %v8251_v52  ;;  %6150 = vmatpush1.bf16.msra.mxu1 %v8253_v53 }
 0x5b5   :  { %6120 = vmatprep.subr.bf16.mxu0 %v8272_v61  ;;  %6152 = vmatprep.subr.bf16.mxu1 %v8274_v63 }
 0x5b8   :  { %6122 = vmatpush1.bf16.msra.mxu0 %v8292_v9  ;;  %6154 = vmatpush1.bf16.msra.mxu1 %v8294_v12 }
 0x5b9   :  { %6124 = vmatprep.subr.bf16.mxu0 %v8313_v19  ;;  %6156 = vmatprep.subr.bf16.mxu1 %v8315_v20 }
 0x5bc   :  { %6126 = vmatpush1.bf16.msra.mxu0 %v8333_v28  ;;  %6158 = vmatpush1.bf16.msra.mxu1 %v8335_v29 }
 0x5bd   :  { %6128 = vmatprep.subr.bf16.mxu0 %v8354_v38  ;;  %6160 = vmatprep.subr.bf16.mxu1 %v8356_v39 }
 0x5c0   :  { %6130 = vmatpush1.bf16.msra.mxu0 %v8362_v41  ;;  %6162 = vmatpush1.bf16.msra.mxu1 %v8364_v42 }
 0x5c1   :  { %6164 = vmatprep.subr.bf16.mxu0 %v8046_v47  ;;  %6196 = vmatprep.subr.bf16.mxu1 %v8048_v48 }
 0x676   :  { %v1354_v35 = vpop.f32.mrb[10].mxu0  ;;  %v1425_v40 = vpop.f32.mrb[10].mxu1 }
 0x677   :  { %v5172_v45 = vmul.f32 -1.442695, %v1354_v35  ;;  %v1356_v46 = vpop.f32.mrb[11].mxu0  ;;  %v1427_v49 = vpop.f32.mrb[11].mxu1  ;;  %v1813_v35 = vld [vmem:[%s10022_s4 + $0x78] sm:$0xff] }
 0x678   :  { %v5173_v50 = vmul.f32 -1.442695, %v1356_v46  ;;  %v5174_v51 = vmul.f32 -1.442695, %v1427_v49  ;;  %v8702_v46 = vpack.c.bf16 %v1813_v35, %v1809_v33  ;;  %v1840_v33 = vld [vmem:[%s10022_s4 + $0x150] sm:$0xff] }
 0x679   :  { %7594 = vpow2.f32 %v5172_v45  ;;  %v1810_v45 = vld [vmem:[%s10022_s4 + $0x60] sm:$0xff]  ;;  %v1844_v35 = vld [vmem:[%s10022_s4 + $0x170] sm:$0xff] }
 0x67a   :  { %7596 = vpow2.f32 %v5173_v50  ;;  %v1808_v50 = vld [vmem:[%s10022_s4 + $0x50] sm:$0xff] }
 0x67b   :  { %7598 = vpow2.f32 %v5174_v51  ;;  %v1812_v51 = vld [vmem:[%s10022_s4 + $0x70] sm:$0xff] }
 0x67c   :  { %7600 = vtanh.f32 %v1425_v40  ;;  %v1806_v40 = vld [vmem:[%s10022_s4 + $0x40] sm:$0xff] }
 0x67d   :  { %v8704_v49 = vpack.c.bf16 %v1810_v45, %v1806_v40  ;;  %v1847_v40 = vld [vmem:[%s10022_s4 + $0x188] sm:$0xff]  ;;  %v8860_v45 = vpack.c.bf16 %v1844_v35, %v1840_v33 }
 0x67f   :  { %10137 = vst [vmem:[#allocation19_spill] sm:$0xff] %v8860_v45 }
 0x683   :  { %v7595_v55 = vpop.eup %7594 }
 0x684   :  { %v7597_v56 = vpop.eup %7596  ;;  %v1437_v57 = vadd.f32 1.0, %v7595_v55  ;;  %v8713_v55 = vpack.c.bf16 %v1812_v51, %v1808_v50  ;;  %v1851_v50 = vld [vmem:[%s10022_s4 + $0x1a8] sm:$0xff]  ;;  %v1849_v51 = vld [vmem:[%s10022_s4 + $0x198] sm:$0xff] }
 0x685   :  { %v1443_v58 = vadd.f32 1.0, %v7597_v56  ;;  %v7599_v47 = vpop.eup %7598  ;;  %v1815_v56 = vld [vmem:[%s10022_s4 + $0x88] sm:$0xff] }
 0x686   :  { %7602 = vrcp.f32 %v1437_v57  ;;  %v7601_v0 = vpop.eup %7600  ;;  %v1450_v7 = vadd.f32 1.0, %v7599_v47  ;;  %v1819_v57 = vld [vmem:[%s10022_s4 + $0xa8] sm:$0xff] }
 0x687   :  { %7604 = vrcp.f32 %v1443_v58  ;;  %v1817_v58 = vld [vmem:[%s10022_s4 + $0x98] sm:$0xff]  ;;  %v8727_v47 = vpack.c.bf16 %v1819_v57, %v1815_v56  ;;  %v8873_v57 = vpack.c.bf16 %v1851_v50, %v1847_v40 }
 0x688   :  { %7606 = vrcp.f32 %v1450_v7  ;;  %v1853_v56 = vld [vmem:[%s10022_s4 + $0x1b8] sm:$0xff] }
 0x689   :  { %10122 = vst [vmem:[#allocation4_spill] sm:$0xff] %v8727_v47  ;;  %10138 = vst [vmem:[#allocation20_spill] sm:$0xff] %v8873_v57 }
 0x690   :  { %v7603_v48 = vpop.eup %7602 }
 0x691   :  { %v7605_v1 = vpop.eup %7604  ;;  %v1454_v4 = vmul.f32 %v7603_v48, %v7601_v0  ;;  %v1821_v0 = vld [vmem:[%s10022_s4 + $0xb8] sm:$0xff]  ;;  %v1814_v48 = vld [vmem:[%s10022_s4 + $0x80] sm:$0xff] }
 0x692   :  { %v1453_v8 = vmul.f32 %v7605_v1, %v8567_v27  ;;  %v7607_v14 = vpop.eup %7606  ;;  %v1807_v27 = vld [vmem:[%s10022_s4 + $0x48] sm:$0xff]  ;;  %v1818_v1 = vld [vmem:[%s10022_s4 + $0xa0] sm:$0xff] }
 0x693   :  { %v8691_v34 = vpack.c.bf16 %v1811_v32, %v1807_v27  ;;  %v8740_v7 = vpack.c.bf16 %v1818_v1, %v1814_v48  ;;  %v8848_v32 = vpack.c.bf16 %v1842_v23, %v1838_v22  ;;  %v1850_v48 = vld [vmem:[%s10022_s4 + $0x1a0] sm:$0xff]  ;;  %v1848_v1 = vld [vmem:[%s10022_s4 + $0x190] sm:$0xff] }
 0x694   :  { %v8605_v13 = vadd.f32 %v1454_v4, %v1453_v8  ;;  %v8738_v4 = vpack.c.bf16 %v1821_v0, %v1817_v58  ;;  %v1816_v8 = vld [vmem:[%s10022_s4 + $0x90] sm:$0xff]  ;;  %v8875_v58 = vpack.c.bf16 %v1853_v56, %v1849_v51  ;;  %v1846_v0 = vld [vmem:[%s10022_s4 + $0x180] sm:$0xff] }
 0x695   :  { %10124 = vst [vmem:[#allocation6_spill] sm:$0xff] %v8740_v7  ;;  %10136 = vst [vmem:[#allocation18_spill] sm:$0xff] %v8848_v32 }
 0x696   :  { %7608 = vtanh.f32 %v8605_v13  ;;  %10123 = vst [vmem:[#allocation5_spill] sm:$0xff] %v8738_v4  ;;  %10139 = vst [vmem:[#allocation21_spill] sm:$0xff] %v8875_v58 }
 0x6a0   :  { %v7609_v15 = vpop.eup %7608 }
 0x6a1   :  { %v1457_v16 = vmul.f32 %v7609_v15, %v7607_v14  ;;  %v1823_v15 = vld [vmem:[%s10022_s4 + $0xc8] sm:$0xff] }
 0x6a3   :  { %1523 = vmatmul.mubr.f32.vlgmr.msra.gmra.mrb[12].mxu0 %v1457_v16  ;;  %1594 = vmatmul.mubr.f32.vlgmr.msra.gmra.mrb[12].mxu1 %v1457_v16  ;;  %v1827_v16 = vld [vmem:[%s10022_s4 + $0xe8] sm:$0xff] }
 0x6a4   :  { %6166 = vmatpush1.bf16.msra.mxu0 %v8078_v59  ;;  %6198 = vmatpush1.bf16.msra.mxu1 %v8080_v60 }
 0x6a5   :  { %6168 = vmatprep.subr.bf16.mxu0 %v8098_v2  ;;  %6200 = vmatprep.subr.bf16.mxu1 %v8100_v3 }
 0x6a6   :  { %1692 = vmatprep.mubr.f32.mxu0 %v10027_v6  ;;  %1763 = vmatprep.mubr.f32.mxu1 %v10027_v6 }
 0x6a8   :  { %6170 = vmatpush1.bf16.msra.mxu0 %v8124_v10  ;;  %6202 = vmatpush1.bf16.msra.mxu1 %v8126_v11 }
 0x6a9   :  { %6172 = vmatprep.subr.bf16.mxu0 %v8145_v17  ;;  %6204 = vmatprep.subr.bf16.mxu1 %v8147_v18 }
 0x6ac   :  { %6174 = vmatpush1.bf16.msra.mxu0 %v8166_v24  ;;  %6206 = vmatpush1.bf16.msra.mxu1 %v8168_v25 }
 0x6ad   :  { %6176 = vmatprep.subr.bf16.mxu0 %v8186_v30  ;;  %6208 = vmatprep.subr.bf16.mxu1 %v8188_v31 }
 0x6b0   :  { %6178 = vmatpush1.bf16.msra.mxu0 %v8210_v36  ;;  %6210 = vmatpush1.bf16.msra.mxu1 %v8212_v37 }
 0x6b1   :  { %6180 = vmatprep.subr.bf16.mxu0 %v8231_v43  ;;  %6212 = vmatprep.subr.bf16.mxu1 %v8233_v44 }
 0x6b4   :  { %6182 = vmatpush1.bf16.msra.mxu0 %v8251_v52  ;;  %6214 = vmatpush1.bf16.msra.mxu1 %v8253_v53 }
 0x6b5   :  { %6184 = vmatprep.subr.bf16.mxu0 %v8272_v61  ;;  %6216 = vmatprep.subr.bf16.mxu1 %v8274_v63 }
 0x6b8   :  { %6186 = vmatpush1.bf16.msra.mxu0 %v8292_v9  ;;  %6218 = vmatpush1.bf16.msra.mxu1 %v8294_v12 }
 0x6b9   :  { %6188 = vmatprep.subr.bf16.mxu0 %v8313_v19  ;;  %6220 = vmatprep.subr.bf16.mxu1 %v8315_v20  ;;  %v1799_v19 = vld [vmem:[%s10022_s4 + $0x8] sm:$0xff] }
 0x6ba   :  { %v1803_v20 = vld [vmem:[%s10022_s4 + $0x28] sm:$0xff] }
 0x6bc   :  { %6190 = vmatpush1.bf16.msra.mxu0 %v8333_v28  ;;  %6222 = vmatpush1.bf16.msra.mxu1 %v8335_v29  ;;  %v1801_v28 = vld [vmem:[%s10022_s4 + $0x18] sm:$0xff]  ;;  %v8655_v29 = vpack.c.bf16 %v1803_v20, %v1799_v19  ;;  %v1839_v20 = vld [vmem:[%s10022_s4 + $0x148] sm:$0xff] }
 0x6bd   :  { %6192 = vmatprep.subr.bf16.mxu0 %v8354_v38  ;;  %6224 = vmatprep.subr.bf16.mxu1 %v8356_v39  ;;  %v1805_v38 = vld [vmem:[%s10022_s4 + $0x38] sm:$0xff]  ;;  %v1798_v39 = vld [vmem:[%s10022_s4] sm:$0xff] }
 0x6be   :  { %10120 = vst [vmem:[#allocation2_spill] sm:$0xff] %v8655_v29 }
 0x6c0   :  { %6194 = vmatpush1.bf16.msra.mxu0 %v8362_v41  ;;  %6226 = vmatpush1.bf16.msra.mxu1 %v8364_v42  ;;  %v1802_v41 = vld [vmem:[%s10022_s4 + $0x20] sm:$0xff]  ;;  %v8666_v42 = vpack.c.bf16 %v1805_v38, %v1801_v28  ;;  %v1843_v28 = vld [vmem:[%s10022_s4 + $0x168] sm:$0xff]  ;;  %v1841_v38 = vld [vmem:[%s10022_s4 + $0x158] sm:$0xff] }
 0x6c1   :  { %v8668_v21 = vpack.c.bf16 %v1802_v41, %v1798_v39  ;;  %6228 = vmatprep.subr.bf16.mxu0 %v8655_v29  ;;  %v8835_v39 = vpack.c.bf16 %v1843_v28, %v1839_v20  ;;  %v1845_v41 = vld [vmem:[%s10022_s4 + $0x178] sm:$0xff] }
 0x6c2   :  { %10121 = vst [vmem:[#allocation3_spill] sm:$0xff] %v8666_v42  ;;  %6260 = vmatprep.subr.bf16.mxu1 %v8666_v42  ;;  %v8846_v27 = vpack.c.bf16 %v1845_v41, %v1841_v38  ;;  %v1869_v28 = vld [vmem:[%s10023_s3 + $0x38] sm:$0xff] }
 0x6c3   :  { %10134 = vst [vmem:[#allocation16_spill] sm:$0xff] %v8835_v39 }
 0x6c4   :  { %10135 = vst [vmem:[#allocation17_spill] sm:$0xff] %v8846_v27 }
 0x776   :  { %v1524_v59 = vpop.f32.mrb[12].mxu0  ;;  %v1595_v60 = vpop.f32.mrb[12].mxu1 }
 0x777   :  { %v5175_v2 = vmul.f32 -1.442695, %v1524_v59  ;;  %v1526_v3 = vpop.f32.mrb[13].mxu0  ;;  %v1597_v10 = vpop.f32.mrb[13].mxu1  ;;  %v1825_v59 = vld [vmem:[%s10022_s4 + $0xd8] sm:$0xff] }
 0x778   :  { %v5176_v11 = vmul.f32 -1.442695, %v1526_v3  ;;  %v5177_v17 = vmul.f32 -1.442695, %v1597_v10  ;;  %v1822_v3 = vld [vmem:[%s10022_s4 + $0xc0] sm:$0xff] }
 0x779   :  { %7610 = vpow2.f32 %v5175_v2  ;;  %v1829_v2 = vld [vmem:[%s10022_s4 + $0xf8] sm:$0xff]  ;;  %v1826_v10 = vld [vmem:[%s10022_s4 + $0xe0] sm:$0xff] }
 0x77a   :  { %7612 = vpow2.f32 %v5176_v11  ;;  %v8774_v11 = vpack.c.bf16 %v1829_v2, %v1825_v59 }
 0x77b   :  { %7614 = vpow2.f32 %v5177_v17  ;;  %v8776_v17 = vpack.c.bf16 %v1826_v10, %v1822_v3  ;;  %v1857_v3 = vld [vmem:[%s10022_s4 + $0x1d8] sm:$0xff] }
 0x77c   :  { %7616 = vtanh.f32 %v1595_v60  ;;  %v8763_v60 = vpack.c.bf16 %v1827_v16, %v1823_v15  ;;  %10127 = vst [vmem:[#allocation9_spill] sm:$0xff] %v8774_v11  ;;  %v1855_v15 = vld [vmem:[%s10022_s4 + $0x1c8] sm:$0xff]  ;;  %v1861_v10 = vld [vmem:[%s10022_s4 + $0x1f8] sm:$0xff] }
 0x77d   :  { %10128 = vst [vmem:[#allocation10_spill] sm:$0xff] %v8776_v17  ;;  %v1859_v16 = vld [vmem:[%s10022_s4 + $0x1e8] sm:$0xff] }
 0x77e   :  { %10126 = vst [vmem:[#allocation8_spill] sm:$0xff] %v8763_v60  ;;  %v8902_v2 = vpack.c.bf16 %v1859_v16, %v1855_v15 }
 0x780   :  { %10142 = vst [vmem:[#allocation24_spill] sm:$0xff] %v8902_v2 }
 0x783   :  { %v7611_v18 = vpop.eup %7610 }
 0x784   :  { %v7613_v24 = vpop.eup %7612  ;;  %v1607_v25 = vadd.f32 1.0, %v7611_v18  ;;  %v1824_v18 = vld [vmem:[%s10022_s4 + $0xd0] sm:$0xff] }
 0x785   :  { %v1613_v30 = vadd.f32 1.0, %v7613_v24  ;;  %v7615_v31 = vpop.eup %7614  ;;  %v1828_v24 = vld [vmem:[%s10022_s4 + $0xf0] sm:$0xff] }
 0x786   :  { %7618 = vrcp.f32 %v1607_v25  ;;  %v7617_v36 = vpop.eup %7616  ;;  %v1620_v52 = vadd.f32 1.0, %v7615_v31  ;;  %v8785_v25 = vpack.c.bf16 %v1828_v24, %v1824_v18  ;;  %v1835_v31 = vld [vmem:[%s10022_s4 + $0x128] sm:$0xff]  ;;  %v1854_v18 = vld [vmem:[%s10022_s4 + $0x1c0] sm:$0xff]  ;;  %v8913_v24 = vpack.c.bf16 %v1861_v10, %v1857_v3 }
 0x787   :  { %7620 = vrcp.f32 %v1613_v30  ;;  %v1831_v30 = vld [vmem:[%s10022_s4 + $0x108] sm:$0xff] }
 0x788   :  { %7622 = vrcp.f32 %v1620_v52  ;;  %10129 = vst [vmem:[#allocation11_spill] sm:$0xff] %v8785_v25  ;;  %v1834_v52 = vld [vmem:[%s10022_s4 + $0x120] sm:$0xff]  ;;  %10143 = vst [vmem:[#allocation25_spill] sm:$0xff] %v8913_v24 }
 0x790   :  { %v7619_v37 = vpop.eup %7618 }
 0x791   :  { %v7621_v43 = vpop.eup %7620  ;;  %v1624_v44 = vmul.f32 %v7619_v37, %v7617_v36  ;;  %v1833_v36 = vld [vmem:[%s10022_s4 + $0x118] sm:$0xff]  ;;  %v8799_v37 = vpack.c.bf16 %v1835_v31, %v1831_v30  ;;  %v1858_v30 = vld [vmem:[%s10022_s4 + $0x1e0] sm:$0xff]  ;;  %v1856_v31 = vld [vmem:[%s10022_s4 + $0x1d0] sm:$0xff] }
 0x792   :  { %v1623_v53 = vmul.f32 %v7621_v43, %v8605_v13  ;;  %v7623_v63 = vpop.eup %7622  ;;  %v1820_v13 = vld [vmem:[%s10022_s4 + $0xb0] sm:$0xff]  ;;  %v1837_v43 = vld [vmem:[%s10022_s4 + $0x138] sm:$0xff] }
 0x793   :  { %v8749_v14 = vpack.c.bf16 %v1820_v13, %v1816_v8  ;;  %10130 = vst [vmem:[#allocation12_spill] sm:$0xff] %v8799_v37  ;;  %v8887_v8 = vpack.c.bf16 %v1850_v48, %v1846_v0  ;;  %v1852_v13 = vld [vmem:[%s10022_s4 + $0x1b0] sm:$0xff] }
 0x794   :  { %v8641_v61 = vadd.f32 %v1624_v44, %v1623_v53  ;;  %v1830_v44 = vld [vmem:[%s10022_s4 + $0x100] sm:$0xff]  ;;  %v8810_v53 = vpack.c.bf16 %v1837_v43, %v1833_v36  ;;  %v8900_v59 = vpack.c.bf16 %v1852_v13, %v1848_v1  ;;  %v1860_v36 = vld [vmem:[%s10022_s4 + $0x1f0] sm:$0xff]  ;;  %v8925_v43 = vpack.c.bf16 %v1858_v30, %v1854_v18 }
 0x795   :  { %10125 = vst [vmem:[#allocation7_spill] sm:$0xff] %v8749_v14  ;;  %10140 = vst [vmem:[#allocation22_spill] sm:$0xff] %v8887_v8 }
 0x796   :  { %7624 = vtanh.f32 %v8641_v61  ;;  %10131 = vst [vmem:[#allocation13_spill] sm:$0xff] %v8810_v53  ;;  %10141 = vst [vmem:[#allocation23_spill] sm:$0xff] %v8900_v59 }
 0x797   :  { %10144 = vst [vmem:[#allocation26_spill] sm:$0xff] %v8925_v43 }
 0x7a0   :  { %v7625_v9 = vpop.eup %7624 }
 0x7a1   :  { %v1627_v12 = vmul.f32 %v7625_v9, %v7623_v63  ;;  %v8812_v63 = vpack.c.bf16 %v1834_v52, %v1830_v44  ;;  %v1832_v9 = vld [vmem:[%s10022_s4 + $0x110] sm:$0xff]  ;;  %v1863_v44 = vld [vmem:[%s10023_s3 + $0x8] sm:$0xff] }
 0x7a2   :  { %v1867_v52 = vld [vmem:[%s10023_s3 + $0x28] sm:$0xff] }
 0x7a3   :  { %1693 = vmatmul.mubr.f32.vlgmr.msra.gmra.mrb[14].mxu0 %v1627_v12  ;;  %1764 = vmatmul.mubr.f32.vlgmr.msra.gmra.mrb[14].mxu1 %v1627_v12  ;;  %10132 = vst [vmem:[#allocation14_spill] sm:$0xff] %v8812_v63  ;;  %v1836_v12 = vld [vmem:[%s10022_s4 + $0x130] sm:$0xff]  ;;  %v8940_v20 = vpack.c.bf16 %v1867_v52, %v1863_v44  ;;  %v1871_v52 = vld [vmem:[%s10023_s3 + $0x48] sm:$0xff] }
 0x7a4   :  { %2007 = vmatprep.mubr.f32.mxu0 %v10027_v6  ;;  %2078 = vmatprep.mubr.f32.mxu1 %v10027_v6  ;;  %v8821_v19 = vpack.c.bf16 %v1836_v12, %v1832_v9  ;;  %v1865_v9 = vld [vmem:[%s10023_s3 + $0x18] sm:$0xff]  ;;  %v8938_v12 = vpack.c.bf16 %v1860_v36, %v1856_v31  ;;  %v1862_v31 = vld [vmem:[%s10023_s3] sm:$0xff]  ;;  %v1864_v44 = vld [vmem:[%s10023_s3 + $0x10] sm:$0xff] }
 0x7a5   :  { %6230 = vmatpush1.bf16.msra.mxu0 %v8668_v21  ;;  %6262 = vmatpush1.bf16.msra.mxu1 %v8677_v26  ;;  %v8946_v38 = vpack.c.bf16 %v1869_v28, %v1865_v9  ;;  %v1866_v36 = vld [vmem:[%s10023_s3 + $0x20] sm:$0xff]  ;;  %v1875_v9 = vld [vmem:[%s10023_s3 + $0x68] sm:$0xff]  ;;  %v1873_v28 = vld [vmem:[%s10023_s3 + $0x58] sm:$0xff] }
 0x7a6   :  { %6232 = vmatprep.subr.bf16.mxu0 %v8691_v34  ;;  %6264 = vmatprep.subr.bf16.mxu1 %v8702_v46  ;;  %10133 = vst [vmem:[#allocation15_spill] sm:$0xff] %v8821_v19  ;;  %10145 = vst [vmem:[#allocation27_spill] sm:$0xff] %v8938_v12 }
 0x7a7   :  { %10146 = vst [vmem:[#allocation28_spill] sm:$0xff] %v8946_v38 }
 0x7a9   :  { %6234 = vmatpush1.bf16.msra.mxu0 %v8704_v49  ;;  %6266 = vmatpush1.bf16.msra.mxu1 %v8713_v55 }
 0x7aa   :  { %6236 = vmatprep.subr.bf16.mxu0 %v8727_v47  ;;  %6268 = vmatprep.subr.bf16.mxu1 %v8738_v4 }
 0x7ad   :  { %6238 = vmatpush1.bf16.msra.mxu0 %v8740_v7  ;;  %6270 = vmatpush1.bf16.msra.mxu1 %v8749_v14 }
 0x7ae   :  { %6240 = vmatprep.subr.bf16.mxu0 %v8763_v60  ;;  %6272 = vmatprep.subr.bf16.mxu1 %v8774_v11 }
 0x7b1   :  { %6242 = vmatpush1.bf16.msra.mxu0 %v8776_v17  ;;  %6274 = vmatpush1.bf16.msra.mxu1 %v8785_v25 }
 0x7b2   :  { %6244 = vmatprep.subr.bf16.mxu0 %v8799_v37  ;;  %6276 = vmatprep.subr.bf16.mxu1 %v8810_v53 }
 0x7b5   :  { %6246 = vmatpush1.bf16.msra.mxu0 %v8812_v63  ;;  %6278 = vmatpush1.bf16.msra.mxu1 %v8821_v19 }
 0x7b6   :  { %6248 = vmatprep.subr.bf16.mxu0 %v8835_v39  ;;  %6280 = vmatprep.subr.bf16.mxu1 %v8846_v27 }
 0x7b9   :  { %6250 = vmatpush1.bf16.msra.mxu0 %v8848_v32  ;;  %6282 = vmatpush1.bf16.msra.mxu1 %v8860_v45 }
 0x7ba   :  { %6252 = vmatprep.subr.bf16.mxu0 %v8873_v57  ;;  %6284 = vmatprep.subr.bf16.mxu1 %v8875_v58 }
 0x7bd   :  { %6254 = vmatpush1.bf16.msra.mxu0 %v8887_v8  ;;  %6286 = vmatpush1.bf16.msra.mxu1 %v8900_v59 }
 0x7be   :  { %6256 = vmatprep.subr.bf16.mxu0 %v8902_v2  ;;  %6288 = vmatprep.subr.bf16.mxu1 %v8913_v24 }
 0x7c1   :  { %6258 = vmatpush1.bf16.msra.mxu0 %v8925_v43  ;;  %6290 = vmatpush1.bf16.msra.mxu1 %v8938_v12 }
 0x7c2   :  { %6292 = vmatprep.subr.bf16.mxu0 %v8940_v20  ;;  %6324 = vmatprep.subr.bf16.mxu1 %v8946_v38 }
 0x876   :  { %v1694_v41 = vpop.f32.mrb[14].mxu0  ;;  %v1765_v22 = vpop.f32.mrb[14].mxu1 }
 0x877   :  { %v5178_v23 = vmul.f32 -1.442695, %v1694_v41  ;;  %v1696_v33 = vpop.f32.mrb[15].mxu0  ;;  %v1767_v35 = vpop.f32.mrb[15].mxu1  ;;  %v1877_v41 = vld [vmem:[%s10023_s3 + $0x78] sm:$0xff] }
 0x878   :  { %v5179_v40 = vmul.f32 -1.442695, %v1696_v33  ;;  %v5180_v50 = vmul.f32 -1.442695, %v1767_v35  ;;  %v8980_v33 = vpack.c.bf16 %v1866_v36, %v1862_v31  ;;  %v1878_v31 = vld [vmem:[%s10023_s3 + $0x80] sm:$0xff] }
 0x879   :  { %7626 = vpow2.f32 %v5178_v23  ;;  %v1882_v36 = vld [vmem:[%s10023_s3 + $0xa0] sm:$0xff] }
 0x87a   :  { %7628 = vpow2.f32 %v5179_v40  ;;  %10147 = vst [vmem:[#allocation29_spill] sm:$0xff] %v8980_v33  ;;  %v1870_v40 = vld [vmem:[%s10023_s3 + $0x40] sm:$0xff] }
 0x87b   :  { %7630 = vpow2.f32 %v5180_v50  ;;  %v1874_v50 = vld [vmem:[%s10023_s3 + $0x60] sm:$0xff] }
 0x87c   :  { %7632 = vtanh.f32 %v1765_v22 }
 0x883   :  { %v7627_v51 = vpop.eup %7626 }
 0x884   :  { %v7629_v56 = vpop.eup %7628  ;;  %v1777_v0 = vadd.f32 1.0, %v7627_v51 }
 0x885   :  { %v1783_v48 = vadd.f32 1.0, %v7629_v56  ;;  %v7631_v1 = vpop.eup %7630  ;;  %v8990_v56 = vpack.c.bf16 %v1875_v9, %v1871_v52  ;;  %v1880_v52 = vld [vmem:[%s10023_s3 + $0x90] sm:$0xff] }
 0x886   :  { %7634 = vrcp.f32 %v1777_v0  ;;  %v7633_v13 = vpop.eup %7632  ;;  %v1790_v10 = vadd.f32 1.0, %v7631_v1  ;;  %v8992_v0 = vpack.c.bf16 %v1877_v41, %v1873_v28  ;;  %v1876_v1 = vld [vmem:[%s10023_s3 + $0x70] sm:$0xff]  ;;  %v1887_v28 = vld [vmem:[%s10023_s3 + $0xc8] sm:$0xff] }
 0x887   :  { %7636 = vrcp.f32 %v1783_v48  ;;  %10148 = vst [vmem:[#allocation30_spill] sm:$0xff] %v8990_v56  ;;  %v1872_v48 = vld [vmem:[%s10023_s3 + $0x50] sm:$0xff]  ;;  %v1891_v41 = vld [vmem:[%s10023_s3 + $0xe8] sm:$0xff] }
 0x888   :  { %7638 = vrcp.f32 %v1790_v10  ;;  %v9014_v10 = vpack.c.bf16 %v1874_v50, %v1870_v40  ;;  %v1884_v9 = vld [vmem:[%s10023_s3 + $0xb0] sm:$0xff]  ;;  %v9052_v40 = vpack.c.bf16 %v1882_v36, %v1878_v31  ;;  %v1899_v31 = vld [vmem:[%s10023_s3 + $0x128] sm:$0xff]  ;;  %v1897_v36 = vld [vmem:[%s10023_s3 + $0x118] sm:$0xff] }
 0x889   :  { %v9054_v50 = vpack.c.bf16 %v1884_v9, %v1880_v52  ;;  %v1901_v52 = vld [vmem:[%s10023_s3 + $0x138] sm:$0xff] }
 0x88a   :  { %10149 = vst [vmem:[#allocation31_spill] sm:$0xff] %v9014_v10  ;;  %10151 = vst [vmem:[#allocation33_spill] sm:$0xff] %v9052_v40 }
 0x890   :  { %v7635_v15 = vpop.eup %7634 }
 0x891   :  { %v7637_v16 = vpop.eup %7636  ;;  %v1794_v3 = vmul.f32 %v7635_v15, %v7633_v13  ;;  %v1879_v13 = vld [vmem:[%s10023_s3 + $0x88] sm:$0xff] }
 0x892   :  { %v1793_v18 = vmul.f32 %v7637_v16, %v8641_v61  ;;  %v1868_v61 = vld [vmem:[%s10023_s3 + $0x30] sm:$0xff]  ;;  %v7639_v22 = vpop.eup %7638  ;;  %v1883_v15 = vld [vmem:[%s10023_s3 + $0xa8] sm:$0xff]  ;;  %v1881_v16 = vld [vmem:[%s10023_s3 + $0x98] sm:$0xff] }
 0x893   :  { %v8982_v35 = vpack.c.bf16 %v1868_v61, %v1864_v44  ;;  %v9026_v44 = vpack.c.bf16 %v1883_v15, %v1879_v13  ;;  %v1888_v15 = vld [vmem:[%s10023_s3 + $0xd0] sm:$0xff] }
 0x894   :  { %v8953_v30 = vadd.f32 %v1794_v3, %v1793_v18  ;;  %v1885_v3 = vld [vmem:[%s10023_s3 + $0xb8] sm:$0xff]  ;;  %v9016_v18 = vpack.c.bf16 %v1876_v1, %v1872_v48  ;;  %v1890_v48 = vld [vmem:[%s10023_s3 + $0xe0] sm:$0xff]  ;;  %v9064_v1 = vpack.c.bf16 %v1891_v41, %v1887_v28 }
 0x895   :  { %10150 = vst [vmem:[#allocation32_spill] sm:$0xff] %v9026_v44  ;;  %v9028_v61 = vpack.c.bf16 %v1885_v3, %v1881_v16  ;;  %v1892_v16 = vld [vmem:[%s10023_s3 + $0xf0] sm:$0xff]  ;;  %v1895_v3 = vld [vmem:[%s10023_s3 + $0x108] sm:$0xff]  ;;  %v1894_v41 = vld [vmem:[%s10023_s3 + $0x100] sm:$0xff] }
 0x896   :  { %7640 = vtanh.f32 %v8953_v30  ;;  %10152 = vst [vmem:[#allocation34_spill] sm:$0xff] %v9064_v1  ;;  %v9090_v28 = vpack.c.bf16 %v1892_v16, %v1888_v15  ;;  %v1903_v15 = vld [vmem:[%s10023_s3 + $0x148] sm:$0xff] }
 0x897   :  { %v1907_v16 = vld [vmem:[%s10023_s3 + $0x168] sm:$0xff] }
 0x8a0   :  { %v7641_v23 = vpop.eup %7640 }
 0x8a1   :  { %v1797_v51 = vmul.f32 %v7641_v23, %v7639_v22  ;;  %v1889_v22 = vld [vmem:[%s10023_s3 + $0xd8] sm:$0xff] }
 0x8a2   :  { %v1893_v23 = vld [vmem:[%s10023_s3 + $0xf8] sm:$0xff] }
 0x8a3   :  { %2008 = vmatmul.mubr.f32.vlgmr.msra.gmra.mrb[16].mxu0 %v1797_v51  ;;  %2079 = vmatmul.mubr.f32.vlgmr.msra.gmra.mrb[16].mxu1 %v1797_v51  ;;  %v1886_v51 = vld [vmem:[%s10023_s3 + $0xc0] sm:$0xff]  ;;  %v9066_v13 = vpack.c.bf16 %v1893_v23, %v1889_v22  ;;  %v9100_v23 = vpack.c.bf16 %v1899_v31, %v1895_v3  ;;  %v1905_v3 = vld [vmem:[%s10023_s3 + $0x158] sm:$0xff] }
 0x8a4   :  { %6294 = vmatpush1.bf16.msra.mxu0 %v8980_v33  ;;  %6326 = vmatpush1.bf16.msra.mxu1 %v8982_v35  ;;  %v9088_v9 = vpack.c.bf16 %v1890_v48, %v1886_v51  ;;  %v1898_v22 = vld [vmem:[%s10023_s3 + $0x120] sm:$0xff]  ;;  %v1896_v51 = vld [vmem:[%s10023_s3 + $0x110] sm:$0xff]  ;;  %v1909_v31 = vld [vmem:[%s10023_s3 + $0x178] sm:$0xff] }
 0x8a5   :  { %6296 = vmatprep.subr.bf16.mxu0 %v8990_v56  ;;  %6328 = vmatprep.subr.bf16.mxu1 %v8992_v0  ;;  %10154 = vst [vmem:[#allocation36_spill] sm:$0xff] %v9100_v23  ;;  %v1900_v48 = vld [vmem:[%s10023_s3 + $0x130] sm:$0xff] }
 0x8a6   :  { %2149 = vmatprep.mubr.f32.mxu0 %v10027_v6  ;;  %2220 = vmatprep.mubr.f32.mxu1 %v10027_v6  ;;  %10153 = vst [vmem:[#allocation35_spill] sm:$0xff] %v9088_v9  ;;  %v9102_v6 = vpack.c.bf16 %v1901_v52, %v1897_v36  ;;  %v9124_v36 = vpack.c.bf16 %v1898_v22, %v1894_v41  ;;  %v1904_v41 = vld [vmem:[%s10023_s3 + $0x150] sm:$0xff] }
 0x8a7   :  { %v9126_v52 = vpack.c.bf16 %v1900_v48, %v1896_v51  ;;  %v1908_v22 = vld [vmem:[%s10023_s3 + $0x170] sm:$0xff]  ;;  %v1911_v51 = vld [vmem:[%s10023_s3 + $0x188] sm:$0xff] }
 0x8a8   :  { %6298 = vmatpush1.bf16.msra.mxu0 %v9014_v10  ;;  %6330 = vmatpush1.bf16.msra.mxu1 %v9016_v18  ;;  %10155 = vst [vmem:[#allocation37_spill] sm:$0xff] %v9124_v36  ;;  %v1915_v48 = vld [vmem:[%s10023_s3 + $0x1a8] sm:$0xff] }
 0x8a9   :  { %6300 = vmatprep.subr.bf16.mxu0 %v9026_v44  ;;  %6332 = vmatprep.subr.bf16.mxu1 %v9028_v61  ;;  %v1914_v44 = vld [vmem:[%s10023_s3 + $0x1a0] sm:$0xff]  ;;  %v9172_v10 = vpack.c.bf16 %v1915_v48, %v1911_v51  ;;  %v1921_v51 = vld [vmem:[%s10023_s3 + $0x1d8] sm:$0xff] }
 0x8aa   :  { %v1925_v48 = vld [vmem:[%s10023_s3 + $0x1f8] sm:$0xff] }
 0x8ab   :  { %10158 = vst [vmem:[#allocation40_spill] sm:$0xff] %v9172_v10  ;;  %v9207_v33 = vpack.c.bf16 %v1925_v48, %v1921_v51 }
 0x8ac   :  { %6302 = vmatpush1.bf16.msra.mxu0 %v9052_v40  ;;  %6334 = vmatpush1.bf16.msra.mxu1 %v9054_v50  ;;  %v9136_v40 = vpack.c.bf16 %v1907_v16, %v1903_v15  ;;  %v1913_v15 = vld [vmem:[%s10023_s3 + $0x198] sm:$0xff] }
 0x8ad   :  { %6304 = vmatprep.subr.bf16.mxu0 %v9064_v1  ;;  %6336 = vmatprep.subr.bf16.mxu1 %v9066_v13  ;;  %v1906_v1 = vld [vmem:[%s10023_s3 + $0x160] sm:$0xff]  ;;  %v1917_v16 = vld [vmem:[%s10023_s3 + $0x1b8] sm:$0xff] }
 0x8ae   :  { %10156 = vst [vmem:[#allocation38_spill] sm:$0xff] %v9136_v40 }
 0x8b0   :  { %6306 = vmatpush1.bf16.msra.mxu0 %v9088_v9  ;;  %6338 = vmatpush1.bf16.msra.mxu1 %v9090_v28  ;;  %v9138_v9 = vpack.c.bf16 %v1909_v31, %v1905_v3  ;;  %v9160_v3 = vpack.c.bf16 %v1906_v1, %v1902_v5  ;;  %v9162_v31 = vpack.c.bf16 %v1908_v22, %v1904_v41  ;;  %v1912_v5 = vld [vmem:[%s10023_s3 + $0x190] sm:$0xff]  ;;  %v1919_v41 = vld [vmem:[%s10023_s3 + $0x1c8] sm:$0xff] }
 0x8b1   :  { %6308 = vmatprep.subr.bf16.mxu0 %v9100_v23  ;;  %6340 = vmatprep.subr.bf16.mxu1 %v9102_v6  ;;  %v1910_v23 = vld [vmem:[%s10023_s3 + $0x180] sm:$0xff]  ;;  %v1916_v1 = vld [vmem:[%s10023_s3 + $0x1b0] sm:$0xff]  ;;  %v1923_v22 = vld [vmem:[%s10023_s3 + $0x1e8] sm:$0xff] }
 0x8b2   :  { %10157 = vst [vmem:[#allocation39_spill] sm:$0xff] %v9160_v3  ;;  %v9205_v56 = vpack.c.bf16 %v1923_v22, %v1919_v41  ;;  %v10163_v41 = vmov 1.0  }
 0x8b4   :  { %6310 = vmatpush1.bf16.msra.mxu0 %v9124_v36  ;;  %6342 = vmatpush1.bf16.msra.mxu1 %v9126_v52  ;;  %v9174_v36 = vpack.c.bf16 %v1917_v16, %v1913_v15  ;;  %v9196_v15 = vpack.c.bf16 %v1914_v44, %v1910_v23  ;;  %v9198_v16 = vpack.c.bf16 %v1916_v1, %v1912_v5  ;;  %v1920_v44 = vld [vmem:[%s10023_s3 + $0x1d0] sm:$0xff] }
 0x8b5   :  { %6312 = vmatprep.subr.bf16.mxu0 %v9136_v40  ;;  %6344 = vmatprep.subr.bf16.mxu1 %v9138_v9  ;;  %v1918_v40 = vld [vmem:[%s10023_s3 + $0x1c0] sm:$0xff]  ;;  %10160 = vst [vmem:[#allocation42_spill] sm:$0xff] %v9205_v56  ;;  %v1924_v23 = vld [vmem:[%s10023_s3 + $0x1f0] sm:$0xff] }
 0x8b6   :  { %10159 = vst [vmem:[#allocation41_spill] sm:$0xff] %v9196_v15  ;;  %v9222_v1 = vpack.c.bf16 %v1924_v23, %v1920_v44 }
 0x8b8   :  { %6314 = vmatpush1.bf16.msra.mxu0 %v9160_v3  ;;  %6346 = vmatpush1.bf16.msra.mxu1 %v9162_v31  ;;  %v1922_v3 = vld [vmem:[%s10023_s3 + $0x1e0] sm:$0xff]  ;;  %10162 = vst [vmem:[#allocation44_spill] sm:$0xff] %v9222_v1 }
 0x8b9   :  { %6316 = vmatprep.subr.bf16.mxu0 %v9172_v10  ;;  %6348 = vmatprep.subr.bf16.mxu1 %v9174_v36  ;;  %v9220_v5 = vpack.c.bf16 %v1922_v3, %v1918_v40  ;;  %v10164_v40 = vmov 0.0  }
 0x8bb   :  { %10161 = vst [vmem:[#allocation43_spill] sm:$0xff] %v9220_v5 }
 0x8bc   :  { %6318 = vmatpush1.bf16.msra.mxu0 %v9196_v15  ;;  %6350 = vmatpush1.bf16.msra.mxu1 %v9198_v16 }
 0x8bd   :  { %6320 = vmatprep.subr.bf16.mxu0 %v9205_v56  ;;  %6352 = vmatprep.subr.bf16.mxu1 %v9207_v33 }
 0x8c0   :  { %6322 = vmatpush1.bf16.msra.mxu0 %v9220_v5  ;;  %6354 = vmatpush1.bf16.msra.mxu1 %v9222_v1 }
 0x8c1   :  { %6356 = vmatprep.subr.bf16.mxu0 %v8655_v29  ;;  %6388 = vmatprep.subr.bf16.mxu1 %v8666_v42 }
 0x8c3   :  { %5181 = vmatmul.mubr.msk.f32.vlgmr.msra.gmra.mrb[16].mxu0 %vm60_vm0, %v10163_v41  ;;  %5182 = vmatmul.mubr.msk.f32.vlgmr.msra.gmra.mrb[16].mxu1 %vm60_vm0, %v10163_v41 }
 0x8c4   :  { %6358 = vmatpush1.bf16.msra.mxu0 %v8668_v21  ;;  %6390 = vmatpush1.bf16.msra.mxu1 %v8677_v26 }
 0x8c5   :  { %6360 = vmatprep.subr.bf16.mxu0 %v8691_v34  ;;  %6392 = vmatprep.subr.bf16.mxu1 %v8702_v46 }
 0x8c6   :  { %2315 = vmatprep.mubr.f32.mxu0 %v10164_v40  ;;  %2386 = vmatprep.mubr.f32.mxu1 %v10164_v40 }
 0x8c8   :  { %6362 = vmatpush1.bf16.msra.mxu0 %v8704_v49  ;;  %6394 = vmatpush1.bf16.msra.mxu1 %v8713_v55 }
 0x8c9   :  { %6364 = vmatprep.subr.bf16.mxu0 %v8727_v47  ;;  %6396 = vmatprep.subr.bf16.mxu1 %v8738_v4 }
 0x8cc   :  { %6366 = vmatpush1.bf16.msra.mxu0 %v8740_v7  ;;  %6398 = vmatpush1.bf16.msra.mxu1 %v8749_v14 }
 0x8cd   :  { %6368 = vmatprep.subr.bf16.mxu0 %v8763_v60  ;;  %6400 = vmatprep.subr.bf16.mxu1 %v8774_v11 }
 0x8d0   :  { %6370 = vmatpush1.bf16.msra.mxu0 %v8776_v17  ;;  %6402 = vmatpush1.bf16.msra.mxu1 %v8785_v25 }
 0x8d1   :  { %6372 = vmatprep.subr.bf16.mxu0 %v8799_v37  ;;  %6404 = vmatprep.subr.bf16.mxu1 %v8810_v53 }
 0x8d4   :  { %6374 = vmatpush1.bf16.msra.mxu0 %v8812_v63  ;;  %6406 = vmatpush1.bf16.msra.mxu1 %v8821_v19 }
 0x8d5   :  { %6376 = vmatprep.subr.bf16.mxu0 %v8835_v39  ;;  %6408 = vmatprep.subr.bf16.mxu1 %v8846_v27 }
 0x8d8   :  { %6378 = vmatpush1.bf16.msra.mxu0 %v8848_v32  ;;  %6410 = vmatpush1.bf16.msra.mxu1 %v8860_v45 }
 0x8d9   :  { %6380 = vmatprep.subr.bf16.mxu0 %v8873_v57  ;;  %6412 = vmatprep.subr.bf16.mxu1 %v8875_v58 }
 0x8dc   :  { %6382 = vmatpush1.bf16.msra.mxu0 %v8887_v8  ;;  %6414 = vmatpush1.bf16.msra.mxu1 %v8900_v59 }
 0x8dd   :  { %6384 = vmatprep.subr.bf16.mxu0 %v8902_v2  ;;  %6416 = vmatprep.subr.bf16.mxu1 %v8913_v24 }
 0x8e0   :  { %6386 = vmatpush1.bf16.msra.mxu0 %v8925_v43  ;;  %6418 = vmatpush1.bf16.msra.mxu1 %v8938_v12 }
 0x8e1   :  { %6476 = vmatprep.subr.bf16.mxu1 %v8946_v38  ;;  %6419 = vmatprep.subr.bf16.mxu0 %v10067_v62 }
 0x996   :  { %v2151_v3 = vpop.f32.mrb[16].mxu0  ;;  %v2222_v22 = vpop.f32.mrb[16].mxu1 }
 0x997   :  { %v5183_v51 = vmul.f32 -1.442695, %v2151_v3  ;;  %v2153_v48 = vpop.f32.mrb[17].mxu0  ;;  %v2224_v44 = vpop.f32.mrb[17].mxu1 }
 0x998   :  { %v5184_v23 = vmul.f32 -1.442695, %v2153_v48  ;;  %v5185_v2 = vmul.f32 -1.442695, %v2224_v44  ;;  %v1933_v44 = vld [vmem:[%s10024_s5 + $0x38] sm:$0xff] }
 0x999   :  { %7642 = vpow2.f32 %v5183_v51  ;;  %v1932_v51 = vld [vmem:[%s10024_s5 + $0x30] sm:$0xff] }
 0x99a   :  { %7644 = vpow2.f32 %v5184_v23  ;;  %v9318_v23 = vpack.c.bf16 %v1933_v44, %v1932_v51  ;;  %v1940_v51 = vld [vmem:[%s10024_s5 + $0x70] sm:$0xff]  ;;  %v1941_v44 = vld [vmem:[%s10024_s5 + $0x78] sm:$0xff] }
 0x99b   :  { %7646 = vpow2.f32 %v5185_v2 }
 0x99c   :  { %7648 = vtanh.f32 %v2222_v22 }
 0x9a3   :  { %v7643_v59 = vpop.eup %7642 }
 0x9a4   :  { %v7645_v24 = vpop.eup %7644  ;;  %v2230_v8 = vadd.f32 1.0, %v7643_v59  ;;  %v1926_v59 = vld [vmem:[%s10024_s5] sm:$0xff] }
 0x9a5   :  { %v2236_v12 = vadd.f32 1.0, %v7645_v24  ;;  %v7647_v38 = vpop.eup %7646 }
 0x9a6   :  { %7650 = vrcp.f32 %v2230_v8  ;;  %v7649_v43 = vpop.eup %7648  ;;  %v2243_v3 = vadd.f32 1.0, %v7647_v38  ;;  %v1927_v8 = vld [vmem:[%s10024_s5 + $0x8] sm:$0xff]  ;;  %v10165_v38 = vmov 0.0|0.0  }
 0x9a7   :  { %7652 = vrcp.f32 %v2236_v12  ;;  %v9282_v12 = vpack.c.bf16 %v1927_v8, %v1926_v59  ;;  %v1935_v59 = vld [vmem:[%s10024_s5 + $0x48] sm:$0xff] }
 0x9a8   :  { %7654 = vrcp.f32 %v2243_v3  ;;  %v1934_v3 = vld [vmem:[%s10024_s5 + $0x40] sm:$0xff] }
 0x9a9   :  { %v9330_v8 = vpack.c.bf16 %v1935_v59, %v1934_v3  ;;  %v9366_v3 = vpack.c.bf16 %v1941_v44, %v1940_v51  ;;  %v10166_v59 = vld [vmem:[#allocation29_spill] sm:$0xff]  ;;  %v10171_v51 = vld [vmem:[#allocation34_spill] sm:$0xff]  ;;  %v10172_v44 = vld [vmem:[#allocation35_spill] sm:$0xff] }
 0x9b0   :  { %v7651_v62 = vpop.eup %7650 }
 0x9b1   :  { %v7653_v58 = vpop.eup %7652  ;;  %v2247_v57 = vmul.f32 %v7651_v62, %v7649_v43  ;;  %v1931_v62 = vld [vmem:[%s10024_s5 + $0x28] sm:$0xff] }
 0x9b2   :  { %v2246_v45 = vmul.f32 %v7653_v58, %v8953_v30  ;;  %v7655_v2 = vpop.eup %7654  ;;  %v1930_v30 = vld [vmem:[%s10024_s5 + $0x20] sm:$0xff] }
 0x9b3   :  { %v9306_v22 = vpack.c.bf16 %v1931_v62, %v1930_v30  ;;  %v1939_v30 = vld [vmem:[%s10024_s5 + $0x68] sm:$0xff] }
 0x9b4   :  { %v9273_v48 = vadd.f32 %v2247_v57, %v2246_v45  ;;  %v1928_v45 = vld [vmem:[%s10024_s5 + $0x10] sm:$0xff]  ;;  %v1929_v57 = vld [vmem:[%s10024_s5 + $0x18] sm:$0xff] }
 0x9b5   :  { %v9291_v58 = vpack.c.bf16 %v1929_v57, %v1928_v45  ;;  %v1938_v57 = vld [vmem:[%s10024_s5 + $0x60] sm:$0xff] }
 0x9b6   :  { %7656 = vtanh.f32 %v9273_v48  ;;  %v9354_v62 = vpack.c.bf16 %v1939_v30, %v1938_v57  ;;  %v10169_v57 = vld [vmem:[#allocation32_spill] sm:$0xff]  ;;  %v10170_v30 = vld [vmem:[#allocation33_spill] sm:$0xff] }
 0x9c0   :  { %v7657_v24 = vpop.eup %7656 }
 0x9c1   :  { %v2250_v43 = vmul.f32 %v7657_v24, %v7655_v2  ;;  %v1936_v2 = vld [vmem:[%s10024_s5 + $0x50] sm:$0xff]  ;;  %v1937_v24 = vld [vmem:[%s10024_s5 + $0x58] sm:$0xff] }
 0x9c2   :  { %v9342_v45 = vpack.c.bf16 %v1937_v24, %v1936_v2  ;;  %v10167_v2 = vld [vmem:[#allocation30_spill] sm:$0xff]  ;;  %v10168_v24 = vld [vmem:[#allocation31_spill] sm:$0xff] }
 0x9c3   :  { %2316 = vmatmul.mubr.f32.vlgmr.msra.gmra.mrb[18].mxu0 %v2250_v43  ;;  %2387 = vmatmul.mubr.f32.vlgmr.msra.gmra.mrb[18].mxu1 %v2250_v43 }
 0x9c4   :  { %6421 = vmatpush3.bf16.msra.mxu0 %v9282_v12  ;;  %5403 = vmatprep.mubr.msk.f32.mxu0 %vm7775_vm8, %v10164_v40 }
 0x9c5   :  { %6422 = vmatprep.subr.bf16.mxu0 %v10165_v38  ;;  %6478 = vmatpush1.bf16.msra.mxu1 %v8982_v35 }
 0x9c6   :  { %6480 = vmatprep.subr.bf16.mxu1 %v8992_v0  ;;  %2620 = vmatprep.mubr.f32.mxu1 %v10164_v40 }
 0x9c8   :  { %6424 = vmatpush3.bf16.msra.mxu0 %v9291_v58 }
 0x9c9   :  { %6425 = vmatprep.subr.bf16.mxu0 %v10165_v38  ;;  %6482 = vmatpush1.bf16.msra.mxu1 %v9016_v18 }
 0x9ca   :  { %6484 = vmatprep.subr.bf16.mxu1 %v9028_v61 }
 0x9cc   :  { %6427 = vmatpush3.bf16.msra.mxu0 %v9306_v22 }
 0x9cd   :  { %6428 = vmatprep.subr.bf16.mxu0 %v10165_v38  ;;  %6486 = vmatpush1.bf16.msra.mxu1 %v9054_v50 }
 0x9ce   :  { %6488 = vmatprep.subr.bf16.mxu1 %v9066_v13 }
 0x9d0   :  { %6430 = vmatpush3.bf16.msra.mxu0 %v9318_v23 }
 0x9d1   :  { %6431 = vmatprep.subr.bf16.mxu0 %v10165_v38  ;;  %6490 = vmatpush1.bf16.msra.mxu1 %v9090_v28 }
 0x9d2   :  { %6492 = vmatprep.subr.bf16.mxu1 %v9102_v6 }
 0x9d4   :  { %6433 = vmatpush3.bf16.msra.mxu0 %v9330_v8 }
 0x9d5   :  { %6434 = vmatprep.subr.bf16.mxu0 %v10165_v38  ;;  %6494 = vmatpush1.bf16.msra.mxu1 %v9126_v52 }
 0x9d6   :  { %6496 = vmatprep.subr.bf16.mxu1 %v9138_v9 }
 0x9d8   :  { %6436 = vmatpush3.bf16.msra.mxu0 %v9342_v45 }
 0x9d9   :  { %6437 = vmatprep.subr.bf16.mxu0 %v10165_v38  ;;  %6498 = vmatpush1.bf16.msra.mxu1 %v9162_v31 }
 0x9da   :  { %6500 = vmatprep.subr.bf16.mxu1 %v9174_v36 }
 0x9dc   :  { %6439 = vmatpush3.bf16.msra.mxu0 %v9354_v62 }
 0x9dd   :  { %6440 = vmatprep.subr.bf16.mxu0 %v10165_v38  ;;  %6502 = vmatpush1.bf16.msra.mxu1 %v9198_v16 }
 0x9de   :  { %6504 = vmatprep.subr.bf16.mxu1 %v9207_v33 }
 0x9e0   :  { %6442 = vmatpush3.bf16.msra.mxu0 %v9366_v3 }
 0x9e1   :  { %6444 = vmatprep.subr.bf16.mxu0 %v8940_v20  ;;  %6506 = vmatpush1.bf16.msra.mxu1 %v9222_v1  ;;  %v10173_v1 = vld [vmem:[#allocation36_spill] sm:$0xff] }
 0x9e2   :  { %6508 = vmatprep.subr.bf16.mxu1 %v8655_v29  ;;  %v10174_v29 = vld [vmem:[#allocation37_spill] sm:$0xff] }
 0x9e3   :  { %5404 = vmatmul.mubr.f32.vlgmr.msra.gmra.mrb[20].mxu0 %v2250_v43  ;;  %v10175_v43 = vld [vmem:[#allocation38_spill] sm:$0xff] }
 0x9e4   :  { %6446 = vmatpush1.bf16.msra.mxu0 %v10166_v59  ;;  %2549 = vmatprep.mubr.f32.mxu0 %v10164_v40  ;;  %v10176_v59 = vld [vmem:[#allocation39_spill] sm:$0xff] }
 0x9e5   :  { %6448 = vmatprep.subr.bf16.mxu0 %v10167_v2 }
 0x9e8   :  { %6450 = vmatpush1.bf16.msra.mxu0 %v10168_v24 }
 0x9e9   :  { %6452 = vmatprep.subr.bf16.mxu0 %v10169_v57 }
 0x9ec   :  { %6454 = vmatpush1.bf16.msra.mxu0 %v10170_v30 }
 0x9ed   :  { %6456 = vmatprep.subr.bf16.mxu0 %v10171_v51 }
 0x9f0   :  { %6458 = vmatpush1.bf16.msra.mxu0 %v10172_v44 }
 0x9f1   :  { %6460 = vmatprep.subr.bf16.mxu0 %v10173_v1  ;;  %v9395_v1 = vld [vmem:[%s10025_s6] sm:$0xff] }
 0x9f2   :  { %10177 = vst [vmem:[#allocation30_spill] sm:$0xff] %v9395_v1 }
 0x9f4   :  { %6462 = vmatpush1.bf16.msra.mxu0 %v10174_v29 }
 0x9f5   :  { %6464 = vmatprep.subr.bf16.mxu0 %v10175_v43 }
 0x9f8   :  { %6466 = vmatpush1.bf16.msra.mxu0 %v10176_v59 }
 0x9f9   :  { %6468 = vmatprep.subr.bf16.mxu0 %v9172_v10 }
 0x9fc   :  { %6470 = vmatpush1.bf16.msra.mxu0 %v9196_v15 }
 0x9fd   :  { %6472 = vmatprep.subr.bf16.mxu0 %v9205_v56 }
 0xa00   :  { %6474 = vmatpush1.bf16.msra.mxu0 %v9220_v5 }
 0xa01   :  { %6540 = vmatprep.subr.bf16.mxu0 %v8666_v42 }
 0xab6   :  { %v2459_v29 = vpop.f32.mrb[20].mxu0 }
 0xab7   :  { %v2460_v43 = vadd.f32 %v2459_v29, %v9395_v1  ;;  %v5405_v44 = vpop.f32.mrb[21].mxu0 }
 0xab9   :  { %2463 = vst [vmem:[%s10026_s7] sm:$0xff] %v2460_v43  ;;  %2464 = vmax.xlane.f32.xlu0 %v2460_v43 }
 0xb46   :  { %v2465_v15 = vpop.xlane.xlu0 %2464 }
 0xb47   :  { %vm2466_vm9 = vcmp.ge.f32.partialorder %v2460_v43, %v2465_v15  ;;  %v10181_v15 = vld [vmem:[#allocation22_spill] sm:$0xff] }
 0xb48   :  { %v2467_v5 = vsel %vm2466_vm9, %v8064_v54, 128 }
 0xb49   :  { %v2469_v56 = vshra.s32 %v2467_v5, 16  ;;  %v2468_v10 = vand.u32 65535, %v2467_v5  ;;  %v10182_v5 = vld [vmem:[#allocation23_spill] sm:$0xff] }
 0xb4b   :  { %v2471_v42 = vcvt.s32.f32 %v2469_v56  ;;  %v2470_v51 = vcvt.s32.f32 %v2468_v10  ;;  %v10179_v56 = vld [vmem:[#allocation20_spill] sm:$0xff]  ;;  %v10180_v10 = vld [vmem:[#allocation21_spill] sm:$0xff] }
 0xb4d   :  { %2472 = vmin.xlane.f32.xlu1 %v2471_v42 }
 0xbda   :  { %v2473_v59 = vpop.xlane.xlu1 %2472 }
 0xbdb   :  { %vm2474_vm10 = vcmp.eq.f32.partialorder %v2471_v42, %v2473_v59  ;;  %v2479_v29 = vcvt.f32.s32 %v2473_v59  ;;  %v10178_v42 = vld [vmem:[#allocation19_spill] sm:$0xff]  ;;  %v10184_v59 = vld [vmem:[#allocation25_spill] sm:$0xff] }
 0xbdc   :  { %v2475_v30 = vsel %vm2474_vm10, %v2470_v51, inf }
 0xbdd   :  { %2476 = vmin.xlane.f32.xlu0 %v2475_v30  ;;  %v2480_v1 = vshll.u32 %v2479_v29, 16  ;;  %v10187_v30 = vld [vmem:[#allocation28_spill] sm:$0xff] }
 0xc6a   :  { %v2477_v44 = vpop.xlane.xlu0 %2476 }
 0xc6b   :  { %v2478_v57 = vcvt.f32.s32 %v2477_v44 }
 0xc6d   :  { %v2481_v24 = vadd.s32 %v2480_v1, %v2478_v57  ;;  %v10183_v1 = vld [vmem:[#allocation24_spill] sm:$0xff]  ;;  %v10186_v57 = vld [vmem:[#allocation27_spill] sm:$0xff] }
 0xc6f   :  { %vm2482_vm11 = vcmp.eq.s32.totalorder %v8064_v54, %v2481_v24  ;;  %v10185_v24 = vld [vmem:[#allocation26_spill] sm:$0xff] }
 0xc70   :  { %5187 = vmatmul.mubr.msk.f32.vlgmr.msra.gmra.mrb[18].mxu0 %vm2482_vm11, %v10163_v41  ;;  %5188 = vmatmul.mubr.msk.f32.vlgmr.msra.gmra.mrb[18].mxu1 %vm2482_vm11, %v10163_v41 }
 0xc71   :  { %6510 = vmatpush1.bf16.msra.mxu1 %v8668_v21  ;;  %6542 = vmatpush1.bf16.msra.mxu0 %v8677_v26 }
 0xc72   :  { %6512 = vmatprep.subr.bf16.mxu1 %v8691_v34  ;;  %6544 = vmatprep.subr.bf16.mxu0 %v8702_v46 }
 0xc73   :  { %2715 = vmatprep.mubr.f32.mxu1 %v10164_v40  ;;  %2786 = vmatprep.mubr.f32.mxu0 %v10164_v40 }
 0xc75   :  { %6514 = vmatpush1.bf16.msra.mxu1 %v8704_v49  ;;  %6546 = vmatpush1.bf16.msra.mxu0 %v8713_v55 }
 0xc76   :  { %6516 = vmatprep.subr.bf16.mxu1 %v8727_v47  ;;  %6548 = vmatprep.subr.bf16.mxu0 %v8738_v4 }
 0xc79   :  { %6518 = vmatpush1.bf16.msra.mxu1 %v8740_v7  ;;  %6550 = vmatpush1.bf16.msra.mxu0 %v8749_v14 }
 0xc7a   :  { %6520 = vmatprep.subr.bf16.mxu1 %v8763_v60  ;;  %6552 = vmatprep.subr.bf16.mxu0 %v8774_v11 }
 0xc7d   :  { %6522 = vmatpush1.bf16.msra.mxu1 %v8776_v17  ;;  %6554 = vmatpush1.bf16.msra.mxu0 %v8785_v25 }
 0xc7e   :  { %6524 = vmatprep.subr.bf16.mxu1 %v8799_v37  ;;  %6556 = vmatprep.subr.bf16.mxu0 %v8810_v53 }
 0xc81   :  { %6526 = vmatpush1.bf16.msra.mxu1 %v8812_v63  ;;  %6558 = vmatpush1.bf16.msra.mxu0 %v8821_v19 }
 0xc82   :  { %6528 = vmatprep.subr.bf16.mxu1 %v8835_v39  ;;  %6560 = vmatprep.subr.bf16.mxu0 %v8846_v27 }
 0xc85   :  { %6530 = vmatpush1.bf16.msra.mxu1 %v8848_v32  ;;  %6562 = vmatpush1.bf16.msra.mxu0 %v10178_v42 }
 0xc86   :  { %6532 = vmatprep.subr.bf16.mxu1 %v10179_v56  ;;  %6564 = vmatprep.subr.bf16.mxu0 %v10180_v10 }
 0xc89   :  { %6534 = vmatpush1.bf16.msra.mxu1 %v10181_v15  ;;  %6566 = vmatpush1.bf16.msra.mxu0 %v10182_v5 }
 0xc8a   :  { %6536 = vmatprep.subr.bf16.mxu1 %v10183_v1  ;;  %6568 = vmatprep.subr.bf16.mxu0 %v10184_v59 }
 0xc8d   :  { %6538 = vmatpush1.bf16.msra.mxu1 %v10185_v24  ;;  %6570 = vmatpush1.bf16.msra.mxu0 %v10186_v57 }
 0xc8e   :  { %6571 = vmatprep.subr.bf16.mxu1 %v10165_v38  ;;  %6628 = vmatprep.subr.bf16.mxu0 %v10187_v30 }
 0xd43   :  { %v2551_v51 = vpop.f32.mrb[18].mxu0  ;;  %v2622_v43 = vpop.f32.mrb[18].mxu1 }
 0xd44   :  { %v5189_v29 = vmul.f32 -1.442695, %v2551_v51  ;;  %v2553_v44 = vpop.f32.mrb[19].mxu0  ;;  %v2624_v10 = vpop.f32.mrb[19].mxu1 }
 0xd45   :  { %v5190_v15 = vmul.f32 -1.442695, %v2553_v44  ;;  %v5191_v5 = vmul.f32 -1.442695, %v2624_v10 }
 0xd46   :  { %7658 = vpow2.f32 %v5189_v29  ;;  %v10200_v29 = vld [vmem:[#allocation40_spill] sm:$0xff] }
 0xd47   :  { %7660 = vpow2.f32 %v5190_v15 }
 0xd48   :  { %7662 = vpow2.f32 %v5191_v5 }
 0xd49   :  { %7664 = vtanh.f32 %v2622_v43  ;;  %v10199_v43 = vld [vmem:[#allocation39_spill] sm:$0xff] }
 0xd50   :  { %v7659_v1 = vpop.eup %7658 }
 0xd51   :  { %v7661_v56 = vpop.eup %7660  ;;  %v2630_v59 = vadd.f32 1.0, %v7659_v1  ;;  %v10194_v1 = vld [vmem:[#allocation34_spill] sm:$0xff] }
 0xd52   :  { %v2636_v24 = vadd.f32 1.0, %v7661_v56  ;;  %v7663_v57 = vpop.eup %7662  ;;  %v10193_v56 = vld [vmem:[#allocation33_spill] sm:$0xff] }
 0xd53   :  { %7666 = vrcp.f32 %v2630_v59  ;;  %v7665_v42 = vpop.eup %7664  ;;  %v2643_v51 = vadd.f32 1.0, %v7663_v57  ;;  %v10195_v59 = vld [vmem:[#allocation35_spill] sm:$0xff]  ;;  %v10197_v57 = vld [vmem:[#allocation37_spill] sm:$0xff] }
 0xd54   :  { %7668 = vrcp.f32 %v2636_v24  ;;  %v10196_v24 = vld [vmem:[#allocation36_spill] sm:$0xff] }
 0xd55   :  { %7670 = vrcp.f32 %v2643_v51  ;;  %v10201_v51 = vld [vmem:[#allocation41_spill] sm:$0xff] }
 0xd5d   :  { %v7667_v30 = vpop.eup %7666 }
 0xd5e   :  { %v7669_v32 = vpop.eup %7668  ;;  %v2647_v27 = vmul.f32 %v7667_v30, %v7665_v42  ;;  %v10192_v42 = vld [vmem:[#allocation32_spill] sm:$0xff]  ;;  %v10198_v30 = vld [vmem:[#allocation38_spill] sm:$0xff] }
 0xd5f   :  { %v2646_v39 = vmul.f32 %v7669_v32, %v9273_v48  ;;  %v7671_v10 = vpop.eup %7670  ;;  %v10190_v32 = vld [vmem:[#allocation29_spill] sm:$0xff]  ;;  %v10191_v48 = vld [vmem:[#allocation31_spill] sm:$0xff] }
 0xd61   :  { %v9440_v44 = vadd.f32 %v2647_v27, %v2646_v39  ;;  %v10188_v39 = vld [vmem:[#allocation44_spill] sm:$0xff]  ;;  %v10189_v27 = vld [vmem:[#allocation2_spill] sm:$0xff] }
 0xd63   :  { %7672 = vtanh.f32 %v9440_v44 }
 0xd6d   :  { %v7673_v15 = vpop.eup %7672 }
 0xd6e   :  { %v2650_v5 = vmul.f32 %v7673_v15, %v7671_v10  ;;  %v10202_v10 = vld [vmem:[#allocation42_spill] sm:$0xff]  ;;  %v10203_v15 = vld [vmem:[#allocation43_spill] sm:$0xff] }
 0xd70   :  { %2716 = vmatmul.mubr.f32.vlgmr.msra.gmra.mrb[20].mxu1 %v2650_v5  ;;  %2787 = vmatmul.mubr.f32.vlgmr.msra.gmra.mrb[22].mxu0 %v2650_v5 }
 0xd71   :  { %6573 = vmatpush3.bf16.msra.mxu1 %v9282_v12  ;;  %5438 = vmatprep.mubr.msk.f32.mxu1 %vm7775_vm8, %v10164_v40 }
 0xd72   :  { %6574 = vmatprep.subr.bf16.mxu1 %v10165_v38  ;;  %6630 = vmatpush1.bf16.msra.mxu0 %v8982_v35 }
 0xd73   :  { %6632 = vmatprep.subr.bf16.mxu0 %v8992_v0  ;;  %3021 = vmatprep.mubr.f32.mxu0 %v10164_v40 }
 0xd75   :  { %6576 = vmatpush3.bf16.msra.mxu1 %v9291_v58 }
 0xd76   :  { %6577 = vmatprep.subr.bf16.mxu1 %v10165_v38  ;;  %6634 = vmatpush1.bf16.msra.mxu0 %v9016_v18 }
 0xd77   :  { %6636 = vmatprep.subr.bf16.mxu0 %v9028_v61 }
 0xd79   :  { %6579 = vmatpush3.bf16.msra.mxu1 %v9306_v22 }
 0xd7a   :  { %6580 = vmatprep.subr.bf16.mxu1 %v10165_v38  ;;  %6638 = vmatpush1.bf16.msra.mxu0 %v9054_v50 }
 0xd7b   :  { %6640 = vmatprep.subr.bf16.mxu0 %v9066_v13 }
 0xd7d   :  { %6582 = vmatpush3.bf16.msra.mxu1 %v9318_v23 }
 0xd7e   :  { %6583 = vmatprep.subr.bf16.mxu1 %v10165_v38  ;;  %6642 = vmatpush1.bf16.msra.mxu0 %v9090_v28 }
 0xd7f   :  { %6644 = vmatprep.subr.bf16.mxu0 %v9102_v6 }
 0xd81   :  { %6585 = vmatpush3.bf16.msra.mxu1 %v9330_v8 }
 0xd82   :  { %6586 = vmatprep.subr.bf16.mxu1 %v10165_v38  ;;  %6646 = vmatpush1.bf16.msra.mxu0 %v9126_v52 }
 0xd83   :  { %6648 = vmatprep.subr.bf16.mxu0 %v9138_v9 }
 0xd85   :  { %6588 = vmatpush3.bf16.msra.mxu1 %v9342_v45 }
 0xd86   :  { %6589 = vmatprep.subr.bf16.mxu1 %v10165_v38  ;;  %6650 = vmatpush1.bf16.msra.mxu0 %v9162_v31 }
 0xd87   :  { %6652 = vmatprep.subr.bf16.mxu0 %v9174_v36 }
 0xd89   :  { %6591 = vmatpush3.bf16.msra.mxu1 %v9354_v62 }
 0xd8a   :  { %6592 = vmatprep.subr.bf16.mxu1 %v10165_v38  ;;  %6654 = vmatpush1.bf16.msra.mxu0 %v9198_v16 }
 0xd8b   :  { %6656 = vmatprep.subr.bf16.mxu0 %v9207_v33 }
 0xd8d   :  { %6594 = vmatpush3.bf16.msra.mxu1 %v9366_v3 }
 0xd8e   :  { %6596 = vmatprep.subr.bf16.mxu1 %v8940_v20  ;;  %6658 = vmatpush1.bf16.msra.mxu0 %v10188_v39 }
 0xd8f   :  { %6660 = vmatprep.subr.bf16.mxu0 %v10189_v27 }
 0xd90   :  { %5439 = vmatmul.mubr.f32.vlgmr.msra.gmra.mrb[22].mxu1 %v2650_v5  ;;  %v10204_v5 = vld [vmem:[#allocation3_spill] sm:$0xff] }
 0xd91   :  { %6598 = vmatpush1.bf16.msra.mxu1 %v10190_v32  ;;  %2950 = vmatprep.mubr.f32.mxu1 %v10164_v40 }
 0xd92   :  { %6600 = vmatprep.subr.bf16.mxu1 %v10167_v2 }
 0xd95   :  { %6602 = vmatpush1.bf16.msra.mxu1 %v10191_v48 }
 0xd96   :  { %6604 = vmatprep.subr.bf16.mxu1 %v10192_v42 }
 0xd99   :  { %6606 = vmatpush1.bf16.msra.mxu1 %v10193_v56 }
 0xd9a   :  { %6608 = vmatprep.subr.bf16.mxu1 %v10194_v1 }
 0xd9d   :  { %6610 = vmatpush1.bf16.msra.mxu1 %v10195_v59  ;;  %v10205_v59 = vld [vmem:[#allocation30_spill] sm:$0xff] }
 0xd9e   :  { %6612 = vmatprep.subr.bf16.mxu1 %v10196_v24 }
 0xda1   :  { %6614 = vmatpush1.bf16.msra.mxu1 %v10197_v57 }
 0xda2   :  { %6616 = vmatprep.subr.bf16.mxu1 %v10198_v30 }
 0xda5   :  { %6618 = vmatpush1.bf16.msra.mxu1 %v10199_v43 }
 0xda6   :  { %6620 = vmatprep.subr.bf16.mxu1 %v10200_v29 }
 0xda9   :  { %6622 = vmatpush1.bf16.msra.mxu1 %v10201_v51 }
 0xdaa   :  { %6624 = vmatprep.subr.bf16.mxu1 %v10202_v10 }
 0xdad   :  { %6626 = vmatpush1.bf16.msra.mxu1 %v10203_v15 }
 0xdae   :  { %6692 = vmatprep.subr.bf16.mxu1 %v10204_v5 }
 0xe63   :  { %v2859_v1 = vpop.f32.mrb[22].mxu1 }
 0xe64   :  { %v2860_v56 = vadd.f32 %v2859_v1, %v10205_v59  ;;  %v5440_v24 = vpop.f32.mrb[23].mxu1 }
 0xe66   :  { %5192 = vst [vmem:[%s10026_s7 + $0x8] sm:$0xff] %v2860_v56  ;;  %2865 = vmax.xlane.f32.xlu0 %v2860_v56 }
 0xef3   :  { %v2866_v43 = vpop.xlane.xlu0 %2865 }
 0xef4   :  { %vm2867_vm12 = vcmp.ge.f32.partialorder %v2860_v56, %v2866_v43  ;;  %v10208_v56 = vld [vmem:[#allocation18_spill] sm:$0xff] }
 0xef5   :  { %v2868_v29 = vsel %vm2867_vm12, %v8064_v54, 128  ;;  %v10212_v43 = vld [vmem:[#allocation22_spill] sm:$0xff] }
 0xef6   :  { %v2870_v51 = vshra.s32 %v2868_v29, 16  ;;  %v2869_v10 = vand.u32 65535, %v2868_v29  ;;  %v10213_v29 = vld [vmem:[#allocation23_spill] sm:$0xff] }
 0xef8   :  { %v2872_v30 = vcvt.s32.f32 %v2870_v51  ;;  %v2871_v57 = vcvt.s32.f32 %v2869_v10  ;;  %v10214_v51 = vld [vmem:[#allocation24_spill] sm:$0xff]  ;;  %v10215_v10 = vld [vmem:[#allocation25_spill] sm:$0xff] }
 0xefa   :  { %2873 = vmin.xlane.f32.xlu1 %v2872_v30 }
 0xf87   :  { %v2874_v15 = vpop.xlane.xlu1 %2873 }
 0xf88   :  { %vm2875_vm13 = vcmp.eq.f32.partialorder %v2872_v30, %v2874_v15  ;;  %v2880_v1 = vcvt.f32.s32 %v2874_v15  ;;  %v10211_v30 = vld [vmem:[#allocation21_spill] sm:$0xff]  ;;  %v10216_v15 = vld [vmem:[#allocation26_spill] sm:$0xff] }
 0xf89   :  { %v2876_v5 = vsel %vm2875_vm13, %v2871_v57, inf  ;;  %v10210_v57 = vld [vmem:[#allocation20_spill] sm:$0xff] }
 0xf8a   :  { %2877 = vmin.xlane.f32.xlu0 %v2876_v5  ;;  %v2881_v59 = vshll.u32 %v2880_v1, 16  ;;  %v10217_v5 = vld [vmem:[#allocation27_spill] sm:$0xff]  ;;  %v10218_v1 = vld [vmem:[#allocation28_spill] sm:$0xff] }
0x1017   :  { %v2878_v24 = vpop.xlane.xlu0 %2877 }
0x1018   :  { %v2879_v42 = vcvt.f32.s32 %v2878_v24 }
0x101a   :  { %v2882_v48 = vadd.s32 %v2881_v59, %v2879_v42  ;;  %v10207_v42 = vld [vmem:[#allocation17_spill] sm:$0xff]  ;;  %v10209_v59 = vld [vmem:[#allocation19_spill] sm:$0xff] }
0x101c   :  { %vm2883_vm14 = vcmp.eq.s32.totalorder %v8064_v54, %v2882_v48  ;;  %v10206_v48 = vld [vmem:[#allocation16_spill] sm:$0xff] }
0x101d   :  { %5194 = vmatmul.mubr.msk.f32.vlgmr.msra.gmra.mrb[20].mxu1 %vm2883_vm14, %v10163_v41  ;;  %5195 = vmatmul.mubr.msk.f32.vlgmr.msra.gmra.mrb[22].mxu0 %vm2883_vm14, %v10163_v41 }
0x101e   :  { %6662 = vmatpush1.bf16.msra.mxu0 %v8668_v21  ;;  %6694 = vmatpush1.bf16.msra.mxu1 %v8677_v26 }
0x101f   :  { %6664 = vmatprep.subr.bf16.mxu0 %v8691_v34  ;;  %6696 = vmatprep.subr.bf16.mxu1 %v8702_v46 }
0x1020   :  { %3116 = vmatprep.mubr.f32.mxu0 %v10164_v40  ;;  %3187 = vmatprep.mubr.f32.mxu1 %v10164_v40 }
0x1022   :  { %6666 = vmatpush1.bf16.msra.mxu0 %v8704_v49  ;;  %6698 = vmatpush1.bf16.msra.mxu1 %v8713_v55 }
0x1023   :  { %6668 = vmatprep.subr.bf16.mxu0 %v8727_v47  ;;  %6700 = vmatprep.subr.bf16.mxu1 %v8738_v4 }
0x1026   :  { %6670 = vmatpush1.bf16.msra.mxu0 %v8740_v7  ;;  %6702 = vmatpush1.bf16.msra.mxu1 %v8749_v14 }
0x1027   :  { %6672 = vmatprep.subr.bf16.mxu0 %v8763_v60  ;;  %6704 = vmatprep.subr.bf16.mxu1 %v8774_v11 }
0x102a   :  { %6674 = vmatpush1.bf16.msra.mxu0 %v8776_v17  ;;  %6706 = vmatpush1.bf16.msra.mxu1 %v8785_v25 }
0x102b   :  { %6676 = vmatprep.subr.bf16.mxu0 %v8799_v37  ;;  %6708 = vmatprep.subr.bf16.mxu1 %v8810_v53 }
0x102e   :  { %6678 = vmatpush1.bf16.msra.mxu0 %v8812_v63  ;;  %6710 = vmatpush1.bf16.msra.mxu1 %v8821_v19 }
0x102f   :  { %6680 = vmatprep.subr.bf16.mxu0 %v10206_v48  ;;  %6712 = vmatprep.subr.bf16.mxu1 %v10207_v42 }
0x1032   :  { %6682 = vmatpush1.bf16.msra.mxu0 %v10208_v56  ;;  %6714 = vmatpush1.bf16.msra.mxu1 %v10209_v59 }
0x1033   :  { %6684 = vmatprep.subr.bf16.mxu0 %v10210_v57  ;;  %6716 = vmatprep.subr.bf16.mxu1 %v10211_v30 }
0x1036   :  { %6686 = vmatpush1.bf16.msra.mxu0 %v10212_v43  ;;  %6718 = vmatpush1.bf16.msra.mxu1 %v10213_v29 }
0x1037   :  { %6688 = vmatprep.subr.bf16.mxu0 %v10214_v51  ;;  %6720 = vmatprep.subr.bf16.mxu1 %v10215_v10 }
0x103a   :  { %6690 = vmatpush1.bf16.msra.mxu0 %v10216_v15  ;;  %6722 = vmatpush1.bf16.msra.mxu1 %v10217_v5 }
0x103b   :  { %6723 = vmatprep.subr.bf16.mxu0 %v10165_v38  ;;  %6780 = vmatprep.subr.bf16.mxu1 %v10218_v1 }
0x10f0   :  { %v2952_v24 = vpop.f32.mrb[20].mxu1  ;;  %v3023_v57 = vpop.f32.mrb[22].mxu0 }
0x10f1   :  { %v5196_v59 = vmul.f32 -1.442695, %v2952_v24  ;;  %v2954_v30 = vpop.f32.mrb[21].mxu1  ;;  %v3025_v56 = vpop.f32.mrb[23].mxu0 }
0x10f2   :  { %v5197_v43 = vmul.f32 -1.442695, %v2954_v30  ;;  %v5198_v29 = vmul.f32 -1.442695, %v3025_v56 }
0x10f3   :  { %7674 = vpow2.f32 %v5196_v59 }
0x10f4   :  { %7676 = vpow2.f32 %v5197_v43 }
0x10f5   :  { %7678 = vpow2.f32 %v5198_v29  ;;  %v10226_v29 = vld [vmem:[#allocation38_spill] sm:$0xff] }
0x10f6   :  { %7680 = vtanh.f32 %v3023_v57  ;;  %v10225_v57 = vld [vmem:[#allocation37_spill] sm:$0xff] }
0x10fd   :  { %v7675_v51 = vpop.eup %7674 }
0x10fe   :  { %v7677_v42 = vpop.eup %7676  ;;  %v3031_v10 = vadd.f32 1.0, %v7675_v51  ;;  %v10227_v51 = vld [vmem:[#allocation39_spill] sm:$0xff] }
0x10ff   :  { %v3037_v15 = vadd.f32 1.0, %v7677_v42  ;;  %v7679_v5 = vpop.eup %7678  ;;  %v10224_v42 = vld [vmem:[#allocation36_spill] sm:$0xff] }
0x1100   :  { %7682 = vrcp.f32 %v3031_v10  ;;  %v7681_v48 = vpop.eup %7680  ;;  %v3044_v24 = vadd.f32 1.0, %v7679_v5  ;;  %v10228_v10 = vld [vmem:[#allocation40_spill] sm:$0xff]  ;;  %v10230_v5 = vld [vmem:[#allocation42_spill] sm:$0xff] }
0x1101   :  { %7684 = vrcp.f32 %v3037_v15  ;;  %v10229_v15 = vld [vmem:[#allocation41_spill] sm:$0xff] }
0x1102   :  { %7686 = vrcp.f32 %v3044_v24  ;;  %v10232_v24 = vld [vmem:[#allocation3_spill] sm:$0xff] }
0x110a   :  { %v7683_v1 = vpop.eup %7682 }
0x110b   :  { %v7685_v19 = vpop.eup %7684  ;;  %v3048_v63 = vmul.f32 %v7683_v1, %v7681_v48  ;;  %v10223_v48 = vld [vmem:[#allocation35_spill] sm:$0xff] }
0x110c   :  { %v3047_v53 = vmul.f32 %v7685_v19, %v9440_v44  ;;  %v7687_v56 = vpop.eup %7686  ;;  %v10221_v19 = vld [vmem:[#allocation33_spill] sm:$0xff]  ;;  %v10222_v44 = vld [vmem:[#allocation34_spill] sm:$0xff]  ;;  %v10231_v1 = vld [vmem:[#allocation43_spill] sm:$0xff] }
0x110e   :  { %v9538_v30 = vadd.f32 %v3048_v63, %v3047_v53  ;;  %v10219_v53 = vld [vmem:[#allocation31_spill] sm:$0xff]  ;;  %v10220_v63 = vld [vmem:[#allocation32_spill] sm:$0xff] }
0x1110   :  { %7688 = vtanh.f32 %v9538_v30 }
0x111a   :  { %v7689_v59 = vpop.eup %7688 }
0x111b   :  { %v3051_v43 = vmul.f32 %v7689_v59, %v7687_v56  ;;  %v10233_v59 = vld [vmem:[#allocation30_spill] sm:$0xff] }
0x111d   :  { %3117 = vmatmul.mubr.f32.vlgmr.msra.gmra.mrb[24].mxu0 %v3051_v43  ;;  %3188 = vmatmul.mubr.f32.vlgmr.msra.gmra.mrb[24].mxu1 %v3051_v43 }
0x111e   :  { %6725 = vmatpush3.bf16.msra.mxu0 %v9282_v12  ;;  %5473 = vmatprep.mubr.msk.f32.mxu0 %vm7775_vm8, %v10164_v40 }
0x111f   :  { %6726 = vmatprep.subr.bf16.mxu0 %v10165_v38  ;;  %6782 = vmatpush1.bf16.msra.mxu1 %v8982_v35 }
0x1120   :  { %6784 = vmatprep.subr.bf16.mxu1 %v8992_v0  ;;  %3422 = vmatprep.mubr.f32.mxu1 %v10164_v40 }
0x1122   :  { %6728 = vmatpush3.bf16.msra.mxu0 %v9291_v58 }
0x1123   :  { %6729 = vmatprep.subr.bf16.mxu0 %v10165_v38  ;;  %6786 = vmatpush1.bf16.msra.mxu1 %v9016_v18 }
0x1124   :  { %6788 = vmatprep.subr.bf16.mxu1 %v9028_v61 }
0x1126   :  { %6731 = vmatpush3.bf16.msra.mxu0 %v9306_v22 }
0x1127   :  { %6732 = vmatprep.subr.bf16.mxu0 %v10165_v38  ;;  %6790 = vmatpush1.bf16.msra.mxu1 %v9054_v50 }
0x1128   :  { %6792 = vmatprep.subr.bf16.mxu1 %v9066_v13 }
0x112a   :  { %6734 = vmatpush3.bf16.msra.mxu0 %v9318_v23 }
0x112b   :  { %6735 = vmatprep.subr.bf16.mxu0 %v10165_v38  ;;  %6794 = vmatpush1.bf16.msra.mxu1 %v9090_v28 }
0x112c   :  { %6796 = vmatprep.subr.bf16.mxu1 %v9102_v6 }
0x112e   :  { %6737 = vmatpush3.bf16.msra.mxu0 %v9330_v8 }
0x112f   :  { %6738 = vmatprep.subr.bf16.mxu0 %v10165_v38  ;;  %6798 = vmatpush1.bf16.msra.mxu1 %v9126_v52 }
0x1130   :  { %6800 = vmatprep.subr.bf16.mxu1 %v9138_v9 }
0x1132   :  { %6740 = vmatpush3.bf16.msra.mxu0 %v9342_v45 }
0x1133   :  { %6741 = vmatprep.subr.bf16.mxu0 %v10165_v38  ;;  %6802 = vmatpush1.bf16.msra.mxu1 %v9162_v31 }
0x1134   :  { %6804 = vmatprep.subr.bf16.mxu1 %v9174_v36 }
0x1136   :  { %6743 = vmatpush3.bf16.msra.mxu0 %v9354_v62 }
0x1137   :  { %6744 = vmatprep.subr.bf16.mxu0 %v10165_v38  ;;  %6806 = vmatpush1.bf16.msra.mxu1 %v9198_v16 }
0x1138   :  { %6808 = vmatprep.subr.bf16.mxu1 %v9207_v33 }
0x113a   :  { %6746 = vmatpush3.bf16.msra.mxu0 %v9366_v3 }
0x113b   :  { %6748 = vmatprep.subr.bf16.mxu0 %v8940_v20  ;;  %6810 = vmatpush1.bf16.msra.mxu1 %v10188_v39 }
0x113c   :  { %6812 = vmatprep.subr.bf16.mxu1 %v10189_v27 }
0x113d   :  { %5474 = vmatmul.mubr.f32.vlgmr.msra.gmra.mrb[26].mxu0 %v3051_v43 }
0x113e   :  { %6750 = vmatpush1.bf16.msra.mxu0 %v10190_v32  ;;  %3351 = vmatprep.mubr.f32.mxu0 %v10164_v40 }
0x113f   :  { %6752 = vmatprep.subr.bf16.mxu0 %v10167_v2 }
0x1142   :  { %6754 = vmatpush1.bf16.msra.mxu0 %v10219_v53 }
0x1143   :  { %6756 = vmatprep.subr.bf16.mxu0 %v10220_v63 }
0x1146   :  { %6758 = vmatpush1.bf16.msra.mxu0 %v10221_v19 }
0x1147   :  { %6760 = vmatprep.subr.bf16.mxu0 %v10222_v44 }
0x114a   :  { %6762 = vmatpush1.bf16.msra.mxu0 %v10223_v48 }
0x114b   :  { %6764 = vmatprep.subr.bf16.mxu0 %v10224_v42 }
0x114e   :  { %6766 = vmatpush1.bf16.msra.mxu0 %v10225_v57 }
0x114f   :  { %6768 = vmatprep.subr.bf16.mxu0 %v10226_v29 }
0x1152   :  { %6770 = vmatpush1.bf16.msra.mxu0 %v10227_v51 }
0x1153   :  { %6772 = vmatprep.subr.bf16.mxu0 %v10228_v10 }
0x1156   :  { %6774 = vmatpush1.bf16.msra.mxu0 %v10229_v15 }
0x1157   :  { %6776 = vmatprep.subr.bf16.mxu0 %v10230_v5 }
0x115a   :  { %6778 = vmatpush1.bf16.msra.mxu0 %v10231_v1 }
0x115b   :  { %6844 = vmatprep.subr.bf16.mxu0 %v10232_v24 }
0x1210   :  { %v3260_v56 = vpop.f32.mrb[26].mxu0 }
0x1211   :  { %v3261_v43 = vadd.f32 %v3260_v56, %v10233_v59  ;;  %v5475_v42 = vpop.f32.mrb[27].mxu0 }
0x1213   :  { %5199 = vst [vmem:[%s10026_s7 + $0x10] sm:$0xff] %v3261_v43  ;;  %3266 = vmax.xlane.f32.xlu1 %v3261_v43 }
0x12a0   :  { %v3267_v51 = vpop.xlane.xlu1 %3266 }
0x12a1   :  { %vm3268_vm15 = vcmp.ge.f32.partialorder %v3261_v43, %v3267_v51  ;;  %v10238_v51 = vld [vmem:[#allocation17_spill] sm:$0xff]  ;;  %v10245_v43 = vld [vmem:[#allocation24_spill] sm:$0xff] }
0x12a2   :  { %v3269_v10 = vsel %vm3268_vm15, %v8064_v54, 128 }
0x12a3   :  { %v3271_v15 = vshra.s32 %v3269_v10, 16  ;;  %v3270_v5 = vand.u32 65535, %v3269_v10  ;;  %v10239_v10 = vld [vmem:[#allocation18_spill] sm:$0xff] }
0x12a5   :  { %v3273_v29 = vcvt.s32.f32 %v3271_v15  ;;  %v3272_v57 = vcvt.s32.f32 %v3270_v5  ;;  %v10240_v15 = vld [vmem:[#allocation19_spill] sm:$0xff]  ;;  %v10241_v5 = vld [vmem:[#allocation20_spill] sm:$0xff] }
0x12a7   :  { %3274 = vmin.xlane.f32.xlu0 %v3273_v29 }
0x1334   :  { %v3275_v1 = vpop.xlane.xlu0 %3274 }
0x1335   :  { %vm3276_vm0 = vcmp.eq.f32.partialorder %v3273_v29, %v3275_v1  ;;  %v3281_v56 = vcvt.f32.s32 %v3275_v1  ;;  %v10237_v29 = vld [vmem:[#allocation16_spill] sm:$0xff]  ;;  %v10242_v1 = vld [vmem:[#allocation21_spill] sm:$0xff] }
0x1336   :  { %v3277_v24 = vsel %vm3276_vm0, %v3272_v57, inf  ;;  %v10236_v57 = vld [vmem:[#allocation15_spill] sm:$0xff] }
0x1337   :  { %3278 = vmin.xlane.f32.xlu1 %v3277_v24  ;;  %v3282_v59 = vshll.u32 %v3281_v56, 16  ;;  %v10243_v24 = vld [vmem:[#allocation22_spill] sm:$0xff]  ;;  %v10246_v56 = vld [vmem:[#allocation25_spill] sm:$0xff] }
0x13c4   :  { %v3279_v42 = vpop.xlane.xlu1 %3278 }
0x13c5   :  { %v3280_v48 = vcvt.f32.s32 %v3279_v42  ;;  %v10247_v42 = vld [vmem:[#allocation26_spill] sm:$0xff] }
0x13c7   :  { %v3283_v44 = vadd.s32 %v3282_v59, %v3280_v48  ;;  %v10235_v48 = vld [vmem:[#allocation14_spill] sm:$0xff]  ;;  %v10244_v59 = vld [vmem:[#allocation23_spill] sm:$0xff] }
0x13c9   :  { %vm3284_vm1 = vcmp.eq.s32.totalorder %v8064_v54, %v3283_v44  ;;  %v10234_v44 = vld [vmem:[#allocation13_spill] sm:$0xff] }
0x13ca   :  { %5201 = vmatmul.mubr.msk.f32.vlgmr.msra.gmra.mrb[24].mxu0 %vm3284_vm1, %v10163_v41  ;;  %5202 = vmatmul.mubr.msk.f32.vlgmr.msra.gmra.mrb[24].mxu1 %vm3284_vm1, %v10163_v41 }
0x13cb   :  { %6814 = vmatpush1.bf16.msra.mxu1 %v8668_v21  ;;  %6846 = vmatpush1.bf16.msra.mxu0 %v8677_v26 }
0x13cc   :  { %6816 = vmatprep.subr.bf16.mxu1 %v8691_v34  ;;  %6848 = vmatprep.subr.bf16.mxu0 %v8702_v46 }
0x13cd   :  { %3517 = vmatprep.mubr.f32.mxu1 %v10164_v40  ;;  %3588 = vmatprep.mubr.f32.mxu0 %v10164_v40 }
0x13cf   :  { %6818 = vmatpush1.bf16.msra.mxu1 %v8704_v49  ;;  %6850 = vmatpush1.bf16.msra.mxu0 %v8713_v55 }
0x13d0   :  { %6820 = vmatprep.subr.bf16.mxu1 %v8727_v47  ;;  %6852 = vmatprep.subr.bf16.mxu0 %v8738_v4 }
0x13d3   :  { %6822 = vmatpush1.bf16.msra.mxu1 %v8740_v7  ;;  %6854 = vmatpush1.bf16.msra.mxu0 %v8749_v14 }
0x13d4   :  { %6824 = vmatprep.subr.bf16.mxu1 %v8763_v60  ;;  %6856 = vmatprep.subr.bf16.mxu0 %v8774_v11 }
0x13d7   :  { %6826 = vmatpush1.bf16.msra.mxu1 %v8776_v17  ;;  %6858 = vmatpush1.bf16.msra.mxu0 %v8785_v25 }
0x13d8   :  { %6828 = vmatprep.subr.bf16.mxu1 %v8799_v37  ;;  %6860 = vmatprep.subr.bf16.mxu0 %v10234_v44 }
0x13db   :  { %6830 = vmatpush1.bf16.msra.mxu1 %v10235_v48  ;;  %6862 = vmatpush1.bf16.msra.mxu0 %v10236_v57 }
0x13dc   :  { %6832 = vmatprep.subr.bf16.mxu1 %v10237_v29  ;;  %6864 = vmatprep.subr.bf16.mxu0 %v10238_v51  ;;  %v10248_v29 = vld [vmem:[#allocation27_spill] sm:$0xff] }
0x13df   :  { %6834 = vmatpush1.bf16.msra.mxu1 %v10239_v10  ;;  %6866 = vmatpush1.bf16.msra.mxu0 %v10240_v15  ;;  %v10249_v10 = vld [vmem:[#allocation28_spill] sm:$0xff] }
0x13e0   :  { %6836 = vmatprep.subr.bf16.mxu1 %v10241_v5  ;;  %6868 = vmatprep.subr.bf16.mxu0 %v10242_v1 }
0x13e3   :  { %6838 = vmatpush1.bf16.msra.mxu1 %v10243_v24  ;;  %6870 = vmatpush1.bf16.msra.mxu0 %v10244_v59 }
0x13e4   :  { %6840 = vmatprep.subr.bf16.mxu1 %v10245_v43  ;;  %6872 = vmatprep.subr.bf16.mxu0 %v10246_v56 }
0x13e7   :  { %6842 = vmatpush1.bf16.msra.mxu1 %v10247_v42  ;;  %6874 = vmatpush1.bf16.msra.mxu0 %v10248_v29 }
0x13e8   :  { %6875 = vmatprep.subr.bf16.mxu1 %v10165_v38  ;;  %6932 = vmatprep.subr.bf16.mxu0 %v10249_v10 }
0x149d   :  { %v3353_v15 = vpop.f32.mrb[24].mxu0  ;;  %v3424_v5 = vpop.f32.mrb[24].mxu1 }
0x149e   :  { %v5203_v51 = vmul.f32 -1.442695, %v3353_v15  ;;  %v3355_v1 = vpop.f32.mrb[25].mxu0  ;;  %v3426_v57 = vpop.f32.mrb[25].mxu1 }
0x149f   :  { %v5204_v24 = vmul.f32 -1.442695, %v3355_v1  ;;  %v5205_v59 = vmul.f32 -1.442695, %v3426_v57 }
0x14a0   :  { %7690 = vpow2.f32 %v5203_v51 }
0x14a1   :  { %7692 = vpow2.f32 %v5204_v24 }
0x14a2   :  { %7694 = vpow2.f32 %v5205_v59  ;;  %v10259_v59 = vld [vmem:[#allocation43_spill] sm:$0xff] }
0x14a3   :  { %7696 = vtanh.f32 %v3424_v5  ;;  %v10258_v5 = vld [vmem:[#allocation42_spill] sm:$0xff] }
0x14aa   :  { %v7691_v43 = vpop.eup %7690 }
0x14ab   :  { %v7693_v48 = vpop.eup %7692  ;;  %v3432_v56 = vadd.f32 1.0, %v7691_v43  ;;  %v10260_v43 = vld [vmem:[#allocation3_spill] sm:$0xff] }
0x14ac   :  { %v3438_v42 = vadd.f32 1.0, %v7693_v48  ;;  %v7695_v29 = vpop.eup %7694  ;;  %v10255_v48 = vld [vmem:[#allocation39_spill] sm:$0xff] }
0x14ad   :  { %7698 = vrcp.f32 %v3432_v56  ;;  %v7697_v44 = vpop.eup %7696  ;;  %v3445_v15 = vadd.f32 1.0, %v7695_v29  ;;  %v10256_v29 = vld [vmem:[#allocation40_spill] sm:$0xff] }
0x14ae   :  { %7700 = vrcp.f32 %v3438_v42  ;;  %v10261_v42 = vld [vmem:[#allocation30_spill] sm:$0xff] }
0x14af   :  { %7702 = vrcp.f32 %v3445_v15 }
0x14b7   :  { %v7699_v10 = vpop.eup %7698 }
0x14b8   :  { %v7701_v37 = vpop.eup %7700  ;;  %v3449_v25 = vmul.f32 %v7699_v10, %v7697_v44  ;;  %v10254_v44 = vld [vmem:[#allocation38_spill] sm:$0xff]  ;;  %v10257_v10 = vld [vmem:[#allocation41_spill] sm:$0xff] }
0x14b9   :  { %v3448_v17 = vmul.f32 %v7701_v37, %v9538_v30  ;;  %v7703_v57 = vpop.eup %7702  ;;  %v10252_v37 = vld [vmem:[#allocation36_spill] sm:$0xff]  ;;  %v10253_v30 = vld [vmem:[#allocation37_spill] sm:$0xff] }
0x14bb   :  { %v9636_v1 = vadd.f32 %v3449_v25, %v3448_v17  ;;  %v10250_v17 = vld [vmem:[#allocation34_spill] sm:$0xff]  ;;  %v10251_v25 = vld [vmem:[#allocation35_spill] sm:$0xff] }
0x14bd   :  { %7704 = vtanh.f32 %v9636_v1 }
0x14c7   :  { %v7705_v51 = vpop.eup %7704 }
0x14c8   :  { %v3452_v24 = vmul.f32 %v7705_v51, %v7703_v57 }
0x14ca   :  { %3518 = vmatmul.mubr.f32.vlgmr.msra.gmra.mrb[26].mxu1 %v3452_v24  ;;  %3589 = vmatmul.mubr.f32.vlgmr.msra.gmra.mrb[28].mxu0 %v3452_v24 }
0x14cb   :  { %6877 = vmatpush3.bf16.msra.mxu1 %v9282_v12  ;;  %5508 = vmatprep.mubr.msk.f32.mxu1 %vm7775_vm8, %v10164_v40 }
0x14cc   :  { %6878 = vmatprep.subr.bf16.mxu1 %v10165_v38  ;;  %6934 = vmatpush1.bf16.msra.mxu0 %v8982_v35 }
0x14cd   :  { %6936 = vmatprep.subr.bf16.mxu0 %v8992_v0  ;;  %3823 = vmatprep.mubr.f32.mxu0 %v10164_v40 }
0x14cf   :  { %6880 = vmatpush3.bf16.msra.mxu1 %v9291_v58 }
0x14d0   :  { %6881 = vmatprep.subr.bf16.mxu1 %v10165_v38  ;;  %6938 = vmatpush1.bf16.msra.mxu0 %v9016_v18 }
0x14d1   :  { %6940 = vmatprep.subr.bf16.mxu0 %v9028_v61 }
0x14d3   :  { %6883 = vmatpush3.bf16.msra.mxu1 %v9306_v22 }
0x14d4   :  { %6884 = vmatprep.subr.bf16.mxu1 %v10165_v38  ;;  %6942 = vmatpush1.bf16.msra.mxu0 %v9054_v50 }
0x14d5   :  { %6944 = vmatprep.subr.bf16.mxu0 %v9066_v13 }
0x14d7   :  { %6886 = vmatpush3.bf16.msra.mxu1 %v9318_v23 }
0x14d8   :  { %6887 = vmatprep.subr.bf16.mxu1 %v10165_v38  ;;  %6946 = vmatpush1.bf16.msra.mxu0 %v9090_v28 }
0x14d9   :  { %6948 = vmatprep.subr.bf16.mxu0 %v9102_v6 }
0x14db   :  { %6889 = vmatpush3.bf16.msra.mxu1 %v9330_v8 }
0x14dc   :  { %6890 = vmatprep.subr.bf16.mxu1 %v10165_v38  ;;  %6950 = vmatpush1.bf16.msra.mxu0 %v9126_v52 }
0x14dd   :  { %6952 = vmatprep.subr.bf16.mxu0 %v9138_v9 }
0x14df   :  { %6892 = vmatpush3.bf16.msra.mxu1 %v9342_v45 }
0x14e0   :  { %6893 = vmatprep.subr.bf16.mxu1 %v10165_v38  ;;  %6954 = vmatpush1.bf16.msra.mxu0 %v9162_v31 }
0x14e1   :  { %6956 = vmatprep.subr.bf16.mxu0 %v9174_v36 }
0x14e3   :  { %6895 = vmatpush3.bf16.msra.mxu1 %v9354_v62 }
0x14e4   :  { %6896 = vmatprep.subr.bf16.mxu1 %v10165_v38  ;;  %6958 = vmatpush1.bf16.msra.mxu0 %v9198_v16 }
0x14e5   :  { %6960 = vmatprep.subr.bf16.mxu0 %v9207_v33 }
0x14e7   :  { %6898 = vmatpush3.bf16.msra.mxu1 %v9366_v3 }
0x14e8   :  { %6900 = vmatprep.subr.bf16.mxu1 %v8940_v20  ;;  %6962 = vmatpush1.bf16.msra.mxu0 %v10188_v39 }
0x14e9   :  { %6964 = vmatprep.subr.bf16.mxu0 %v10189_v27 }
0x14ea   :  { %5509 = vmatmul.mubr.f32.vlgmr.msra.gmra.mrb[28].mxu1 %v3452_v24 }
0x14eb   :  { %6902 = vmatpush1.bf16.msra.mxu1 %v10190_v32  ;;  %3752 = vmatprep.mubr.f32.mxu1 %v10164_v40 }
0x14ec   :  { %6904 = vmatprep.subr.bf16.mxu1 %v10167_v2 }
0x14ef   :  { %6906 = vmatpush1.bf16.msra.mxu1 %v10219_v53 }
0x14f0   :  { %6908 = vmatprep.subr.bf16.mxu1 %v10220_v63 }
0x14f3   :  { %6910 = vmatpush1.bf16.msra.mxu1 %v10221_v19 }
0x14f4   :  { %6912 = vmatprep.subr.bf16.mxu1 %v10250_v17 }
0x14f7   :  { %6914 = vmatpush1.bf16.msra.mxu1 %v10251_v25 }
0x14f8   :  { %6916 = vmatprep.subr.bf16.mxu1 %v10252_v37 }
0x14fb   :  { %6918 = vmatpush1.bf16.msra.mxu1 %v10253_v30 }
0x14fc   :  { %6920 = vmatprep.subr.bf16.mxu1 %v10254_v44 }
0x14ff   :  { %6922 = vmatpush1.bf16.msra.mxu1 %v10255_v48 }
0x1500   :  { %6924 = vmatprep.subr.bf16.mxu1 %v10256_v29 }
0x1503   :  { %6926 = vmatpush1.bf16.msra.mxu1 %v10257_v10 }
0x1504   :  { %6928 = vmatprep.subr.bf16.mxu1 %v10258_v5 }
0x1507   :  { %6930 = vmatpush1.bf16.msra.mxu1 %v10259_v59 }
0x1508   :  { %6996 = vmatprep.subr.bf16.mxu1 %v10260_v43 }
0x15bd   :  { %v3661_v56 = vpop.f32.mrb[28].mxu1 }
0x15be   :  { %v3662_v15 = vadd.f32 %v3661_v56, %v10261_v42  ;;  %v5510_v57 = vpop.f32.mrb[29].mxu1 }
0x15c0   :  { %5206 = vst [vmem:[%s10026_s7 + $0x18] sm:$0xff] %v3662_v15  ;;  %3667 = vmax.xlane.f32.xlu0 %v3662_v15 }
0x164d   :  { %v3668_v51 = vpop.xlane.xlu0 %3667 }
0x164e   :  { %vm3669_vm2 = vcmp.ge.f32.partialorder %v3662_v15, %v3668_v51  ;;  %v10270_v15 = vld [vmem:[#allocation18_spill] sm:$0xff]  ;;  %v10271_v51 = vld [vmem:[#allocation19_spill] sm:$0xff] }
0x164f   :  { %v3670_v24 = vsel %vm3669_vm2, %v8064_v54, 128 }
0x1650   :  { %v3672_v10 = vshra.s32 %v3670_v24, 16  ;;  %v3671_v5 = vand.u32 65535, %v3670_v24  ;;  %v10272_v24 = vld [vmem:[#allocation20_spill] sm:$0xff] }
0x1652   :  { %v3674_v29 = vcvt.s32.f32 %v3672_v10  ;;  %v3673_v48 = vcvt.s32.f32 %v3671_v5  ;;  %v10266_v10 = vld [vmem:[#allocation14_spill] sm:$0xff]  ;;  %v10267_v5 = vld [vmem:[#allocation15_spill] sm:$0xff] }
0x1654   :  { %3675 = vmin.xlane.f32.xlu1 %v3674_v29 }
0x16e1   :  { %v3676_v59 = vpop.xlane.xlu1 %3675 }
0x16e2   :  { %vm3677_vm3 = vcmp.eq.f32.partialorder %v3674_v29, %v3676_v59  ;;  %v3682_v56 = vcvt.f32.s32 %v3676_v59  ;;  %v10265_v29 = vld [vmem:[#allocation13_spill] sm:$0xff]  ;;  %v10268_v59 = vld [vmem:[#allocation16_spill] sm:$0xff] }
0x16e3   :  { %v3678_v43 = vsel %vm3677_vm3, %v3673_v48, inf  ;;  %v10264_v48 = vld [vmem:[#allocation12_spill] sm:$0xff] }
0x16e4   :  { %3679 = vmin.xlane.f32.xlu0 %v3678_v43  ;;  %v3683_v57 = vshll.u32 %v3682_v56, 16  ;;  %v10269_v43 = vld [vmem:[#allocation17_spill] sm:$0xff] }
0x16e5   :  { %v10273_v56 = vld [vmem:[#allocation21_spill] sm:$0xff] }
0x1771   :  { %v3680_v42 = vpop.xlane.xlu0 %3679 }
0x1772   :  { %v3681_v44 = vcvt.f32.s32 %v3680_v42  ;;  %v10274_v42 = vld [vmem:[#allocation22_spill] sm:$0xff] }
0x1774   :  { %v3684_v30 = vadd.s32 %v3683_v57, %v3681_v44  ;;  %v10263_v44 = vld [vmem:[#allocation11_spill] sm:$0xff] }
0x1775   :  { %v10275_v57 = vld [vmem:[#allocation23_spill] sm:$0xff] }
0x1776   :  { %vm3685_vm4 = vcmp.eq.s32.totalorder %v8064_v54, %v3684_v30  ;;  %v10262_v30 = vld [vmem:[#allocation10_spill] sm:$0xff] }
0x1777   :  { %5208 = vmatmul.mubr.msk.f32.vlgmr.msra.gmra.mrb[26].mxu1 %vm3685_vm4, %v10163_v41  ;;  %5209 = vmatmul.mubr.msk.f32.vlgmr.msra.gmra.mrb[28].mxu0 %vm3685_vm4, %v10163_v41 }
0x1778   :  { %6966 = vmatpush1.bf16.msra.mxu0 %v8668_v21  ;;  %6998 = vmatpush1.bf16.msra.mxu1 %v8677_v26 }
0x1779   :  { %6968 = vmatprep.subr.bf16.mxu0 %v8691_v34  ;;  %7000 = vmatprep.subr.bf16.mxu1 %v8702_v46 }
0x177a   :  { %3918 = vmatprep.mubr.f32.mxu0 %v10164_v40  ;;  %3989 = vmatprep.mubr.f32.mxu1 %v10164_v40 }
0x177c   :  { %6970 = vmatpush1.bf16.msra.mxu0 %v8704_v49  ;;  %7002 = vmatpush1.bf16.msra.mxu1 %v8713_v55 }
0x177d   :  { %6972 = vmatprep.subr.bf16.mxu0 %v8727_v47  ;;  %7004 = vmatprep.subr.bf16.mxu1 %v8738_v4 }
0x1780   :  { %6974 = vmatpush1.bf16.msra.mxu0 %v8740_v7  ;;  %7006 = vmatpush1.bf16.msra.mxu1 %v8749_v14 }
0x1781   :  { %6976 = vmatprep.subr.bf16.mxu0 %v8763_v60  ;;  %7008 = vmatprep.subr.bf16.mxu1 %v8774_v11 }
0x1784   :  { %6978 = vmatpush1.bf16.msra.mxu0 %v10262_v30  ;;  %7010 = vmatpush1.bf16.msra.mxu1 %v10263_v44 }
0x1785   :  { %6980 = vmatprep.subr.bf16.mxu0 %v10264_v48  ;;  %7012 = vmatprep.subr.bf16.mxu1 %v10265_v29  ;;  %v10276_v29 = vld [vmem:[#allocation24_spill] sm:$0xff] }
0x1788   :  { %6982 = vmatpush1.bf16.msra.mxu0 %v10266_v10  ;;  %7014 = vmatpush1.bf16.msra.mxu1 %v10267_v5  ;;  %v10277_v10 = vld [vmem:[#allocation25_spill] sm:$0xff]  ;;  %v10278_v5 = vld [vmem:[#allocation26_spill] sm:$0xff] }
0x1789   :  { %6984 = vmatprep.subr.bf16.mxu0 %v10268_v59  ;;  %7016 = vmatprep.subr.bf16.mxu1 %v10269_v43  ;;  %v10279_v59 = vld [vmem:[#allocation27_spill] sm:$0xff] }
0x178c   :  { %6986 = vmatpush1.bf16.msra.mxu0 %v10270_v15  ;;  %7018 = vmatpush1.bf16.msra.mxu1 %v10271_v51  ;;  %v10280_v15 = vld [vmem:[#allocation28_spill] sm:$0xff] }
0x178d   :  { %6988 = vmatprep.subr.bf16.mxu0 %v10272_v24  ;;  %7020 = vmatprep.subr.bf16.mxu1 %v10273_v56 }
0x1790   :  { %6990 = vmatpush1.bf16.msra.mxu0 %v10274_v42  ;;  %7022 = vmatpush1.bf16.msra.mxu1 %v10275_v57 }
0x1791   :  { %6992 = vmatprep.subr.bf16.mxu0 %v10276_v29  ;;  %7024 = vmatprep.subr.bf16.mxu1 %v10277_v10 }
0x1794   :  { %6994 = vmatpush1.bf16.msra.mxu0 %v10278_v5  ;;  %7026 = vmatpush1.bf16.msra.mxu1 %v10279_v59 }
0x1795   :  { %7027 = vmatprep.subr.bf16.mxu0 %v10165_v38  ;;  %7084 = vmatprep.subr.bf16.mxu1 %v10280_v15 }
0x184a   :  { %v3754_v51 = vpop.f32.mrb[26].mxu1  ;;  %v3825_v24 = vpop.f32.mrb[28].mxu0 }
0x184b   :  { %v5210_v43 = vmul.f32 -1.442695, %v3754_v51  ;;  %v3756_v56 = vpop.f32.mrb[27].mxu1  ;;  %v3827_v48 = vpop.f32.mrb[29].mxu0 }
0x184c   :  { %v5211_v42 = vmul.f32 -1.442695, %v3756_v56  ;;  %v5212_v57 = vmul.f32 -1.442695, %v3827_v48 }
0x184d   :  { %7706 = vpow2.f32 %v5210_v43 }
0x184e   :  { %7708 = vpow2.f32 %v5211_v42 }
0x184f   :  { %7710 = vpow2.f32 %v5212_v57 }
0x1850   :  { %7712 = vtanh.f32 %v3825_v24 }
0x1857   :  { %v7707_v29 = vpop.eup %7706 }
0x1858   :  { %v7709_v44 = vpop.eup %7708  ;;  %v3833_v10 = vadd.f32 1.0, %v7707_v29 }
0x1859   :  { %v3839_v5 = vadd.f32 1.0, %v7709_v44  ;;  %v7711_v59 = vpop.eup %7710  ;;  %v10286_v44 = vld [vmem:[#allocation42_spill] sm:$0xff] }
0x185a   :  { %7714 = vrcp.f32 %v3833_v10  ;;  %v7713_v30 = vpop.eup %7712  ;;  %v3846_v51 = vadd.f32 1.0, %v7711_v59  ;;  %v10287_v10 = vld [vmem:[#allocation43_spill] sm:$0xff] }
0x185b   :  { %7716 = vrcp.f32 %v3839_v5  ;;  %v10288_v5 = vld [vmem:[#allocation3_spill] sm:$0xff] }
0x185c   :  { %7718 = vrcp.f32 %v3846_v51 }
0x1864   :  { %v7715_v15 = vpop.eup %7714 }
0x1865   :  { %v7717_v11 = vpop.eup %7716  ;;  %v3850_v60 = vmul.f32 %v7715_v15, %v7713_v30  ;;  %v10285_v30 = vld [vmem:[#allocation41_spill] sm:$0xff]  ;;  %v9792_v15 = vld [vmem:[%s10025_s6] sm:$0xff] }
0x1866   :  { %v3849_v14 = vmul.f32 %v7717_v11, %v9636_v1  ;;  %v7719_v48 = vpop.eup %7718  ;;  %v10283_v11 = vld [vmem:[#allocation39_spill] sm:$0xff]  ;;  %v10284_v1 = vld [vmem:[#allocation40_spill] sm:$0xff]  ;;  %10289 = vst [vmem:[#allocation44_spill] sm:$0xff] %v9792_v15 }
0x1868   :  { %v9734_v56 = vadd.f32 %v3850_v60, %v3849_v14  ;;  %v10281_v14 = vld [vmem:[#allocation37_spill] sm:$0xff]  ;;  %v10282_v60 = vld [vmem:[#allocation38_spill] sm:$0xff] }
0x186a   :  { %7720 = vtanh.f32 %v9734_v56 }
0x1874   :  { %v7721_v29 = vpop.eup %7720 }
0x1875   :  { %v3853_v43 = vmul.f32 %v7721_v29, %v7719_v48 }
0x1877   :  { %3919 = vmatmul.mubr.f32.vlgmr.msra.gmra.mrb[30].mxu0 %v3853_v43  ;;  %3990 = vmatmul.mubr.f32.vlgmr.msra.gmra.mrb[30].mxu1 %v3853_v43 }
0x1878   :  { %7029 = vmatpush3.bf16.msra.mxu0 %v9282_v12  ;;  %5543 = vmatprep.mubr.msk.f32.mxu0 %vm7775_vm8, %v10164_v40 }
0x1879   :  { %7030 = vmatprep.subr.bf16.mxu0 %v10165_v38  ;;  %7086 = vmatpush1.bf16.msra.mxu1 %v8982_v35 }
0x187a   :  { %7088 = vmatprep.subr.bf16.mxu1 %v8992_v0  ;;  %4224 = vmatprep.mubr.f32.mxu1 %v10164_v40 }
0x187c   :  { %7032 = vmatpush3.bf16.msra.mxu0 %v9291_v58 }
0x187d   :  { %7033 = vmatprep.subr.bf16.mxu0 %v10165_v38  ;;  %7090 = vmatpush1.bf16.msra.mxu1 %v9016_v18 }
0x187e   :  { %7092 = vmatprep.subr.bf16.mxu1 %v9028_v61 }
0x1880   :  { %7035 = vmatpush3.bf16.msra.mxu0 %v9306_v22 }
0x1881   :  { %7036 = vmatprep.subr.bf16.mxu0 %v10165_v38  ;;  %7094 = vmatpush1.bf16.msra.mxu1 %v9054_v50 }
0x1882   :  { %7096 = vmatprep.subr.bf16.mxu1 %v9066_v13 }
0x1884   :  { %7038 = vmatpush3.bf16.msra.mxu0 %v9318_v23 }
0x1885   :  { %7039 = vmatprep.subr.bf16.mxu0 %v10165_v38  ;;  %7098 = vmatpush1.bf16.msra.mxu1 %v9090_v28 }
0x1886   :  { %7100 = vmatprep.subr.bf16.mxu1 %v9102_v6 }
0x1888   :  { %7041 = vmatpush3.bf16.msra.mxu0 %v9330_v8 }
0x1889   :  { %7042 = vmatprep.subr.bf16.mxu0 %v10165_v38  ;;  %7102 = vmatpush1.bf16.msra.mxu1 %v9126_v52 }
0x188a   :  { %7104 = vmatprep.subr.bf16.mxu1 %v9138_v9 }
0x188c   :  { %7044 = vmatpush3.bf16.msra.mxu0 %v9342_v45 }
0x188d   :  { %7045 = vmatprep.subr.bf16.mxu0 %v10165_v38  ;;  %7106 = vmatpush1.bf16.msra.mxu1 %v9162_v31 }
0x188e   :  { %7108 = vmatprep.subr.bf16.mxu1 %v9174_v36 }
0x1890   :  { %7047 = vmatpush3.bf16.msra.mxu0 %v9354_v62 }
0x1891   :  { %7048 = vmatprep.subr.bf16.mxu0 %v10165_v38  ;;  %7110 = vmatpush1.bf16.msra.mxu1 %v9198_v16 }
0x1892   :  { %7112 = vmatprep.subr.bf16.mxu1 %v9207_v33 }
0x1894   :  { %7050 = vmatpush3.bf16.msra.mxu0 %v9366_v3 }
0x1895   :  { %7052 = vmatprep.subr.bf16.mxu0 %v8940_v20  ;;  %7114 = vmatpush1.bf16.msra.mxu1 %v10188_v39 }
0x1896   :  { %7116 = vmatprep.subr.bf16.mxu1 %v10189_v27 }
0x1897   :  { %5544 = vmatmul.mubr.f32.vlgmr.msra.gmra.mrb[32].mxu0 %v3853_v43 }
0x1898   :  { %7054 = vmatpush1.bf16.msra.mxu0 %v10190_v32  ;;  %4153 = vmatprep.mubr.f32.mxu0 %v10164_v40 }
0x1899   :  { %7056 = vmatprep.subr.bf16.mxu0 %v10167_v2 }
0x189c   :  { %7058 = vmatpush1.bf16.msra.mxu0 %v10219_v53 }
0x189d   :  { %7060 = vmatprep.subr.bf16.mxu0 %v10220_v63 }
0x18a0   :  { %7062 = vmatpush1.bf16.msra.mxu0 %v10221_v19 }
0x18a1   :  { %7064 = vmatprep.subr.bf16.mxu0 %v10250_v17 }
0x18a4   :  { %7066 = vmatpush1.bf16.msra.mxu0 %v10251_v25 }
0x18a5   :  { %7068 = vmatprep.subr.bf16.mxu0 %v10252_v37 }
0x18a8   :  { %7070 = vmatpush1.bf16.msra.mxu0 %v10281_v14 }
0x18a9   :  { %7072 = vmatprep.subr.bf16.mxu0 %v10282_v60 }
0x18ac   :  { %7074 = vmatpush1.bf16.msra.mxu0 %v10283_v11 }
0x18ad   :  { %7076 = vmatprep.subr.bf16.mxu0 %v10284_v1 }
0x18b0   :  { %7078 = vmatpush1.bf16.msra.mxu0 %v10285_v30 }
0x18b1   :  { %7080 = vmatprep.subr.bf16.mxu0 %v10286_v44 }
0x18b4   :  { %7082 = vmatpush1.bf16.msra.mxu0 %v10287_v10 }
0x18b5   :  { %7148 = vmatprep.subr.bf16.mxu0 %v10288_v5 }
0x196a   :  { %v4062_v59 = vpop.f32.mrb[32].mxu0 }
0x196b   :  { %v4063_v24 = vadd.f32 %v9792_v15, %v4062_v59  ;;  %v5545_v42 = vpop.f32.mrb[33].mxu0 }
0x196d   :  { %5213 = vst [vmem:[%s10026_s7 + $0x20] sm:$0xff] %v4063_v24  ;;  %4068 = vmax.xlane.f32.xlu1 %v4063_v24 }
0x19fa   :  { %v4069_v57 = vpop.xlane.xlu1 %4068 }
0x19fb   :  { %vm4070_vm5 = vcmp.ge.f32.partialorder %v4063_v24, %v4069_v57  ;;  %v10296_v24 = vld [vmem:[#allocation13_spill] sm:$0xff]  ;;  %v10297_v57 = vld [vmem:[#allocation14_spill] sm:$0xff] }
0x19fc   :  { %v4071_v51 = vsel %vm4070_vm5, %v8064_v54, 128 }
0x19fd   :  { %v4073_v48 = vshra.s32 %v4071_v51, 16  ;;  %v4072_v43 = vand.u32 65535, %v4071_v51  ;;  %v10298_v51 = vld [vmem:[#allocation15_spill] sm:$0xff] }
0x19ff   :  { %v4075_v29 = vcvt.s32.f32 %v4073_v48  ;;  %v4074_v10 = vcvt.s32.f32 %v4072_v43  ;;  %v10299_v48 = vld [vmem:[#allocation16_spill] sm:$0xff]  ;;  %v10301_v43 = vld [vmem:[#allocation18_spill] sm:$0xff] }
0x1a01   :  { %4076 = vmin.xlane.f32.xlu0 %v4075_v29 }
0x1a8e   :  { %v4077_v5 = vpop.xlane.xlu0 %4076 }
0x1a8f   :  { %vm4078_vm6 = vcmp.eq.f32.partialorder %v4075_v29, %v4077_v5  ;;  %v4083_v59 = vcvt.f32.s32 %v4077_v5  ;;  %v10294_v5 = vld [vmem:[#allocation11_spill] sm:$0xff]  ;;  %v10300_v29 = vld [vmem:[#allocation17_spill] sm:$0xff] }
0x1a90   :  { %v4079_v44 = vsel %vm4078_vm6, %v4074_v10, inf  ;;  %v10293_v10 = vld [vmem:[#allocation10_spill] sm:$0xff] }
0x1a91   :  { %4080 = vmin.xlane.f32.xlu1 %v4079_v44  ;;  %v4084_v15 = vshll.u32 %v4083_v59, 16  ;;  %v10292_v44 = vld [vmem:[#allocation9_spill] sm:$0xff]  ;;  %v10302_v59 = vld [vmem:[#allocation19_spill] sm:$0xff] }
0x1b1e   :  { %v4081_v42 = vpop.xlane.xlu1 %4080 }
0x1b1f   :  { %v4082_v30 = vcvt.f32.s32 %v4081_v42  ;;  %v10303_v42 = vld [vmem:[#allocation20_spill] sm:$0xff] }
0x1b21   :  { %v4085_v1 = vadd.s32 %v4084_v15, %v4082_v30  ;;  %v10291_v30 = vld [vmem:[#allocation8_spill] sm:$0xff] }
0x1b22   :  { %v10295_v15 = vld [vmem:[#allocation12_spill] sm:$0xff] }
0x1b23   :  { %vm4086_vm7 = vcmp.eq.s32.totalorder %v8064_v54, %v4085_v1  ;;  %v10290_v1 = vld [vmem:[#allocation7_spill] sm:$0xff] }
0x1b24   :  { %5215 = vmatmul.mubr.msk.f32.vlgmr.msra.gmra.mrb[30].mxu0 %vm4086_vm7, %v10163_v41  ;;  %5216 = vmatmul.mubr.msk.f32.vlgmr.msra.gmra.mrb[30].mxu1 %vm4086_vm7, %v10163_v41 }
0x1b25   :  { %7118 = vmatpush1.bf16.msra.mxu1 %v8668_v21  ;;  %7150 = vmatpush1.bf16.msra.mxu0 %v8677_v26 }
0x1b26   :  { %7120 = vmatprep.subr.bf16.mxu1 %v8691_v34  ;;  %7152 = vmatprep.subr.bf16.mxu0 %v8702_v46 }
0x1b27   :  { %4319 = vmatprep.mubr.f32.mxu1 %v10164_v40  ;;  %4390 = vmatprep.mubr.f32.mxu0 %v10164_v40 }
0x1b29   :  { %7122 = vmatpush1.bf16.msra.mxu1 %v8704_v49  ;;  %7154 = vmatpush1.bf16.msra.mxu0 %v8713_v55 }
0x1b2a   :  { %7124 = vmatprep.subr.bf16.mxu1 %v8727_v47  ;;  %7156 = vmatprep.subr.bf16.mxu0 %v8738_v4 }
0x1b2d   :  { %7126 = vmatpush1.bf16.msra.mxu1 %v8740_v7  ;;  %7158 = vmatpush1.bf16.msra.mxu0 %v10290_v1 }
0x1b2e   :  { %7128 = vmatprep.subr.bf16.mxu1 %v10291_v30  ;;  %7160 = vmatprep.subr.bf16.mxu0 %v10292_v44 }
0x1b31   :  { %7130 = vmatpush1.bf16.msra.mxu1 %v10293_v10  ;;  %7162 = vmatpush1.bf16.msra.mxu0 %v10294_v5  ;;  %v10304_v10 = vld [vmem:[#allocation21_spill] sm:$0xff]  ;;  %v10305_v5 = vld [vmem:[#allocation22_spill] sm:$0xff] }
0x1b32   :  { %7132 = vmatprep.subr.bf16.mxu1 %v10295_v15  ;;  %7164 = vmatprep.subr.bf16.mxu0 %v10296_v24  ;;  %v10306_v15 = vld [vmem:[#allocation23_spill] sm:$0xff]  ;;  %v10307_v24 = vld [vmem:[#allocation24_spill] sm:$0xff] }
0x1b35   :  { %7134 = vmatpush1.bf16.msra.mxu1 %v10297_v57  ;;  %7166 = vmatpush1.bf16.msra.mxu0 %v10298_v51  ;;  %v10308_v57 = vld [vmem:[#allocation25_spill] sm:$0xff]  ;;  %v10309_v51 = vld [vmem:[#allocation26_spill] sm:$0xff] }
0x1b36   :  { %7136 = vmatprep.subr.bf16.mxu1 %v10299_v48  ;;  %7168 = vmatprep.subr.bf16.mxu0 %v10300_v29  ;;  %v10310_v48 = vld [vmem:[#allocation27_spill] sm:$0xff] }
0x1b39   :  { %7138 = vmatpush1.bf16.msra.mxu1 %v10301_v43  ;;  %7170 = vmatpush1.bf16.msra.mxu0 %v10302_v59  ;;  %v10311_v43 = vld [vmem:[#allocation28_spill] sm:$0xff] }
0x1b3a   :  { %7140 = vmatprep.subr.bf16.mxu1 %v10303_v42  ;;  %7172 = vmatprep.subr.bf16.mxu0 %v10304_v10 }
0x1b3d   :  { %7142 = vmatpush1.bf16.msra.mxu1 %v10305_v5  ;;  %7174 = vmatpush1.bf16.msra.mxu0 %v10306_v15 }
0x1b3e   :  { %7144 = vmatprep.subr.bf16.mxu1 %v10307_v24  ;;  %7176 = vmatprep.subr.bf16.mxu0 %v10308_v57 }
0x1b41   :  { %7146 = vmatpush1.bf16.msra.mxu1 %v10309_v51  ;;  %7178 = vmatpush1.bf16.msra.mxu0 %v10310_v48 }
0x1b42   :  { %7179 = vmatprep.subr.bf16.mxu1 %v10165_v38  ;;  %7236 = vmatprep.subr.bf16.mxu0 %v10311_v43 }
0x1bf7   :  { %v4155_v59 = vpop.f32.mrb[30].mxu0  ;;  %v4226_v42 = vpop.f32.mrb[30].mxu1 }
0x1bf8   :  { %v5217_v29 = vmul.f32 -1.442695, %v4155_v59  ;;  %v4157_v10 = vpop.f32.mrb[31].mxu0  ;;  %v4228_v44 = vpop.f32.mrb[31].mxu1 }
0x1bf9   :  { %v5218_v5 = vmul.f32 -1.442695, %v4157_v10  ;;  %v5219_v15 = vmul.f32 -1.442695, %v4228_v44 }
0x1bfa   :  { %7722 = vpow2.f32 %v5217_v29 }
0x1bfb   :  { %7724 = vpow2.f32 %v5218_v5 }
0x1bfc   :  { %7726 = vpow2.f32 %v5219_v15 }
0x1bfd   :  { %7728 = vtanh.f32 %v4226_v42 }
0x1c04   :  { %v7723_v24 = vpop.eup %7722 }
0x1c05   :  { %v7725_v30 = vpop.eup %7724  ;;  %v4234_v57 = vadd.f32 1.0, %v7723_v24 }
0x1c06   :  { %v4240_v51 = vadd.f32 1.0, %v7725_v30  ;;  %v7727_v48 = vpop.eup %7726  ;;  %v10317_v30 = vld [vmem:[#allocation44_spill] sm:$0xff] }
0x1c07   :  { %7730 = vrcp.f32 %v4234_v57  ;;  %v7729_v1 = vpop.eup %7728  ;;  %v4247_v59 = vadd.f32 1.0, %v7727_v48 }
0x1c08   :  { %7732 = vrcp.f32 %v4240_v51 }
0x1c09   :  { %7734 = vrcp.f32 %v4247_v59 }
0x1c11   :  { %v7731_v43 = vpop.eup %7730 }
0x1c12   :  { %v7733_v7 = vpop.eup %7732  ;;  %v4251_v4 = vmul.f32 %v7731_v43, %v7729_v1 }
0x1c13   :  { %v4250_v47 = vmul.f32 %v7733_v7, %v9734_v56  ;;  %v7735_v44 = vpop.eup %7734  ;;  %v10314_v7 = vld [vmem:[#allocation42_spill] sm:$0xff]  ;;  %v10316_v56 = vld [vmem:[#allocation3_spill] sm:$0xff] }
0x1c15   :  { %v9837_v10 = vadd.f32 %v4251_v4, %v4250_v47  ;;  %v10312_v47 = vld [vmem:[#allocation40_spill] sm:$0xff]  ;;  %v10313_v4 = vld [vmem:[#allocation41_spill] sm:$0xff] }
0x1c17   :  { %7736 = vtanh.f32 %v9837_v10 }
0x1c21   :  { %v7737_v5 = vpop.eup %7736 }
0x1c22   :  { %v4254_v15 = vmul.f32 %v7737_v5, %v7735_v44 }
0x1c24   :  { %4320 = vmatmul.mubr.f32.vlgmr.msra.gmra.mrb[32].mxu1 %v4254_v15  ;;  %4391 = vmatmul.mubr.f32.vlgmr.msra.gmra.mrb[34].mxu0 %v4254_v15 }
0x1c25   :  { %7181 = vmatpush3.bf16.msra.mxu1 %v9282_v12  ;;  %5578 = vmatprep.mubr.msk.f32.mxu1 %vm7775_vm8, %v10164_v40 }
0x1c26   :  { %7182 = vmatprep.subr.bf16.mxu1 %v10165_v38  ;;  %7238 = vmatpush1.bf16.msra.mxu0 %v8982_v35 }
0x1c27   :  { %7240 = vmatprep.subr.bf16.mxu0 %v8992_v0  ;;  %4625 = vmatprep.mubr.f32.mxu0 %v10164_v40 }
0x1c29   :  { %7184 = vmatpush3.bf16.msra.mxu1 %v9291_v58 }
0x1c2a   :  { %7185 = vmatprep.subr.bf16.mxu1 %v10165_v38  ;;  %7242 = vmatpush1.bf16.msra.mxu0 %v9016_v18 }
0x1c2b   :  { %7244 = vmatprep.subr.bf16.mxu0 %v9028_v61 }
0x1c2d   :  { %7187 = vmatpush3.bf16.msra.mxu1 %v9306_v22 }
0x1c2e   :  { %7188 = vmatprep.subr.bf16.mxu1 %v10165_v38  ;;  %7246 = vmatpush1.bf16.msra.mxu0 %v9054_v50 }
0x1c2f   :  { %7248 = vmatprep.subr.bf16.mxu0 %v9066_v13 }
0x1c31   :  { %7190 = vmatpush3.bf16.msra.mxu1 %v9318_v23 }
0x1c32   :  { %7191 = vmatprep.subr.bf16.mxu1 %v10165_v38  ;;  %7250 = vmatpush1.bf16.msra.mxu0 %v9090_v28 }
0x1c33   :  { %7252 = vmatprep.subr.bf16.mxu0 %v9102_v6 }
0x1c35   :  { %7193 = vmatpush3.bf16.msra.mxu1 %v9330_v8 }
0x1c36   :  { %7194 = vmatprep.subr.bf16.mxu1 %v10165_v38  ;;  %7254 = vmatpush1.bf16.msra.mxu0 %v9126_v52 }
0x1c37   :  { %7256 = vmatprep.subr.bf16.mxu0 %v9138_v9 }
0x1c39   :  { %7196 = vmatpush3.bf16.msra.mxu1 %v9342_v45 }
0x1c3a   :  { %7197 = vmatprep.subr.bf16.mxu1 %v10165_v38  ;;  %7258 = vmatpush1.bf16.msra.mxu0 %v9162_v31 }
0x1c3b   :  { %7260 = vmatprep.subr.bf16.mxu0 %v9174_v36 }
0x1c3d   :  { %7199 = vmatpush3.bf16.msra.mxu1 %v9354_v62 }
0x1c3e   :  { %7200 = vmatprep.subr.bf16.mxu1 %v10165_v38  ;;  %7262 = vmatpush1.bf16.msra.mxu0 %v9198_v16 }
0x1c3f   :  { %7264 = vmatprep.subr.bf16.mxu0 %v9207_v33 }
0x1c41   :  { %7202 = vmatpush3.bf16.msra.mxu1 %v9366_v3 }
0x1c42   :  { %7204 = vmatprep.subr.bf16.mxu1 %v8940_v20  ;;  %7266 = vmatpush1.bf16.msra.mxu0 %v10188_v39 }
0x1c43   :  { %7268 = vmatprep.subr.bf16.mxu0 %v10189_v27  ;;  %v10315_v27 = vld [vmem:[#allocation43_spill] sm:$0xff] }
0x1c44   :  { %5579 = vmatmul.mubr.f32.vlgmr.msra.gmra.mrb[34].mxu1 %v4254_v15 }
0x1c45   :  { %7206 = vmatpush1.bf16.msra.mxu1 %v10190_v32  ;;  %4554 = vmatprep.mubr.f32.mxu1 %v10164_v40 }
0x1c46   :  { %7208 = vmatprep.subr.bf16.mxu1 %v10167_v2 }
0x1c49   :  { %7210 = vmatpush1.bf16.msra.mxu1 %v10219_v53 }
0x1c4a   :  { %7212 = vmatprep.subr.bf16.mxu1 %v10220_v63 }
0x1c4d   :  { %7214 = vmatpush1.bf16.msra.mxu1 %v10221_v19 }
0x1c4e   :  { %7216 = vmatprep.subr.bf16.mxu1 %v10250_v17 }
0x1c51   :  { %7218 = vmatpush1.bf16.msra.mxu1 %v10251_v25 }
0x1c52   :  { %7220 = vmatprep.subr.bf16.mxu1 %v10252_v37 }
0x1c55   :  { %7222 = vmatpush1.bf16.msra.mxu1 %v10281_v14 }
0x1c56   :  { %7224 = vmatprep.subr.bf16.mxu1 %v10282_v60 }
0x1c59   :  { %7226 = vmatpush1.bf16.msra.mxu1 %v10283_v11 }
0x1c5a   :  { %7228 = vmatprep.subr.bf16.mxu1 %v10312_v47 }
0x1c5d   :  { %7230 = vmatpush1.bf16.msra.mxu1 %v10313_v4 }
0x1c5e   :  { %7232 = vmatprep.subr.bf16.mxu1 %v10314_v7 }
0x1c61   :  { %7234 = vmatpush1.bf16.msra.mxu1 %v10315_v27 }
0x1c62   :  { %7300 = vmatprep.subr.bf16.mxu1 %v10316_v56 }
0x1d17   :  { %v4463_v1 = vpop.f32.mrb[34].mxu1 }
0x1d18   :  { %v4464_v24 = vadd.f32 %v10317_v30, %v4463_v1  ;;  %v5580_v57 = vpop.f32.mrb[35].mxu1 }
0x1d1a   :  { %5220 = vst [vmem:[%s10026_s7 + $0x28] sm:$0xff] %v4464_v24  ;;  %4469 = vmax.xlane.f32.xlu0 %v4464_v24 }
0x1da7   :  { %v4470_v51 = vpop.xlane.xlu0 %4469 }
0x1da8   :  { %vm4471_vm9 = vcmp.ge.f32.partialorder %v4464_v24, %v4470_v51  ;;  %v10319_v24 = vld [vmem:[#allocation5_spill] sm:$0xff]  ;;  %v10320_v51 = vld [vmem:[#allocation6_spill] sm:$0xff] }
0x1da9   :  { %v4472_v48 = vsel %vm4471_vm9, %v8064_v54, 128 }
0x1daa   :  { %v4474_v29 = vshra.s32 %v4472_v48, 16  ;;  %v4473_v42 = vand.u32 65535, %v4472_v48  ;;  %v10325_v48 = vld [vmem:[#allocation11_spill] sm:$0xff] }
0x1dac   :  { %v4476_v43 = vcvt.s32.f32 %v4474_v29  ;;  %v4475_v44 = vcvt.s32.f32 %v4473_v42  ;;  %v10326_v29 = vld [vmem:[#allocation12_spill] sm:$0xff] }
0x1dad   :  { %v10330_v42 = vld [vmem:[#allocation16_spill] sm:$0xff] }
0x1dae   :  { %4477 = vmin.xlane.f32.xlu1 %v4476_v43 }
0x1e3b   :  { %v4478_v59 = vpop.xlane.xlu1 %4477 }
0x1e3c   :  { %vm4479_vm10 = vcmp.eq.f32.partialorder %v4476_v43, %v4478_v59  ;;  %v4484_v15 = vcvt.f32.s32 %v4478_v59  ;;  %v10329_v43 = vld [vmem:[#allocation15_spill] sm:$0xff]  ;;  %v10331_v59 = vld [vmem:[#allocation17_spill] sm:$0xff] }
0x1e3d   :  { %v4480_v5 = vsel %vm4479_vm10, %v4475_v44, inf  ;;  %v10332_v44 = vld [vmem:[#allocation18_spill] sm:$0xff] }
0x1e3e   :  { %4481 = vmin.xlane.f32.xlu0 %v4480_v5  ;;  %v4485_v1 = vshll.u32 %v4484_v15, 16  ;;  %v10333_v5 = vld [vmem:[#allocation19_spill] sm:$0xff]  ;;  %v10334_v15 = vld [vmem:[#allocation20_spill] sm:$0xff] }
0x1ecb   :  { %v4482_v56 = vpop.xlane.xlu0 %4481 }
0x1ecc   :  { %v4483_v57 = vcvt.f32.s32 %v4482_v56  ;;  %v10335_v56 = vld [vmem:[#allocation21_spill] sm:$0xff] }
0x1ece   :  { %v4486_v30 = vadd.s32 %v4485_v1, %v4483_v57  ;;  %v10336_v1 = vld [vmem:[#allocation22_spill] sm:$0xff]  ;;  %v10337_v57 = vld [vmem:[#allocation23_spill] sm:$0xff] }
0x1ed0   :  { %vm4487_vm11 = vcmp.eq.s32.totalorder %v8064_v54, %v4486_v30  ;;  %v10318_v30 = vld [vmem:[#allocation4_spill] sm:$0xff] }
0x1ed1   :  { %5222 = vmatmul.mubr.msk.f32.vlgmr.msra.gmra.mrb[32].mxu1 %vm4487_vm11, %v10163_v41  ;;  %5223 = vmatmul.mubr.msk.f32.vlgmr.msra.gmra.mrb[34].mxu0 %vm4487_vm11, %v10163_v41 }
0x1ed2   :  { %7270 = vmatpush1.bf16.msra.mxu0 %v8668_v21  ;;  %7302 = vmatpush1.bf16.msra.mxu1 %v8677_v26  ;;  %v10321_v21 = vld [vmem:[#allocation7_spill] sm:$0xff]  ;;  %v10322_v26 = vld [vmem:[#allocation8_spill] sm:$0xff] }
0x1ed3   :  { %7272 = vmatprep.subr.bf16.mxu0 %v8691_v34  ;;  %7304 = vmatprep.subr.bf16.mxu1 %v8702_v46  ;;  %v10323_v34 = vld [vmem:[#allocation9_spill] sm:$0xff]  ;;  %v10324_v46 = vld [vmem:[#allocation10_spill] sm:$0xff] }
0x1ed4   :  { %4720 = vmatprep.mubr.f32.mxu0 %v10164_v40  ;;  %4791 = vmatprep.mubr.f32.mxu1 %v10164_v40 }
0x1ed6   :  { %7274 = vmatpush1.bf16.msra.mxu0 %v8704_v49  ;;  %7306 = vmatpush1.bf16.msra.mxu1 %v8713_v55  ;;  %v10327_v49 = vld [vmem:[#allocation13_spill] sm:$0xff]  ;;  %v10328_v55 = vld [vmem:[#allocation14_spill] sm:$0xff] }
0x1ed7   :  { %7276 = vmatprep.subr.bf16.mxu0 %v10318_v30  ;;  %7308 = vmatprep.subr.bf16.mxu1 %v10319_v24  ;;  %v10338_v30 = vld [vmem:[#allocation24_spill] sm:$0xff]  ;;  %v10339_v24 = vld [vmem:[#allocation25_spill] sm:$0xff] }
0x1eda   :  { %7278 = vmatpush1.bf16.msra.mxu0 %v10320_v51  ;;  %7310 = vmatpush1.bf16.msra.mxu1 %v10321_v21  ;;  %v10340_v51 = vld [vmem:[#allocation26_spill] sm:$0xff]  ;;  %v10341_v21 = vld [vmem:[#allocation27_spill] sm:$0xff] }
0x1edb   :  { %7280 = vmatprep.subr.bf16.mxu0 %v10322_v26  ;;  %7312 = vmatprep.subr.bf16.mxu1 %v10323_v34  ;;  %v10342_v26 = vld [vmem:[#allocation28_spill] sm:$0xff] }
0x1ede   :  { %7282 = vmatpush1.bf16.msra.mxu0 %v10324_v46  ;;  %7314 = vmatpush1.bf16.msra.mxu1 %v10325_v48 }
0x1edf   :  { %7284 = vmatprep.subr.bf16.mxu0 %v10326_v29  ;;  %7316 = vmatprep.subr.bf16.mxu1 %v10327_v49 }
0x1ee2   :  { %7286 = vmatpush1.bf16.msra.mxu0 %v10328_v55  ;;  %7318 = vmatpush1.bf16.msra.mxu1 %v10329_v43 }
0x1ee3   :  { %7288 = vmatprep.subr.bf16.mxu0 %v10330_v42  ;;  %7320 = vmatprep.subr.bf16.mxu1 %v10331_v59 }
0x1ee6   :  { %7290 = vmatpush1.bf16.msra.mxu0 %v10332_v44  ;;  %7322 = vmatpush1.bf16.msra.mxu1 %v10333_v5 }
0x1ee7   :  { %7292 = vmatprep.subr.bf16.mxu0 %v10334_v15  ;;  %7324 = vmatprep.subr.bf16.mxu1 %v10335_v56 }
0x1eea   :  { %7294 = vmatpush1.bf16.msra.mxu0 %v10336_v1  ;;  %7326 = vmatpush1.bf16.msra.mxu1 %v10337_v57 }
0x1eeb   :  { %7296 = vmatprep.subr.bf16.mxu0 %v10338_v30  ;;  %7328 = vmatprep.subr.bf16.mxu1 %v10339_v24 }
0x1eee   :  { %7298 = vmatpush1.bf16.msra.mxu0 %v10340_v51  ;;  %7330 = vmatpush1.bf16.msra.mxu1 %v10341_v21 }
0x1eef   :  { %7331 = vmatprep.subr.bf16.mxu0 %v10165_v38  ;;  %7388 = vmatprep.subr.bf16.mxu1 %v10342_v26 }
0x1fa4   :  { %v4556_v34 = vpop.f32.mrb[32].mxu1  ;;  %v4627_v46 = vpop.f32.mrb[34].mxu0 }
0x1fa5   :  { %v5224_v48 = vmul.f32 -1.442695, %v4556_v34  ;;  %v4558_v29 = vpop.f32.mrb[33].mxu1  ;;  %v4629_v49 = vpop.f32.mrb[35].mxu0 }
0x1fa6   :  { %v5225_v55 = vmul.f32 -1.442695, %v4558_v29  ;;  %v5226_v43 = vmul.f32 -1.442695, %v4629_v49 }
0x1fa7   :  { %7738 = vpow2.f32 %v5224_v48 }
0x1fa8   :  { %7740 = vpow2.f32 %v5225_v55 }
0x1fa9   :  { %7742 = vpow2.f32 %v5226_v43 }
0x1faa   :  { %7744 = vtanh.f32 %v4627_v46 }
0x1fb1   :  { %v7739_v42 = vpop.eup %7738 }
0x1fb2   :  { %v7741_v59 = vpop.eup %7740  ;;  %v4635_v44 = vadd.f32 1.0, %v7739_v42 }
0x1fb3   :  { %v4641_v5 = vadd.f32 1.0, %v7741_v59  ;;  %v7743_v15 = vpop.eup %7742 }
0x1fb4   :  { %7746 = vrcp.f32 %v4635_v44  ;;  %v7745_v56 = vpop.eup %7744  ;;  %v4648_v24 = vadd.f32 1.0, %v7743_v15 }
0x1fb5   :  { %7748 = vrcp.f32 %v4641_v5 }
0x1fb6   :  { %7750 = vrcp.f32 %v4648_v24 }
0x1fbe   :  { %v7747_v1 = vpop.eup %7746 }
0x1fbf   :  { %v7749_v57 = vpop.eup %7748  ;;  %v4652_v30 = vmul.f32 %v7747_v1, %v7745_v56 }
0x1fc0   :  { %v4651_v51 = vmul.f32 %v7749_v57, %v9837_v10  ;;  %v7751_v26 = vpop.eup %7750 }
0x1fc2   :  { %v9935_v21 = vadd.f32 %v4652_v30, %v4651_v51 }
0x1fc4   :  { %7752 = vtanh.f32 %v9935_v21 }
0x1fce   :  { %v7753_v34 = vpop.eup %7752 }
0x1fcf   :  { %v4655_v48 = vmul.f32 %v7753_v34, %v7751_v26 }
0x1fd1   :  { %4721 = vmatmul.mubr.f32.vlgmr.msra.gmra.mrb[36].mxu0 %v4655_v48  ;;  %4792 = vmatmul.mubr.f32.vlgmr.msra.gmra.mrb[36].mxu1 %v4655_v48 }
0x1fd2   :  { %7333 = vmatpush3.bf16.msra.mxu0 %v9282_v12  ;;  %5613 = vmatprep.mubr.msk.f32.mxu0 %vm7775_vm8, %v10164_v40 }
0x1fd3   :  { %7334 = vmatprep.subr.bf16.mxu0 %v10165_v38  ;;  %7390 = vmatpush1.bf16.msra.mxu1 %v8982_v35 }
0x1fd4   :  { %7392 = vmatprep.subr.bf16.mxu1 %v8992_v0  ;;  %5026 = vmatprep.mubr.f32.mxu1 %v10164_v40 }
0x1fd6   :  { %7336 = vmatpush3.bf16.msra.mxu0 %v9291_v58 }
0x1fd7   :  { %7337 = vmatprep.subr.bf16.mxu0 %v10165_v38  ;;  %7394 = vmatpush1.bf16.msra.mxu1 %v9016_v18 }
0x1fd8   :  { %7396 = vmatprep.subr.bf16.mxu1 %v9028_v61 }
0x1fda   :  { %7339 = vmatpush3.bf16.msra.mxu0 %v9306_v22 }
0x1fdb   :  { %7340 = vmatprep.subr.bf16.mxu0 %v10165_v38  ;;  %7398 = vmatpush1.bf16.msra.mxu1 %v9054_v50 }
0x1fdc   :  { %7400 = vmatprep.subr.bf16.mxu1 %v9066_v13 }
0x1fde   :  { %7342 = vmatpush3.bf16.msra.mxu0 %v9318_v23 }
0x1fdf   :  { %7343 = vmatprep.subr.bf16.mxu0 %v10165_v38  ;;  %7402 = vmatpush1.bf16.msra.mxu1 %v9090_v28 }
0x1fe0   :  { %7404 = vmatprep.subr.bf16.mxu1 %v9102_v6 }
0x1fe2   :  { %7345 = vmatpush3.bf16.msra.mxu0 %v9330_v8 }
0x1fe3   :  { %7346 = vmatprep.subr.bf16.mxu0 %v10165_v38  ;;  %7406 = vmatpush1.bf16.msra.mxu1 %v9126_v52 }
0x1fe4   :  { %7408 = vmatprep.subr.bf16.mxu1 %v9138_v9 }
0x1fe6   :  { %7348 = vmatpush3.bf16.msra.mxu0 %v9342_v45 }
0x1fe7   :  { %7349 = vmatprep.subr.bf16.mxu0 %v10165_v38  ;;  %7410 = vmatpush1.bf16.msra.mxu1 %v9162_v31 }
0x1fe8   :  { %7412 = vmatprep.subr.bf16.mxu1 %v9174_v36 }
0x1fea   :  { %7351 = vmatpush3.bf16.msra.mxu0 %v9354_v62 }
0x1feb   :  { %7352 = vmatprep.subr.bf16.mxu0 %v10165_v38  ;;  %7414 = vmatpush1.bf16.msra.mxu1 %v9198_v16 }
0x1fec   :  { %7416 = vmatprep.subr.bf16.mxu1 %v9207_v33 }
0x1fee   :  { %7354 = vmatpush3.bf16.msra.mxu0 %v9366_v3 }
0x1fef   :  { %7356 = vmatprep.subr.bf16.mxu0 %v8940_v20  ;;  %7418 = vmatpush1.bf16.msra.mxu1 %v10188_v39  ;;  %v10343_v20 = vld [vmem:[#allocation44_spill] sm:$0xff] }
0x1ff0   :  { %7419 = vmatprep.subr.bf16.mxu1 %v10165_v38 }
0x1ff1   :  { %5614 = vmatmul.mubr.f32.vlgmr.msra.gmra.mrb[38].mxu0 %v4655_v48 }
0x1ff2   :  { %7358 = vmatpush1.bf16.msra.mxu0 %v10190_v32  ;;  %4955 = vmatprep.mubr.f32.mxu0 %v10164_v40 }
0x1ff3   :  { %7360 = vmatprep.subr.bf16.mxu0 %v10167_v2 }
0x1ff6   :  { %7362 = vmatpush1.bf16.msra.mxu0 %v10219_v53 }
0x1ff7   :  { %7364 = vmatprep.subr.bf16.mxu0 %v10220_v63 }
0x1ffa   :  { %7366 = vmatpush1.bf16.msra.mxu0 %v10221_v19 }
0x1ffb   :  { %7368 = vmatprep.subr.bf16.mxu0 %v10250_v17 }
0x1ffe   :  { %7370 = vmatpush1.bf16.msra.mxu0 %v10251_v25 }
0x1fff   :  { %7372 = vmatprep.subr.bf16.mxu0 %v10252_v37 }
0x2002   :  { %7374 = vmatpush1.bf16.msra.mxu0 %v10281_v14 }
0x2003   :  { %7376 = vmatprep.subr.bf16.mxu0 %v10282_v60 }
0x2006   :  { %7378 = vmatpush1.bf16.msra.mxu0 %v10283_v11 }
0x2007   :  { %7380 = vmatprep.subr.bf16.mxu0 %v10312_v47 }
0x200a   :  { %7382 = vmatpush1.bf16.msra.mxu0 %v10313_v4 }
0x200b   :  { %7384 = vmatprep.subr.bf16.mxu0 %v10314_v7 }
0x200e   :  { %7386 = vmatpush1.bf16.msra.mxu0 %v10315_v27 }
0x20c4   :  { %v4864_v6 = vpop.f32.mrb[38].mxu0 }
0x20c5   :  { %v4865_v33 = vadd.f32 %v10343_v20, %v4864_v6  ;;  %v5615_v35 = vpop.f32.mrb[39].mxu0 }
0x20c7   :  { %5227 = vst [vmem:[%s10026_s7 + $0x30] sm:$0xff] %v4865_v33  ;;  %4870 = vmax.xlane.f32.xlu1 %v4865_v33 }
0x2154   :  { %v4871_v0 = vpop.xlane.xlu1 %4870 }
0x2155   :  { %vm4872_vm12 = vcmp.ge.f32.partialorder %v4865_v33, %v4871_v0 }
0x2156   :  { %v4873_v18 = vsel %vm4872_vm12, %v8064_v54, 128 }
0x2157   :  { %v4875_v61 = vshra.s32 %v4873_v18, 16  ;;  %v4874_v13 = vand.u32 65535, %v4873_v18 }
0x2159   :  { %v4877_v50 = vcvt.s32.f32 %v4875_v61  ;;  %v4876_v28 = vcvt.s32.f32 %v4874_v13 }
0x215b   :  { %4878 = vmin.xlane.f32.xlu0 %v4877_v50 }
0x21e8   :  { %v4879_v9 = vpop.xlane.xlu0 %4878 }
0x21e9   :  { %vm4880_vm13 = vcmp.eq.f32.partialorder %v4877_v50, %v4879_v9  ;;  %v4885_v52 = vcvt.f32.s32 %v4879_v9 }
0x21ea   :  { %v4881_v36 = vsel %vm4880_vm13, %v4876_v28, inf }
0x21eb   :  { %4882 = vmin.xlane.f32.xlu1 %v4881_v36  ;;  %v4886_v16 = vshll.u32 %v4885_v52, 16 }
0x2278   :  { %v4883_v31 = vpop.xlane.xlu1 %4882 }
0x2279   :  { %v4884_v2 = vcvt.f32.s32 %v4883_v31 }
0x227b   :  { %v4887_v39 = vadd.s32 %v4886_v16, %v4884_v2 }
0x227d   :  { %vm4888_vm14 = vcmp.eq.s32.totalorder %v8064_v54, %v4887_v39 }
0x227e   :  { %5229 = vmatmul.mubr.msk.f32.vlgmr.msra.gmra.mrb[36].mxu0 %vm4888_vm14, %v10163_v41  ;;  %5230 = vmatmul.mubr.msk.f32.vlgmr.msra.gmra.mrb[36].mxu1 %vm4888_vm14, %v10163_v41 }
0x227f   :  { %7421 = vmatpush3.bf16.msra.mxu1 %v9282_v12  ;;  %5648 = vmatprep.mubr.msk.f32.mxu1 %vm7775_vm8, %v10164_v40 }
0x2280   :  { %7422 = vmatprep.subr.bf16.mxu1 %v10165_v38 }
0x2283   :  { %7424 = vmatpush3.bf16.msra.mxu1 %v9291_v58 }
0x2284   :  { %7425 = vmatprep.subr.bf16.mxu1 %v10165_v38 }
0x2287   :  { %7427 = vmatpush3.bf16.msra.mxu1 %v9306_v22 }
0x2288   :  { %7428 = vmatprep.subr.bf16.mxu1 %v10165_v38 }
0x228b   :  { %7430 = vmatpush3.bf16.msra.mxu1 %v9318_v23 }
0x228c   :  { %7431 = vmatprep.subr.bf16.mxu1 %v10165_v38 }
0x228f   :  { %7433 = vmatpush3.bf16.msra.mxu1 %v9330_v8 }
0x2290   :  { %7434 = vmatprep.subr.bf16.mxu1 %v10165_v38 }
0x2293   :  { %7436 = vmatpush3.bf16.msra.mxu1 %v9342_v45 }
0x2294   :  { %7437 = vmatprep.subr.bf16.mxu1 %v10165_v38 }
0x2297   :  { %7439 = vmatpush3.bf16.msra.mxu1 %v9354_v62 }
0x2298   :  { %7440 = vmatprep.subr.bf16.mxu1 %v10165_v38 }
0x229b   :  { %7442 = vmatpush3.bf16.msra.mxu1 %v9366_v3 }
0x2351   :  { %v4957_v54 = vpop.f32.mrb[36].mxu0  ;;  %v5028_v41 = vpop.f32.mrb[36].mxu1 }
0x2352   :  { %v5231_v40 = vmul.f32 -1.442695, %v4957_v54  ;;  %v4959_v12 = vpop.f32.mrb[37].mxu0  ;;  %v5030_v58 = vpop.f32.mrb[37].mxu1 }
0x2353   :  { %v5232_v22 = vmul.f32 -1.442695, %v4959_v12  ;;  %v5233_v23 = vmul.f32 -1.442695, %v5030_v58 }
0x2354   :  { %7754 = vpow2.f32 %v5231_v40 }
0x2355   :  { %7756 = vpow2.f32 %v5232_v22 }
0x2356   :  { %7758 = vpow2.f32 %v5233_v23 }
0x2357   :  { %7760 = vtanh.f32 %v5028_v41 }
0x235e   :  { %v7755_v8 = vpop.eup %7754 }
0x235f   :  { %v7757_v32 = vpop.eup %7756  ;;  %v5036_v45 = vadd.f32 1.0, %v7755_v8 }
0x2360   :  { %v5042_v53 = vadd.f32 1.0, %v7757_v32  ;;  %v7759_v38 = vpop.eup %7758 }
0x2361   :  { %7762 = vrcp.f32 %v5036_v45  ;;  %v7761_v62 = vpop.eup %7760  ;;  %v5049_v17 = vadd.f32 1.0, %v7759_v38 }
0x2362   :  { %7764 = vrcp.f32 %v5042_v53 }
0x2363   :  { %7766 = vrcp.f32 %v5049_v17 }
0x236b   :  { %v7763_v3 = vpop.eup %7762 }
0x236c   :  { %v7765_v63 = vpop.eup %7764  ;;  %v5053_v19 = vmul.f32 %v7763_v3, %v7761_v62 }
0x236d   :  { %v5052_v25 = vmul.f32 %v7765_v63, %v9935_v21  ;;  %v7767_v14 = vpop.eup %7766 }
0x236f   :  { %v5054_v37 = vadd.f32 %v5053_v19, %v5052_v25 }
0x2371   :  { %7768 = vtanh.f32 %v5054_v37 }
0x237b   :  { %v7769_v60 = vpop.eup %7768 }
0x237c   :  { %v5056_v11 = vmul.f32 %v7769_v60, %v7767_v14 }
0x237e   :  { %5649 = vmatmul.mubr.f32.vlgmr.msra.gmra.mrb[38].mxu1 %v5056_v11 }
0x2451   :  { %v5123_v10 = vpop.f32.mrb[38].mxu1 }
0x2452   :  { %v5124_v47 = vadd.f32 %v10343_v20, %v5123_v10  ;;  %v5650_v4 = vpop.f32.mrb[39].mxu1 }
0x2454   :  { %5234 = vst [vmem:[%s10026_s7 + $0x38] sm:$0xff] %v5124_v47 }

</bundles_post_ra>
